<compile_context>
chip_gen: v7x
topology: tpu7x:2x2x1
jax: 0.10.0
libtpu: 0.0.40
codegen_flags: <defaults>
</compile_context>

<pallas_src>
import functools

import jax
import jax.numpy as jnp
from jax import lax
from jax.experimental import pallas as pl
from jax.experimental.pallas import tpu as pltpu

# ----------------------------- configuration -----------------------------
B = 2
C_VID = 256          # video feature channels (embed_dim of the MHA)
D_TXT = 128          # text / prompt hidden size
H_CLS = 64           # hidden of cls_net MLP
N_CLS = 24           # number of action classes
NUM_HEADS = 8
HEAD_DIM = C_VID // NUM_HEADS
T, H, W = 2, 4, 4
S = T * H * W        # number of video tokens
CTX_LEN = 6          # "a player wearing a jersey number"
COLOR_IDX = 4
NUMBER_IDX = 6
TEXT_EMB_LEN = 5
L_PROMPT = CTX_LEN + 2 + 2 + TEXT_EMB_LEN   # 15
L_PAD = 16           # prompt length padded to a sublane-aligned size

H_PAD = 128          # lane-dense padding for cls_net hidden dim
PRED_PAD = 128       # lane-dense padding for the N_CLS logits


# ----------------------------- fused Pallas kernel -----------------------------
def _fused_kernel(vid_ref, txt_ref, w_qkvo_hbm,
                  w_in_ref, b_in_ref, w1_ref, b1_ref, w2_ref, b2_ref,
                  w_tl_ref, b_tl_ref,
                  bq_ref, bk_ref, bv_ref, bo_ref,
                  out_ref, cls_ref, pred_ref,
                  qkvo_vmem, dma_sem,
                  *, batch, seq, l_real, l_pad, num_heads, head_dim):
    """AvgPool3d + input_linear + cls_net + text_linear + cross-MHA + residual."""
    bf16 = jnp.bfloat16
    f32 = jnp.float32

    # --- start fetching the q/k/v/o projection weights (512 KiB bf16);
    #     overlapped with the pooling / cls_net / text_linear phase below ---
    wcopy = pltpu.make_async_copy(w_qkvo_hbm, qkvo_vmem, dma_sem)
    wcopy.start()

    # --- AdaptiveAvgPool3d(1) + input_linear + cls_net (independent of attn) ---
    pooled = jnp.concatenate(
        [jnp.mean(vid_ref[pl.ds(b * seq, seq), :], axis=0, keepdims=True)
         for b in range(batch)], axis=0)                                   # (B, E) f32
    cls_fea = jnp.dot(pooled.astype(bf16), w_in_ref[...],
                      preferred_element_type=f32) + b_in_ref[...]          # (B, D_TXT)
    cls_ref[...] = cls_fea                                                 # lane-dense
    h1 = jnp.maximum(
        jnp.dot(cls_fea.astype(bf16), w1_ref[...],
                preferred_element_type=f32) + b1_ref[...], 0.0)            # (B, H_PAD)
    pred_ref[...] = jnp.dot(h1.astype(bf16), w2_ref[...],
                            preferred_element_type=f32) + b2_ref[...]      # (B, PRED_PAD)

    # --- text_linear for all samples at once (also independent of attn wts) ---
    tl = jnp.dot(txt_ref[...].astype(bf16), w_tl_ref[...],
                 preferred_element_type=f32) + b_tl_ref[...]               # (B*Lp, E)
    tl_bf = tl.astype(bf16)

    wcopy.wait()   # attention weights now resident in VMEM scratch

    # --- q/k/v projections, batch-merged (one full-K matmul each) ---
    scale = 1.0 / (head_dim ** 0.5)
    q = jnp.dot(vid_ref[...].astype(bf16), qkvo_vmem[0],
                preferred_element_type=f32) + bq_ref[...]                  # (B*S, E)
    q_bf = (q * scale).astype(bf16)                                        # scale once
    k_bf = (jnp.dot(tl_bf, qkvo_vmem[1], preferred_element_type=f32)
            + bk_ref[...]).astype(bf16)                                    # (B*Lp, E)
    v_bf = (jnp.dot(tl_bf, qkvo_vmem[2], preferred_element_type=f32)
            + bv_ref[...]).astype(bf16)                                    # (B*Lp, E)

    # --- scores for every (batch, head) pair, ONE batched softmax ---
    s_blocks = []
    for b in range(batch):                                 # static unroll (B=2)
        for h in range(num_heads):                         # static unroll (H=8)
            lo = h * head_dim
            s_blocks.append(lax.dot_general(
                q_bf[b * seq:(b + 1) * seq, lo:lo + head_dim],
                k_bf[b * l_pad:(b + 1) * l_pad, lo:lo + head_dim],
                (((1,), (1,)), ((), ())), preferred_element_type=f32))     # (S, Lp)
    s_all = jnp.concatenate(s_blocks, axis=0)              # (B*H*S, Lp) f32
    key_mask = jnp.where(
        lax.broadcasted_iota(jnp.int32, (1, l_pad), 1) < l_real, 0.0, -1e30)
    s_all = s_all + key_mask                               # mask padded key column
    s_all = s_all - jnp.max(s_all, axis=-1, keepdims=True)
    p_all = jnp.exp(s_all)
    p_all = p_all * pl.reciprocal(jnp.sum(p_all, axis=-1, keepdims=True),
                                  approx=True)             # EUP reciprocal
    p_bf = p_all.astype(bf16)

    # --- P @ V per (batch, head), assembled lane-contiguously; one out-proj ---
    attn_rows = []
    for b in range(batch):
        head_outs = []
        for h in range(num_heads):
            lo = h * head_dim
            idx = b * num_heads + h
            head_outs.append(jnp.dot(
                p_bf[idx * seq:(idx + 1) * seq, :],
                v_bf[b * l_pad:(b + 1) * l_pad, lo:lo + head_dim],
                preferred_element_type=f32))               # (S, hd)
        attn_rows.append(jnp.concatenate(head_outs, axis=1))   # (S, E) lane-dense
    attn_all = jnp.concatenate(attn_rows, axis=0)          # (B*S, E)

    out_fea = jnp.dot(attn_all.astype(bf16), qkvo_vmem[3],
                      preferred_element_type=f32) + bo_ref[...]            # (B*S, E)
    # residual in f32; re-read vid from the ref (no long-lived vid value)
    out_ref[...] = vid_ref[...] + out_fea


# ----------------------------- kernel wrapper -----------------------------
def fused_forward(vid_tokens, text_embed, params):
    """One pallas_call computing cls_fea, label logits and the fused video output."""
    Bn, Sn, En = vid_tokens.shape
    bf16 = jnp.bfloat16
    attn = params["attn"]

    # token-major 2-D slabs for batch-merged matmuls
    vid2d = vid_tokens.reshape(Bn * Sn, En)
    txt_pad = jnp.zeros((Bn, L_PAD, D_TXT), jnp.float32).at[:, :L_PROMPT, :].set(text_embed)
    txt2d = txt_pad.reshape(Bn * L_PAD, D_TXT)

    # zero-pad the small cls_net weights to 128 lanes (numerics unchanged)
    w1p = jnp.zeros((D_TXT, H_PAD), jnp.float32).at[:, :H_CLS].set(params["w1"]).astype(bf16)
    b1p = jnp.zeros((1, H_PAD), jnp.float32).at[:, :H_CLS].set(params["b1"])
    w2p = jnp.zeros((H_PAD, PRED_PAD), jnp.float32).at[:H_CLS, :N_CLS].set(params["w2"]).astype(bf16)
    b2p = jnp.zeros((1, PRED_PAD), jnp.float32).at[:, :N_CLS].set(params["b2"])

    # q/k/v/o weights stacked for a single manual HBM->VMEM DMA inside the kernel
    w_qkvo = jnp.stack([attn["wq"], attn["wk"], attn["wv"], attn["wo"]], axis=0).astype(bf16)

    kernel = functools.partial(
        _fused_kernel, batch=Bn, seq=Sn, l_real=L_PROMPT, l_pad=L_PAD,
        num_heads=NUM_HEADS, head_dim=HEAD_DIM)

    vmem_spec = pl.BlockSpec(memory_space=pltpu.MemorySpace.VMEM)
    out2d, cls_fea, pred_pad = pl.pallas_call(
        kernel,
        out_shape=(
            jax.ShapeDtypeStruct((Bn * Sn, En), jnp.float32),
            jax.ShapeDtypeStruct((Bn, D_TXT), jnp.float32),
            jax.ShapeDtypeStruct((Bn, PRED_PAD), jnp.float32),
        ),
        in_specs=[
            vmem_spec,                              # vid2d
            vmem_spec,                              # txt2d
            pl.BlockSpec(memory_space=pl.ANY),      # stacked q/k/v/o weights (manual DMA)
            vmem_spec, vmem_spec,                   # w_in, b_in
            vmem_spec, vmem_spec,                   # w1p, b1p
            vmem_spec, vmem_spec,                   # w2p, b2p
            vmem_spec, vmem_spec,                   # w_tl, b_tl
            vmem_spec, vmem_spec, vmem_spec, vmem_spec,   # bq, bk, bv, bo
        ],
        scratch_shapes=[
            pltpu.VMEM((4, En, En), jnp.bfloat16),  # q/k/v/o weights in VMEM
            pltpu.SemaphoreType.DMA,                # completion semaphore
        ],
        compiler_params=pltpu.CompilerParams(vmem_limit_bytes=8 * 1024 * 1024),
    )(
        vid2d, txt2d, w_qkvo,
        params["w_in"].astype(bf16), params["b_in"],
        w1p, b1p, w2p, b2p,
        params["w_tl"].astype(bf16), params["b_tl"],
        attn["bq"], attn["bk"], attn["bv"], attn["bo"],
    )
    return out2d.reshape(Bn, Sn, En), cls_fea, pred_pad[:, :N_CLS]


# ----------------------------- parameter init -----------------------------
def init_params(key):
    ks = jax.random.split(key, 24)
    n = lambda k, shape, s=0.02: (s * jax.random.normal(k, shape)).astype(jnp.float32)
    params = {
        # input_linear: 2048 -> 768 (here C_VID -> D_TXT)
        "w_in": n(ks[0], (C_VID, D_TXT)), "b_in": n(ks[1], (1, D_TXT)),
        # cls_net: Linear(768,256) + ReLU + Linear(256,24)
        "w1": n(ks[2], (D_TXT, H_CLS)), "b1": n(ks[3], (1, H_CLS)),
        "w2": n(ks[4], (H_CLS, N_CLS)), "b2": n(ks[5], (1, N_CLS)),
        # text_linear: 768 -> 2048 (here D_TXT -> C_VID)
        "w_tl": n(ks[6], (D_TXT, C_VID)), "b_tl": n(ks[7], (1, C_VID)),
        # MultiheadAttention(embed_dim=C_VID, num_heads=8): in_proj q/k/v + out_proj
        "attn": {
            "wq": n(ks[8], (C_VID, C_VID)), "bq": n(ks[9], (1, C_VID)),
            "wk": n(ks[10], (C_VID, C_VID)), "bk": n(ks[11], (1, C_VID)),
            "wv": n(ks[12], (C_VID, C_VID)), "bv": n(ks[13], (1, C_VID)),
            "wo": n(ks[14], (C_VID, C_VID)), "bo": n(ks[15], (1, C_VID)),
        },
        # prompt-learner buffers (synthetic stand-ins for tokenizer+word-embedding
        # lookups done in the PyTorch __init__)
        "token_prefix": n(ks[16], (1, D_TXT), 1.0),
        "token_suffix": n(ks[17], (1, D_TXT), 1.0),
        "ctx": n(ks[18], (1, CTX_LEN, D_TXT), 1.0),
        "position_embeddings": n(ks[19], (1, L_PROMPT, D_TXT), 1.0),
        "token_color": {
            "red": n(ks[20], (1, D_TXT), 1.0),
            "blue": n(ks[21], (1, D_TXT), 1.0),
        },
        "token_number": {
            "23": n(ks[22], (1, D_TXT), 1.0),
            "30": n(ks[23], (1, D_TXT), 1.0),
        },
        "token_cls": n(jax.random.PRNGKey(1), (N_CLS, TEXT_EMB_LEN, D_TXT), 1.0),
    }
    return params


# ----------------------------- forward (wrapper) -----------------------------
def get_text_embeddings(params, text, label):
    """Prompt assembly (train stage): pure gather/concat glue, stays in JAX."""
    words = text.split()
    color_emb = params["token_color"][words[4]]            # (1, D)
    number_emb = params["token_number"][words[-1]]         # (1, D)
    cls_emb = params["token_cls"][label][None]             # (1, 5, D)
    prefix = params["token_prefix"]
    suffix = params["token_suffix"]
    ctx = params["ctx"]
    te = jnp.concatenate([
        prefix[None],                                      # (1, 1, D)
        ctx[:, :COLOR_IDX],                                # (1, 4, D)
        color_emb[None],                                   # (1, 1, D)
        ctx[:, COLOR_IDX:NUMBER_IDX],                      # (1, 2, D)
        number_emb[None],                                  # (1, 1, D)
        ctx[:, NUMBER_IDX:],                               # (1, 0, D) intentionally empty
        cls_emb,                                           # (1, 5, D)
        suffix[None],                                      # (1, 1, D)
    ], axis=1)                                             # (1, 15, D)
    return te + params["position_embeddings"]


def prompt_learner_fuser_forward(params, video_feature, texts, label_gt):
    Bn, Cn, Tn, Hn, Wn = video_feature.shape
    Sn = Tn * Hn * Wn
    # layout: NCDHW -> (B, S, C) channels-last tokens for the kernel
    vid = jnp.transpose(video_feature, (0, 2, 3, 4, 1)).reshape(Bn, Sn, Cn)

    # prompt assembly per sample (train stage: does not depend on cls_fea,
    # so it can run before the fused kernel)
    text_embeds = []
    for text, label in zip(texts, label_gt):
        te = get_text_embeddings(params, text, int(label))
        # TODO(synk): pretrained BLIP BERT text_encoder (12-layer, checkpoint-only)
        # has no synthetic equivalent; its last_hidden_state is passed through as
        # the prompt embeddings (attention_mask is all-ones, so no masking needed).
        text_embeds.append(te)
    text_embed = jnp.concatenate(text_embeds, axis=0)      # (B, L, D_TXT)

    # fused: avgpool + input_linear + cls_net + text_linear + cross-MHA + residual
    out_tokens, cls_fea, label_pred = fused_forward(vid, text_embed, params)
    color_pred = cls_fea    # matches reference: color_pred = number_pred = cls_fea
    number_pred = cls_fea

    # (B, S, C) -> (B, C, T, H, W)
    output = jnp.transpose(
        out_tokens.reshape(Bn, Tn, Hn, Wn, Cn), (0, 4, 1, 2, 3))
    return output, label_pred, color_pred, number_pred


# ----------------------------- main -----------------------------
if __name__ == "__main__":
    key = jax.random.PRNGKey(0)
    k_vid, k_par = jax.random.split(key)
    params = init_params(k_par)

    video_feature = jax.random.normal(
        k_vid, (B, C_VID, T, H, W), dtype=jnp.float32)
    texts = [
        "a player wearing a red jersey number 23",
        "a player wearing a blue jersey number 30",
    ]
    label_gt = [0, 5]

    output, label_pred, color_pred, number_pred = prompt_learner_fuser_forward(
        params, video_feature, texts, label_gt)

    jax.block_until_ready((output, label_pred, color_pred, number_pred))
    assert output.shape == (B, C_VID, T, H, W)
    assert label_pred.shape == (B, N_CLS)
    assert color_pred.shape == (B, D_TXT)
    assert number_pred.shape == (B, D_TXT)
    print("KERNEL_OK")
</pallas_src>

<mosaic_0001>
module attributes {stable_mosaic.version = 11 : i64} {
  func.func @_fused_kernel(%arg0: memref<64x256xf32, #tpu.memory_space<vmem>>, %arg1: memref<32x128xf32, #tpu.memory_space<vmem>>, %arg2: memref<4x256x256xbf16, #tpu.memory_space<any>>, %arg3: memref<256x128xbf16, #tpu.memory_space<vmem>>, %arg4: memref<1x128xf32, #tpu.memory_space<vmem>>, %arg5: memref<128x128xbf16, #tpu.memory_space<vmem>>, %arg6: memref<1x128xf32, #tpu.memory_space<vmem>>, %arg7: memref<128x128xbf16, #tpu.memory_space<vmem>>, %arg8: memref<1x128xf32, #tpu.memory_space<vmem>>, %arg9: memref<128x256xbf16, #tpu.memory_space<vmem>>, %arg10: memref<1x256xf32, #tpu.memory_space<vmem>>, %arg11: memref<1x256xf32, #tpu.memory_space<vmem>>, %arg12: memref<1x256xf32, #tpu.memory_space<vmem>>, %arg13: memref<1x256xf32, #tpu.memory_space<vmem>>, %arg14: memref<1x256xf32, #tpu.memory_space<vmem>>, %arg15: memref<64x256xf32, #tpu.memory_space<vmem>>, %arg16: memref<2x128xf32, #tpu.memory_space<vmem>>, %arg17: memref<2x128xf32, #tpu.memory_space<vmem>>, %arg18: memref<4x256x256xbf16, #tpu.memory_space<vmem>>, %arg19: memref<!tpu.dma_semaphore, #tpu.memory_space<semaphore_mem>>) attributes {dimension_semantics = [], scalar_prefetch = 0 : i64, scratch_operands = 2 : i64, tpu.core_type = #tpu.core_type<tc>} {
    tpu.enqueue_dma source(%arg2 : memref<4x256x256xbf16, #tpu.memory_space<any>>) target(%arg18 : memref<4x256x256xbf16, #tpu.memory_space<vmem>>) target_semaphore(%arg19 : memref<!tpu.dma_semaphore, #tpu.memory_space<semaphore_mem>>)
    %c0 = arith.constant 0 : index
    %c0_0 = arith.constant 0 : index
    %0 = vector.load %arg0[%c0, %c0_0] : memref<64x256xf32, #tpu.memory_space<vmem>>, vector<32x256xf32>
    %cst = arith.constant dense<0.000000e+00> : vector<256xf32>
    %1 = vector.multi_reduction <add>, %0, %cst [0] : vector<32x256xf32> to vector<256xf32>
    %2 = vector.shape_cast %1 : vector<256xf32> to vector<1x256xf32>
    %cst_1 = arith.constant 3.200000e+01 : f32
    %3 = vector.broadcast %cst_1 : f32 to vector<1x256xf32>
    %4 = arith.divf %2, %3 : vector<1x256xf32>
    %c32 = arith.constant 32 : index
    %c0_2 = arith.constant 0 : index
    %5 = vector.load %arg0[%c32, %c0_2] : memref<64x256xf32, #tpu.memory_space<vmem>>, vector<32x256xf32>
    %cst_3 = arith.constant dense<0.000000e+00> : vector<256xf32>
    %6 = vector.multi_reduction <add>, %5, %cst_3 [0] : vector<32x256xf32> to vector<256xf32>
    %7 = vector.shape_cast %6 : vector<256xf32> to vector<1x256xf32>
    %cst_4 = arith.constant 3.200000e+01 : f32
    %8 = vector.broadcast %cst_4 : f32 to vector<1x256xf32>
    %9 = arith.divf %7, %8 : vector<1x256xf32>
    %10 = tpu.concatenate %4, %9 in 0 : vector<1x256xf32>, vector<1x256xf32> -> vector<2x256xf32>
    %11 = arith.truncf %10 : vector<2x256xf32> to vector<2x256xbf16>
    %c0_5 = arith.constant 0 : index
    %c0_6 = arith.constant 0 : index
    %12 = vector.load %arg3[%c0_5, %c0_6] : memref<256x128xbf16, #tpu.memory_space<vmem>>, vector<256x128xbf16>
    %cst_7 = arith.constant dense<0.000000e+00> : vector<2x128xf32>
    %13 = tpu.matmul %11, %12, %cst_7 {dimension_numbers = #tpu.dot_dimension_numbers<[1], [0], [0], [1], [0, 0, 1, 1], [], []>} : vector<2x256xbf16>, vector<256x128xbf16>, vector<2x128xf32> -> vector<2x128xf32>
    %c0_8 = arith.constant 0 : index
    %c0_9 = arith.constant 0 : index
    %14 = vector.load %arg4[%c0_8, %c0_9] : memref<1x128xf32, #tpu.memory_space<vmem>>, vector<1x128xf32>
    %15 = vector.broadcast %14 : vector<1x128xf32> to vector<2x128xf32>
    %16 = arith.addf %13, %15 : vector<2x128xf32>
    %c0_10 = arith.constant 0 : index
    %c0_11 = arith.constant 0 : index
    %17 = vector.load %arg16[%c0_10, %c0_11] : memref<2x128xf32, #tpu.memory_space<vmem>>, vector<2x128xf32>
    tpu.vector_store %arg16[%c0_10, %c0_11], %16 {strides = array<i32>} : memref<2x128xf32, #tpu.memory_space<vmem>>, vector<2x128xf32>,
    %18 = arith.truncf %16 : vector<2x128xf32> to vector<2x128xbf16>
    %c0_12 = arith.constant 0 : index
    %c0_13 = arith.constant 0 : index
    %19 = vector.load %arg5[%c0_12, %c0_13] : memref<128x128xbf16, #tpu.memory_space<vmem>>, vector<128x128xbf16>
    %cst_14 = arith.constant dense<0.000000e+00> : vector<2x128xf32>
    %20 = tpu.matmul %18, %19, %cst_14 {dimension_numbers = #tpu.dot_dimension_numbers<[1], [0], [0], [1], [0, 0, 1, 1], [], []>} : vector<2x128xbf16>, vector<128x128xbf16>, vector<2x128xf32> -> vector<2x128xf32>
    %c0_15 = arith.constant 0 : index
    %c0_16 = arith.constant 0 : index
    %21 = vector.load %arg6[%c0_15, %c0_16] : memref<1x128xf32, #tpu.memory_space<vmem>>, vector<1x128xf32>
    %22 = vector.broadcast %21 : vector<1x128xf32> to vector<2x128xf32>
    %23 = arith.addf %20, %22 : vector<2x128xf32>
    %cst_17 = arith.constant 0.000000e+00 : f32
    %24 = vector.broadcast %cst_17 : f32 to vector<2x128xf32>
    %25 = arith.maximumf %23, %24 : vector<2x128xf32>
    %26 = arith.truncf %25 : vector<2x128xf32> to vector<2x128xbf16>
    %c0_18 = arith.constant 0 : index
    %c0_19 = arith.constant 0 : index
    %27 = vector.load %arg7[%c0_18, %c0_19] : memref<128x128xbf16, #tpu.memory_space<vmem>>, vector<128x128xbf16>
    %cst_20 = arith.constant dense<0.000000e+00> : vector<2x128xf32>
    %28 = tpu.matmul %26, %27, %cst_20 {dimension_numbers = #tpu.dot_dimension_numbers<[1], [0], [0], [1], [0, 0, 1, 1], [], []>} : vector<2x128xbf16>, vector<128x128xbf16>, vector<2x128xf32> -> vector<2x128xf32>
    %c0_21 = arith.constant 0 : index
    %c0_22 = arith.constant 0 : index
    %29 = vector.load %arg8[%c0_21, %c0_22] : memref<1x128xf32, #tpu.memory_space<vmem>>, vector<1x128xf32>
    %30 = vector.broadcast %29 : vector<1x128xf32> to vector<2x128xf32>
    %31 = arith.addf %28, %30 : vector<2x128xf32>
    %c0_23 = arith.constant 0 : index
    %c0_24 = arith.constant 0 : index
    %32 = vector.load %arg17[%c0_23, %c0_24] : memref<2x128xf32, #tpu.memory_space<vmem>>, vector<2x128xf32>
    tpu.vector_store %arg17[%c0_23, %c0_24], %31 {strides = array<i32>} : memref<2x128xf32, #tpu.memory_space<vmem>>, vector<2x128xf32>,
    %c0_25 = arith.constant 0 : index
    %c0_26 = arith.constant 0 : index
    %33 = vector.load %arg1[%c0_25, %c0_26] : memref<32x128xf32, #tpu.memory_space<vmem>>, vector<32x128xf32>
    %34 = arith.truncf %33 : vector<32x128xf32> to vector<32x128xbf16>
    %c0_27 = arith.constant 0 : index
    %c0_28 = arith.constant 0 : index
    %35 = vector.load %arg9[%c0_27, %c0_28] : memref<128x256xbf16, #tpu.memory_space<vmem>>, vector<128x256xbf16>
    %cst_29 = arith.constant dense<0.000000e+00> : vector<32x256xf32>
    %36 = tpu.matmul %34, %35, %cst_29 {dimension_numbers = #tpu.dot_dimension_numbers<[1], [0], [0], [1], [0, 0, 1, 1], [], []>} : vector<32x128xbf16>, vector<128x256xbf16>, vector<32x256xf32> -> vector<32x256xf32>
    %c0_30 = arith.constant 0 : index
    %c0_31 = arith.constant 0 : index
    %37 = vector.load %arg10[%c0_30, %c0_31] : memref<1x256xf32, #tpu.memory_space<vmem>>, vector<1x256xf32>
    %38 = vector.broadcast %37 : vector<1x256xf32> to vector<32x256xf32>
    %39 = arith.addf %36, %38 : vector<32x256xf32>
    %40 = arith.truncf %39 : vector<32x256xf32> to vector<32x256xbf16>
    tpu.wait_dma2 semaphore(%arg19 : memref<!tpu.dma_semaphore, #tpu.memory_space<semaphore_mem>>) src(%arg2 : memref<4x256x256xbf16, #tpu.memory_space<any>>) dst(%arg18 : memref<4x256x256xbf16, #tpu.memory_space<vmem>>)
    %c0_32 = arith.constant 0 : index
    %c0_33 = arith.constant 0 : index
    %41 = vector.load %arg0[%c0_32, %c0_33] : memref<64x256xf32, #tpu.memory_space<vmem>>, vector<64x256xf32>
    %42 = arith.truncf %41 : vector<64x256xf32> to vector<64x256xbf16>
    %c0_34 = arith.constant 0 : index
    %c0_35 = arith.constant 0 : index
    %c0_36 = arith.constant 0 : index
    %43 = vector.load %arg18[%c0_34, %c0_35, %c0_36] : memref<4x256x256xbf16, #tpu.memory_space<vmem>>, vector<1x256x256xbf16>
    %44 = vector.shape_cast %43 : vector<1x256x256xbf16> to vector<256x256xbf16>
    %cst_37 = arith.constant dense<0.000000e+00> : vector<64x256xf32>
    %45 = tpu.matmul %42, %44, %cst_37 {dimension_numbers = #tpu.dot_dimension_numbers<[1], [0], [0], [1], [0, 0, 1, 1], [], []>} : vector<64x256xbf16>, vector<256x256xbf16>, vector<64x256xf32> -> vector<64x256xf32>
    %c0_38 = arith.constant 0 : index
    %c0_39 = arith.constant 0 : index
    %46 = vector.load %arg11[%c0_38, %c0_39] : memref<1x256xf32, #tpu.memory_space<vmem>>, vector<1x256xf32>
    %47 = vector.broadcast %46 : vector<1x256xf32> to vector<64x256xf32>
    %48 = arith.addf %45, %47 : vector<64x256xf32>
    %cst_40 = arith.constant 0.176776692 : f32
    %49 = vector.broadcast %cst_40 : f32 to vector<64x256xf32>
    %50 = arith.mulf %48, %49 : vector<64x256xf32>
    %51 = arith.truncf %50 : vector<64x256xf32> to vector<64x256xbf16>
    %c1 = arith.constant 1 : index
    %c0_41 = arith.constant 0 : index
    %c0_42 = arith.constant 0 : index
    %52 = vector.load %arg18[%c1, %c0_41, %c0_42] : memref<4x256x256xbf16, #tpu.memory_space<vmem>>, vector<1x256x256xbf16>
    %53 = vector.shape_cast %52 : vector<1x256x256xbf16> to vector<256x256xbf16>
    %cst_43 = arith.constant dense<0.000000e+00> : vector<32x256xf32>
    %54 = tpu.matmul %40, %53, %cst_43 {dimension_numbers = #tpu.dot_dimension_numbers<[1], [0], [0], [1], [0, 0, 1, 1], [], []>} : vector<32x256xbf16>, vector<256x256xbf16>, vector<32x256xf32> -> vector<32x256xf32>
    %c0_44 = arith.constant 0 : index
    %c0_45 = arith.constant 0 : index
    %55 = vector.load %arg12[%c0_44, %c0_45] : memref<1x256xf32, #tpu.memory_space<vmem>>, vector<1x256xf32>
    %56 = vector.broadcast %55 : vector<1x256xf32> to vector<32x256xf32>
    %57 = arith.addf %54, %56 : vector<32x256xf32>
    %58 = arith.truncf %57 : vector<32x256xf32> to vector<32x256xbf16>
    %c2 = arith.constant 2 : index
    %c0_46 = arith.constant 0 : index
    %c0_47 = arith.constant 0 : index
    %59 = vector.load %arg18[%c2, %c0_46, %c0_47] : memref<4x256x256xbf16, #tpu.memory_space<vmem>>, vector<1x256x256xbf16>
    %60 = vector.shape_cast %59 : vector<1x256x256xbf16> to vector<256x256xbf16>
    %cst_48 = arith.constant dense<0.000000e+00> : vector<32x256xf32>
    %61 = tpu.matmul %40, %60, %cst_48 {dimension_numbers = #tpu.dot_dimension_numbers<[1], [0], [0], [1], [0, 0, 1, 1], [], []>} : vector<32x256xbf16>, vector<256x256xbf16>, vector<32x256xf32> -> vector<32x256xf32>
    %c0_49 = arith.constant 0 : index
    %c0_50 = arith.constant 0 : index
    %62 = vector.load %arg13[%c0_49, %c0_50] : memref<1x256xf32, #tpu.memory_space<vmem>>, vector<1x256xf32>
    %63 = vector.broadcast %62 : vector<1x256xf32> to vector<32x256xf32>
    %64 = arith.addf %61, %63 : vector<32x256xf32>
    %65 = arith.truncf %64 : vector<32x256xf32> to vector<32x256xbf16>
    %66 = vector.extract_strided_slice %51 {offsets = [0, 0], sizes = [32, 32], strides = [1, 1]} : vector<64x256xbf16> to vector<32x32xbf16>
    %67 = vector.extract_strided_slice %58 {offsets = [0, 0], sizes = [16, 32], strides = [1, 1]} : vector<32x256xbf16> to vector<16x32xbf16>
    %cst_51 = arith.constant dense<0.000000e+00> : vector<32x16xf32>
    %68 = tpu.matmul %66, %67, %cst_51 {dimension_numbers = #tpu.dot_dimension_numbers<[1], [1], [0], [0], [0, 0, 1, 0], [], []>} : vector<32x32xbf16>, vector<16x32xbf16>, vector<32x16xf32> -> vector<32x16xf32>
    %69 = vector.extract_strided_slice %51 {offsets = [0, 32], sizes = [32, 32], strides = [1, 1]} : vector<64x256xbf16> to vector<32x32xbf16>
    %70 = vector.extract_strided_slice %58 {offsets = [0, 32], sizes = [16, 32], strides = [1, 1]} : vector<32x256xbf16> to vector<16x32xbf16>
    %cst_52 = arith.constant dense<0.000000e+00> : vector<32x16xf32>
    %71 = tpu.matmul %69, %70, %cst_52 {dimension_numbers = #tpu.dot_dimension_numbers<[1], [1], [0], [0], [0, 0, 1, 0], [], []>} : vector<32x32xbf16>, vector<16x32xbf16>, vector<32x16xf32> -> vector<32x16xf32>
    %72 = vector.extract_strided_slice %51 {offsets = [0, 64], sizes = [32, 32], strides = [1, 1]} : vector<64x256xbf16> to vector<32x32xbf16>
    %73 = vector.extract_strided_slice %58 {offsets = [0, 64], sizes = [16, 32], strides = [1, 1]} : vector<32x256xbf16> to vector<16x32xbf16>
    %cst_53 = arith.constant dense<0.000000e+00> : vector<32x16xf32>
    %74 = tpu.matmul %72, %73, %cst_53 {dimension_numbers = #tpu.dot_dimension_numbers<[1], [1], [0], [0], [0, 0, 1, 0], [], []>} : vector<32x32xbf16>, vector<16x32xbf16>, vector<32x16xf32> -> vector<32x16xf32>
    %75 = vector.extract_strided_slice %51 {offsets = [0, 96], sizes = [32, 32], strides = [1, 1]} : vector<64x256xbf16> to vector<32x32xbf16>
    %76 = vector.extract_strided_slice %58 {offsets = [0, 96], sizes = [16, 32], strides = [1, 1]} : vector<32x256xbf16> to vector<16x32xbf16>
    %cst_54 = arith.constant dense<0.000000e+00> : vector<32x16xf32>
    %77 = tpu.matmul %75, %76, %cst_54 {dimension_numbers = #tpu.dot_dimension_numbers<[1], [1], [0], [0], [0, 0, 1, 0], [], []>} : vector<32x32xbf16>, vector<16x32xbf16>, vector<32x16xf32> -> vector<32x16xf32>
    %78 = vector.extract_strided_slice %51 {offsets = [0, 128], sizes = [32, 32], strides = [1, 1]} : vector<64x256xbf16> to vector<32x32xbf16>
    %79 = vector.extract_strided_slice %58 {offsets = [0, 128], sizes = [16, 32], strides = [1, 1]} : vector<32x256xbf16> to vector<16x32xbf16>
    %cst_55 = arith.constant dense<0.000000e+00> : vector<32x16xf32>
    %80 = tpu.matmul %78, %79, %cst_55 {dimension_numbers = #tpu.dot_dimension_numbers<[1], [1], [0], [0], [0, 0, 1, 0], [], []>} : vector<32x32xbf16>, vector<16x32xbf16>, vector<32x16xf32> -> vector<32x16xf32>
    %81 = vector.extract_strided_slice %51 {offsets = [0, 160], sizes = [32, 32], strides = [1, 1]} : vector<64x256xbf16> to vector<32x32xbf16>
    %82 = vector.extract_strided_slice %58 {offsets = [0, 160], sizes = [16, 32], strides = [1, 1]} : vector<32x256xbf16> to vector<16x32xbf16>
    %cst_56 = arith.constant dense<0.000000e+00> : vector<32x16xf32>
    %83 = tpu.matmul %81, %82, %cst_56 {dimension_numbers = #tpu.dot_dimension_numbers<[1], [1], [0], [0], [0, 0, 1, 0], [], []>} : vector<32x32xbf16>, vector<16x32xbf16>, vector<32x16xf32> -> vector<32x16xf32>
    %84 = vector.extract_strided_slice %51 {offsets = [0, 192], sizes = [32, 32], strides = [1, 1]} : vector<64x256xbf16> to vector<32x32xbf16>
    %85 = vector.extract_strided_slice %58 {offsets = [0, 192], sizes = [16, 32], strides = [1, 1]} : vector<32x256xbf16> to vector<16x32xbf16>
    %cst_57 = arith.constant dense<0.000000e+00> : vector<32x16xf32>
    %86 = tpu.matmul %84, %85, %cst_57 {dimension_numbers = #tpu.dot_dimension_numbers<[1], [1], [0], [0], [0, 0, 1, 0], [], []>} : vector<32x32xbf16>, vector<16x32xbf16>, vector<32x16xf32> -> vector<32x16xf32>
    %87 = vector.extract_strided_slice %51 {offsets = [0, 224], sizes = [32, 32], strides = [1, 1]} : vector<64x256xbf16> to vector<32x32xbf16>
    %88 = vector.extract_strided_slice %58 {offsets = [0, 224], sizes = [16, 32], strides = [1, 1]} : vector<32x256xbf16> to vector<16x32xbf16>
    %cst_58 = arith.constant dense<0.000000e+00> : vector<32x16xf32>
    %89 = tpu.matmul %87, %88, %cst_58 {dimension_numbers = #tpu.dot_dimension_numbers<[1], [1], [0], [0], [0, 0, 1, 0], [], []>} : vector<32x32xbf16>, vector<16x32xbf16>, vector<32x16xf32> -> vector<32x16xf32>
    %90 = vector.extract_strided_slice %51 {offsets = [32, 0], sizes = [32, 32], strides = [1, 1]} : vector<64x256xbf16> to vector<32x32xbf16>
    %91 = vector.extract_strided_slice %58 {offsets = [16, 0], sizes = [16, 32], strides = [1, 1]} : vector<32x256xbf16> to vector<16x32xbf16>
    %cst_59 = arith.constant dense<0.000000e+00> : vector<32x16xf32>
    %92 = tpu.matmul %90, %91, %cst_59 {dimension_numbers = #tpu.dot_dimension_numbers<[1], [1], [0], [0], [0, 0, 1, 0], [], []>} : vector<32x32xbf16>, vector<16x32xbf16>, vector<32x16xf32> -> vector<32x16xf32>
    %93 = vector.extract_strided_slice %51 {offsets = [32, 32], sizes = [32, 32], strides = [1, 1]} : vector<64x256xbf16> to vector<32x32xbf16>
    %94 = vector.extract_strided_slice %58 {offsets = [16, 32], sizes = [16, 32], strides = [1, 1]} : vector<32x256xbf16> to vector<16x32xbf16>
    %cst_60 = arith.constant dense<0.000000e+00> : vector<32x16xf32>
    %95 = tpu.matmul %93, %94, %cst_60 {dimension_numbers = #tpu.dot_dimension_numbers<[1], [1], [0], [0], [0, 0, 1, 0], [], []>} : vector<32x32xbf16>, vector<16x32xbf16>, vector<32x16xf32> -> vector<32x16xf32>
    %96 = vector.extract_strided_slice %51 {offsets = [32, 64], sizes = [32, 32], strides = [1, 1]} : vector<64x256xbf16> to vector<32x32xbf16>
    %97 = vector.extract_strided_slice %58 {offsets = [16, 64], sizes = [16, 32], strides = [1, 1]} : vector<32x256xbf16> to vector<16x32xbf16>
    %cst_61 = arith.constant dense<0.000000e+00> : vector<32x16xf32>
    %98 = tpu.matmul %96, %97, %cst_61 {dimension_numbers = #tpu.dot_dimension_numbers<[1], [1], [0], [0], [0, 0, 1, 0], [], []>} : vector<32x32xbf16>, vector<16x32xbf16>, vector<32x16xf32> -> vector<32x16xf32>
    %99 = vector.extract_strided_slice %51 {offsets = [32, 96], sizes = [32, 32], strides = [1, 1]} : vector<64x256xbf16> to vector<32x32xbf16>
    %100 = vector.extract_strided_slice %58 {offsets = [16, 96], sizes = [16, 32], strides = [1, 1]} : vector<32x256xbf16> to vector<16x32xbf16>
    %cst_62 = arith.constant dense<0.000000e+00> : vector<32x16xf32>
    %101 = tpu.matmul %99, %100, %cst_62 {dimension_numbers = #tpu.dot_dimension_numbers<[1], [1], [0], [0], [0, 0, 1, 0], [], []>} : vector<32x32xbf16>, vector<16x32xbf16>, vector<32x16xf32> -> vector<32x16xf32>
    %102 = vector.extract_strided_slice %51 {offsets = [32, 128], sizes = [32, 32], strides = [1, 1]} : vector<64x256xbf16> to vector<32x32xbf16>
    %103 = vector.extract_strided_slice %58 {offsets = [16, 128], sizes = [16, 32], strides = [1, 1]} : vector<32x256xbf16> to vector<16x32xbf16>
    %cst_63 = arith.constant dense<0.000000e+00> : vector<32x16xf32>
    %104 = tpu.matmul %102, %103, %cst_63 {dimension_numbers = #tpu.dot_dimension_numbers<[1], [1], [0], [0], [0, 0, 1, 0], [], []>} : vector<32x32xbf16>, vector<16x32xbf16>, vector<32x16xf32> -> vector<32x16xf32>
    %105 = vector.extract_strided_slice %51 {offsets = [32, 160], sizes = [32, 32], strides = [1, 1]} : vector<64x256xbf16> to vector<32x32xbf16>
    %106 = vector.extract_strided_slice %58 {offsets = [16, 160], sizes = [16, 32], strides = [1, 1]} : vector<32x256xbf16> to vector<16x32xbf16>
    %cst_64 = arith.constant dense<0.000000e+00> : vector<32x16xf32>
    %107 = tpu.matmul %105, %106, %cst_64 {dimension_numbers = #tpu.dot_dimension_numbers<[1], [1], [0], [0], [0, 0, 1, 0], [], []>} : vector<32x32xbf16>, vector<16x32xbf16>, vector<32x16xf32> -> vector<32x16xf32>
    %108 = vector.extract_strided_slice %51 {offsets = [32, 192], sizes = [32, 32], strides = [1, 1]} : vector<64x256xbf16> to vector<32x32xbf16>
    %109 = vector.extract_strided_slice %58 {offsets = [16, 192], sizes = [16, 32], strides = [1, 1]} : vector<32x256xbf16> to vector<16x32xbf16>
    %cst_65 = arith.constant dense<0.000000e+00> : vector<32x16xf32>
    %110 = tpu.matmul %108, %109, %cst_65 {dimension_numbers = #tpu.dot_dimension_numbers<[1], [1], [0], [0], [0, 0, 1, 0], [], []>} : vector<32x32xbf16>, vector<16x32xbf16>, vector<32x16xf32> -> vector<32x16xf32>
    %111 = vector.extract_strided_slice %51 {offsets = [32, 224], sizes = [32, 32], strides = [1, 1]} : vector<64x256xbf16> to vector<32x32xbf16>
    %112 = vector.extract_strided_slice %58 {offsets = [16, 224], sizes = [16, 32], strides = [1, 1]} : vector<32x256xbf16> to vector<16x32xbf16>
    %cst_66 = arith.constant dense<0.000000e+00> : vector<32x16xf32>
    %113 = tpu.matmul %111, %112, %cst_66 {dimension_numbers = #tpu.dot_dimension_numbers<[1], [1], [0], [0], [0, 0, 1, 0], [], []>} : vector<32x32xbf16>, vector<16x32xbf16>, vector<32x16xf32> -> vector<32x16xf32>
    %114 = tpu.concatenate %68, %71, %74, %77, %80, %83, %86, %89, %92, %95, %98, %101, %104, %107, %110, %113 in 0 : vector<32x16xf32>, vector<32x16xf32>, vector<32x16xf32>, vector<32x16xf32>, vector<32x16xf32>, vector<32x16xf32>, vector<32x16xf32>, vector<32x16xf32>, vector<32x16xf32>, vector<32x16xf32>, vector<32x16xf32>, vector<32x16xf32>, vector<32x16xf32>, vector<32x16xf32>, vector<32x16xf32>, vector<32x16xf32> -> vector<512x16xf32>
    %115 = tpu.iota {dimensions = array<i32: 1>} : vector<1x16xi32>
    %c15_i32 = arith.constant 15 : i32
    %116 = vector.broadcast %c15_i32 : i32 to vector<1x16xi32>
    %117 = arith.cmpi slt, %115, %116 : vector<1x16xi32>
    %cst_67 = arith.constant 0.000000e+00 : f32
    %cst_68 = arith.constant -1.000000e+30 : f32
    %118 = vector.broadcast %cst_67 : f32 to vector<1x16xf32>
    %119 = vector.broadcast %cst_68 : f32 to vector<1x16xf32>
    %120 = arith.select %117, %118, %119 : vector<1x16xi1>, vector<1x16xf32>
    %121 = vector.broadcast %120 : vector<1x16xf32> to vector<512x16xf32>
    %122 = arith.addf %114, %121 : vector<512x16xf32>
    %cst_69 = arith.constant dense<0xFF800000> : vector<512xf32>
    %123 = vector.multi_reduction <maximumf>, %122, %cst_69 [1] : vector<512x16xf32> to vector<512xf32>
    %124 = vector.shape_cast %123 : vector<512xf32> to vector<512x1xf32>
    %125 = vector.broadcast %124 : vector<512x1xf32> to vector<512x16xf32>
    %126 = arith.subf %122, %125 : vector<512x16xf32>
    %127 = math.exp %126 : vector<512x16xf32>
    %cst_70 = arith.constant dense<0.000000e+00> : vector<512xf32>
    %128 = vector.multi_reduction <add>, %127, %cst_70 [1] : vector<512x16xf32> to vector<512xf32>
    %129 = vector.shape_cast %128 : vector<512xf32> to vector<512x1xf32>
    %130 = tpu.reciprocal %129 {approx = true} : vector<512x1xf32> -> vector<512x1xf32>
    %131 = vector.broadcast %130 : vector<512x1xf32> to vector<512x16xf32>
    %132 = arith.mulf %127, %131 : vector<512x16xf32>
    %133 = arith.truncf %132 : vector<512x16xf32> to vector<512x16xbf16>
    %134 = vector.extract_strided_slice %133 {offsets = [0, 0], sizes = [32, 16], strides = [1, 1]} : vector<512x16xbf16> to vector<32x16xbf16>
    %135 = vector.extract_strided_slice %65 {offsets = [0, 0], sizes = [16, 32], strides = [1, 1]} : vector<32x256xbf16> to vector<16x32xbf16>
    %cst_71 = arith.constant dense<0.000000e+00> : vector<32x32xf32>
    %136 = tpu.matmul %134, %135, %cst_71 {dimension_numbers = #tpu.dot_dimension_numbers<[1], [0], [0], [1], [0, 0, 1, 1], [], []>} : vector<32x16xbf16>, vector<16x32xbf16>, vector<32x32xf32> -> vector<32x32xf32>
    %137 = vector.extract_strided_slice %133 {offsets = [32, 0], sizes = [32, 16], strides = [1, 1]} : vector<512x16xbf16> to vector<32x16xbf16>
    %138 = vector.extract_strided_slice %65 {offsets = [0, 32], sizes = [16, 32], strides = [1, 1]} : vector<32x256xbf16> to vector<16x32xbf16>
    %cst_72 = arith.constant dense<0.000000e+00> : vector<32x32xf32>
    %139 = tpu.matmul %137, %138, %cst_72 {dimension_numbers = #tpu.dot_dimension_numbers<[1], [0], [0], [1], [0, 0, 1, 1], [], []>} : vector<32x16xbf16>, vector<16x32xbf16>, vector<32x32xf32> -> vector<32x32xf32>
    %140 = vector.extract_strided_slice %133 {offsets = [64, 0], sizes = [32, 16], strides = [1, 1]} : vector<512x16xbf16> to vector<32x16xbf16>
    %141 = vector.extract_strided_slice %65 {offsets = [0, 64], sizes = [16, 32], strides = [1, 1]} : vector<32x256xbf16> to vector<16x32xbf16>
    %cst_73 = arith.constant dense<0.000000e+00> : vector<32x32xf32>
    %142 = tpu.matmul %140, %141, %cst_73 {dimension_numbers = #tpu.dot_dimension_numbers<[1], [0], [0], [1], [0, 0, 1, 1], [], []>} : vector<32x16xbf16>, vector<16x32xbf16>, vector<32x32xf32> -> vector<32x32xf32>
    %143 = vector.extract_strided_slice %133 {offsets = [96, 0], sizes = [32, 16], strides = [1, 1]} : vector<512x16xbf16> to vector<32x16xbf16>
    %144 = vector.extract_strided_slice %65 {offsets = [0, 96], sizes = [16, 32], strides = [1, 1]} : vector<32x256xbf16> to vector<16x32xbf16>
    %cst_74 = arith.constant dense<0.000000e+00> : vector<32x32xf32>
    %145 = tpu.matmul %143, %144, %cst_74 {dimension_numbers = #tpu.dot_dimension_numbers<[1], [0], [0], [1], [0, 0, 1, 1], [], []>} : vector<32x16xbf16>, vector<16x32xbf16>, vector<32x32xf32> -> vector<32x32xf32>
    %146 = vector.extract_strided_slice %133 {offsets = [128, 0], sizes = [32, 16], strides = [1, 1]} : vector<512x16xbf16> to vector<32x16xbf16>
    %147 = vector.extract_strided_slice %65 {offsets = [0, 128], sizes = [16, 32], strides = [1, 1]} : vector<32x256xbf16> to vector<16x32xbf16>
    %cst_75 = arith.constant dense<0.000000e+00> : vector<32x32xf32>
    %148 = tpu.matmul %146, %147, %cst_75 {dimension_numbers = #tpu.dot_dimension_numbers<[1], [0], [0], [1], [0, 0, 1, 1], [], []>} : vector<32x16xbf16>, vector<16x32xbf16>, vector<32x32xf32> -> vector<32x32xf32>
    %149 = vector.extract_strided_slice %133 {offsets = [160, 0], sizes = [32, 16], strides = [1, 1]} : vector<512x16xbf16> to vector<32x16xbf16>
    %150 = vector.extract_strided_slice %65 {offsets = [0, 160], sizes = [16, 32], strides = [1, 1]} : vector<32x256xbf16> to vector<16x32xbf16>
    %cst_76 = arith.constant dense<0.000000e+00> : vector<32x32xf32>
    %151 = tpu.matmul %149, %150, %cst_76 {dimension_numbers = #tpu.dot_dimension_numbers<[1], [0], [0], [1], [0, 0, 1, 1], [], []>} : vector<32x16xbf16>, vector<16x32xbf16>, vector<32x32xf32> -> vector<32x32xf32>
    %152 = vector.extract_strided_slice %133 {offsets = [192, 0], sizes = [32, 16], strides = [1, 1]} : vector<512x16xbf16> to vector<32x16xbf16>
    %153 = vector.extract_strided_slice %65 {offsets = [0, 192], sizes = [16, 32], strides = [1, 1]} : vector<32x256xbf16> to vector<16x32xbf16>
    %cst_77 = arith.constant dense<0.000000e+00> : vector<32x32xf32>
    %154 = tpu.matmul %152, %153, %cst_77 {dimension_numbers = #tpu.dot_dimension_numbers<[1], [0], [0], [1], [0, 0, 1, 1], [], []>} : vector<32x16xbf16>, vector<16x32xbf16>, vector<32x32xf32> -> vector<32x32xf32>
    %155 = vector.extract_strided_slice %133 {offsets = [224, 0], sizes = [32, 16], strides = [1, 1]} : vector<512x16xbf16> to vector<32x16xbf16>
    %156 = vector.extract_strided_slice %65 {offsets = [0, 224], sizes = [16, 32], strides = [1, 1]} : vector<32x256xbf16> to vector<16x32xbf16>
    %cst_78 = arith.constant dense<0.000000e+00> : vector<32x32xf32>
    %157 = tpu.matmul %155, %156, %cst_78 {dimension_numbers = #tpu.dot_dimension_numbers<[1], [0], [0], [1], [0, 0, 1, 1], [], []>} : vector<32x16xbf16>, vector<16x32xbf16>, vector<32x32xf32> -> vector<32x32xf32>
    %158 = tpu.concatenate %136, %139, %142, %145, %148, %151, %154, %157 in 1 : vector<32x32xf32>, vector<32x32xf32>, vector<32x32xf32>, vector<32x32xf32>, vector<32x32xf32>, vector<32x32xf32>, vector<32x32xf32>, vector<32x32xf32> -> vector<32x256xf32>
    %159 = vector.extract_strided_slice %133 {offsets = [256, 0], sizes = [32, 16], strides = [1, 1]} : vector<512x16xbf16> to vector<32x16xbf16>
    %160 = vector.extract_strided_slice %65 {offsets = [16, 0], sizes = [16, 32], strides = [1, 1]} : vector<32x256xbf16> to vector<16x32xbf16>
    %cst_79 = arith.constant dense<0.000000e+00> : vector<32x32xf32>
    %161 = tpu.matmul %159, %160, %cst_79 {dimension_numbers = #tpu.dot_dimension_numbers<[1], [0], [0], [1], [0, 0, 1, 1], [], []>} : vector<32x16xbf16>, vector<16x32xbf16>, vector<32x32xf32> -> vector<32x32xf32>
    %162 = vector.extract_strided_slice %133 {offsets = [288, 0], sizes = [32, 16], strides = [1, 1]} : vector<512x16xbf16> to vector<32x16xbf16>
    %163 = vector.extract_strided_slice %65 {offsets = [16, 32], sizes = [16, 32], strides = [1, 1]} : vector<32x256xbf16> to vector<16x32xbf16>
    %cst_80 = arith.constant dense<0.000000e+00> : vector<32x32xf32>
    %164 = tpu.matmul %162, %163, %cst_80 {dimension_numbers = #tpu.dot_dimension_numbers<[1], [0], [0], [1], [0, 0, 1, 1], [], []>} : vector<32x16xbf16>, vector<16x32xbf16>, vector<32x32xf32> -> vector<32x32xf32>
    %165 = vector.extract_strided_slice %133 {offsets = [320, 0], sizes = [32, 16], strides = [1, 1]} : vector<512x16xbf16> to vector<32x16xbf16>
    %166 = vector.extract_strided_slice %65 {offsets = [16, 64], sizes = [16, 32], strides = [1, 1]} : vector<32x256xbf16> to vector<16x32xbf16>
    %cst_81 = arith.constant dense<0.000000e+00> : vector<32x32xf32>
    %167 = tpu.matmul %165, %166, %cst_81 {dimension_numbers = #tpu.dot_dimension_numbers<[1], [0], [0], [1], [0, 0, 1, 1], [], []>} : vector<32x16xbf16>, vector<16x32xbf16>, vector<32x32xf32> -> vector<32x32xf32>
    %168 = vector.extract_strided_slice %133 {offsets = [352, 0], sizes = [32, 16], strides = [1, 1]} : vector<512x16xbf16> to vector<32x16xbf16>
    %169 = vector.extract_strided_slice %65 {offsets = [16, 96], sizes = [16, 32], strides = [1, 1]} : vector<32x256xbf16> to vector<16x32xbf16>
    %cst_82 = arith.constant dense<0.000000e+00> : vector<32x32xf32>
    %170 = tpu.matmul %168, %169, %cst_82 {dimension_numbers = #tpu.dot_dimension_numbers<[1], [0], [0], [1], [0, 0, 1, 1], [], []>} : vector<32x16xbf16>, vector<16x32xbf16>, vector<32x32xf32> -> vector<32x32xf32>
    %171 = vector.extract_strided_slice %133 {offsets = [384, 0], sizes = [32, 16], strides = [1, 1]} : vector<512x16xbf16> to vector<32x16xbf16>
    %172 = vector.extract_strided_slice %65 {offsets = [16, 128], sizes = [16, 32], strides = [1, 1]} : vector<32x256xbf16> to vector<16x32xbf16>
    %cst_83 = arith.constant dense<0.000000e+00> : vector<32x32xf32>
    %173 = tpu.matmul %171, %172, %cst_83 {dimension_numbers = #tpu.dot_dimension_numbers<[1], [0], [0], [1], [0, 0, 1, 1], [], []>} : vector<32x16xbf16>, vector<16x32xbf16>, vector<32x32xf32> -> vector<32x32xf32>
    %174 = vector.extract_strided_slice %133 {offsets = [416, 0], sizes = [32, 16], strides = [1, 1]} : vector<512x16xbf16> to vector<32x16xbf16>
    %175 = vector.extract_strided_slice %65 {offsets = [16, 160], sizes = [16, 32], strides = [1, 1]} : vector<32x256xbf16> to vector<16x32xbf16>
    %cst_84 = arith.constant dense<0.000000e+00> : vector<32x32xf32>
    %176 = tpu.matmul %174, %175, %cst_84 {dimension_numbers = #tpu.dot_dimension_numbers<[1], [0], [0], [1], [0, 0, 1, 1], [], []>} : vector<32x16xbf16>, vector<16x32xbf16>, vector<32x32xf32> -> vector<32x32xf32>
    %177 = vector.extract_strided_slice %133 {offsets = [448, 0], sizes = [32, 16], strides = [1, 1]} : vector<512x16xbf16> to vector<32x16xbf16>
    %178 = vector.extract_strided_slice %65 {offsets = [16, 192], sizes = [16, 32], strides = [1, 1]} : vector<32x256xbf16> to vector<16x32xbf16>
    %cst_85 = arith.constant dense<0.000000e+00> : vector<32x32xf32>
    %179 = tpu.matmul %177, %178, %cst_85 {dimension_numbers = #tpu.dot_dimension_numbers<[1], [0], [0], [1], [0, 0, 1, 1], [], []>} : vector<32x16xbf16>, vector<16x32xbf16>, vector<32x32xf32> -> vector<32x32xf32>
    %180 = vector.extract_strided_slice %133 {offsets = [480, 0], sizes = [32, 16], strides = [1, 1]} : vector<512x16xbf16> to vector<32x16xbf16>
    %181 = vector.extract_strided_slice %65 {offsets = [16, 224], sizes = [16, 32], strides = [1, 1]} : vector<32x256xbf16> to vector<16x32xbf16>
    %cst_86 = arith.constant dense<0.000000e+00> : vector<32x32xf32>
    %182 = tpu.matmul %180, %181, %cst_86 {dimension_numbers = #tpu.dot_dimension_numbers<[1], [0], [0], [1], [0, 0, 1, 1], [], []>} : vector<32x16xbf16>, vector<16x32xbf16>, vector<32x32xf32> -> vector<32x32xf32>
    %183 = tpu.concatenate %161, %164, %167, %170, %173, %176, %179, %182 in 1 : vector<32x32xf32>, vector<32x32xf32>, vector<32x32xf32>, vector<32x32xf32>, vector<32x32xf32>, vector<32x32xf32>, vector<32x32xf32>, vector<32x32xf32> -> vector<32x256xf32>
    %184 = tpu.concatenate %158, %183 in 0 : vector<32x256xf32>, vector<32x256xf32> -> vector<64x256xf32>
    %185 = arith.truncf %184 : vector<64x256xf32> to vector<64x256xbf16>
    %c3 = arith.constant 3 : index
    %c0_87 = arith.constant 0 : index
    %c0_88 = arith.constant 0 : index
    %186 = vector.load %arg18[%c3, %c0_87, %c0_88] : memref<4x256x256xbf16, #tpu.memory_space<vmem>>, vector<1x256x256xbf16>
    %187 = vector.shape_cast %186 : vector<1x256x256xbf16> to vector<256x256xbf16>
    %cst_89 = arith.constant dense<0.000000e+00> : vector<64x256xf32>
    %188 = tpu.matmul %185, %187, %cst_89 {dimension_numbers = #tpu.dot_dimension_numbers<[1], [0], [0], [1], [0, 0, 1, 1], [], []>} : vector<64x256xbf16>, vector<256x256xbf16>, vector<64x256xf32> -> vector<64x256xf32>
    %c0_90 = arith.constant 0 : index
    %c0_91 = arith.constant 0 : index
    %189 = vector.load %arg14[%c0_90, %c0_91] : memref<1x256xf32, #tpu.memory_space<vmem>>, vector<1x256xf32>
    %190 = vector.broadcast %189 : vector<1x256xf32> to vector<64x256xf32>
    %191 = arith.addf %188, %190 : vector<64x256xf32>
    %c0_92 = arith.constant 0 : index
    %c0_93 = arith.constant 0 : index
    %192 = vector.load %arg0[%c0_92, %c0_93] : memref<64x256xf32, #tpu.memory_space<vmem>>, vector<64x256xf32>
    %193 = arith.addf %192, %191 : vector<64x256xf32>
    %c0_94 = arith.constant 0 : index
    %c0_95 = arith.constant 0 : index
    %194 = vector.load %arg15[%c0_94, %c0_95] : memref<64x256xf32, #tpu.memory_space<vmem>>, vector<64x256xf32>
    tpu.vector_store %arg15[%c0_94, %c0_95], %193 {strides = array<i32>} : memref<64x256xf32, #tpu.memory_space<vmem>>, vector<64x256xf32>,
    return
  }
}

</mosaic_0001>

<bundles_post_ra>
// kernel: tpu_custom_call.1
= control target key start
LH: loop header
LB: loop body
LE: loop exit
PB: predicated region body
PF: predicated region fallthrough
CT: control target
= control target key end

     0   :  { %s7186_s0 = inlined_call_operand.hbm [shape: f32[64,256], index: 0, kind: input, shape index: {}]   ;;  %s7187_s1 = inlined_call_operand.hbm [shape: f32[32,128], index: 1, kind: input, shape index: {}]   ;;  %s7188_s2 = inlined_call_operand.hbm [shape: bf16[4,256,256], index: 2, kind: input, shape index: {}]   ;;  %s7189_s3 = inlined_call_operand.hbm [shape: bf16[256,128], index: 3, kind: input, shape index: {}]   ;;  %s7190_s4 = inlined_call_operand.vmem [shape: f32[1,128], index: 4, kind: input, shape index: {}]   ;;  %s7191_s5 = inlined_call_operand.hbm [shape: bf16[128,128], index: 5, kind: input, shape index: {}]   ;;  %s7192_s6 = inlined_call_operand.vmem [shape: f32[1,128], index: 6, kind: input, shape index: {}]   ;;  %s7193_s7 = inlined_call_operand.hbm [shape: bf16[128,128], index: 7, kind: input, shape index: {}]   ;;  %s7194_s8 = inlined_call_operand.vmem [shape: f32[1,128], index: 8, kind: input, shape index: {}]   ;;  %s7195_s9 = inlined_call_operand.hbm [shape: bf16[128,256], index: 9, kind: input, shape index: {}]   ;;  %s7196_s10 = inlined_call_operand.vmem [shape: f32[1,256], index: 10, kind: input, shape index: {}]   ;;  %s7197_s11 = inlined_call_operand.vmem [shape: f32[1,256], index: 11, kind: input, shape index: {}]   ;;  %s7198_s12 = inlined_call_operand.vmem [shape: f32[1,256], index: 12, kind: input, shape index: {}]   ;;  %s7199_s13 = inlined_call_operand.vmem [shape: f32[1,256], index: 13, kind: input, shape index: {}]   ;;  %s7200_s14 = inlined_call_operand.vmem [shape: f32[1,256], index: 14, kind: input, shape index: {}]   ;;  %s7201_s15 = inlined_call_operand.hbm [shape: f32[64,256], index: 15, kind: output, shape index: {0}]   ;;  %s7202_s16 = inlined_call_operand.hbm [shape: f32[2,128], index: 16, kind: output, shape index: {1}]   ;;  %s7203_s17 = inlined_call_operand.hbm [shape: f32[2,128], index: 17, kind: output, shape index: {2}]  }
   0x1   :  { %7254 = sst [smem:[#allocation58_spill]] %s7186_s0 }
   0x2   :  { %7255 = sst [smem:[#allocation59_spill]] %s7187_s1 }
   0x3   :  { %7256 = sst [smem:[#allocation60_spill]] %s7201_s15 }
   0x4   :  { %7257 = sst [smem:[#allocation61_spill]] %s7203_s17 }
   0x5   :  { %23 = vsyncpa [#allocation5], 0 }
   0x6   :  { %24 = vsyncpa [#allocation8], 0 }
   0x7   :  { %25 = vsyncpa [#allocation11], 0 }
   0x8   :  { %26 = vsyncpa [#allocation14], 0 }
   0x9   :  { %27 = vsyncpa [#allocation6], 0 }
   0xa   :  { %28 = vsyncpa [#allocation17], 0  ;;  %s5558_s24 = smov [#allocation7]   ;;  %s7258_s28 = sld [smem:[#allocation59_spill]] }
   0xb   :  { %s46_s25 = sshll.u32 %s5558_s24, 4  ;;  %s47_s25 = int_to_ptr.vmem [resolvable:$true] %s46_s25 }
  0x10   :  { %s5346_s29 = scalar_lea.hbm %s7258_s28, 512 }
  0x11   :  { %p5347_p0 = scmp.ne.s32.totalorder %s7258_s28, %s5346_s29  ;;  %p5350_p1 = scmp.lt.u32.totalorder %s5346_s29, %s7258_s28 }
  0x13   :  { %p5352_p2 = pnand %p5350_p1, %p5347_p0 }
  0x15   :  { %5355 = shalt.err (!%p5352_p2)
}
  0x16   :  { %s5356_s1 = scalar_lea.vmem %s47_s25, 512  ;;  %p5361_p4 = scmp.lt.s32.totalorder %s47_s25, %s47_s25 }
  0x17   :  { %p5357_p3 = scmp.ne.s32.totalorder %s47_s25, %s5356_s1  ;;  %p5362_p5 = scmp.lt.s32.totalorder %s5356_s1, %s5356_s1 }
  0x19   :  { %p5363_p6 = por %p5362_p5, %p5361_p4 }
  0x1b   :  { %p5364_p7 = pnand %p5363_p6, %p5357_p3 }
  0x1d   :  { %5367 = shalt.err (!%p5364_p7)
}
  0x1e   :  { %s7208_s20 = smov 128   ;;  %s7210_s21 = smov 8  }
  0x1f   :  { %52 = dma.hbm_to_vmem [thread:$0]  %s7258_s28, 512, %s47_s25, [#allocation8], %s7208_s20, %s7208_s20, %s7210_s21  }
  0x20   :  { %s5561_s24 = smov [#allocation10]   ;;  %s5562_s27 = smov [#allocation4]  }
  0x21   :  { %s72_s26 = sshll.u32 %s5561_s24, 4  ;;  %s34_s29 = sshll.u32 %s5562_s27, 4  ;;  %s73_s26 = int_to_ptr.vmem [resolvable:$true] %s72_s26  ;;  %s35_s29 = int_to_ptr.vmem [resolvable:$true] %s34_s29 }
  0x22   :  { %s5368_s18 = scalar_lea.hbm %s7191_s5, 1024 }
  0x23   :  { %p5369_p8 = scmp.ne.s32.totalorder %s7191_s5, %s5368_s18  ;;  %p5372_p9 = scmp.lt.u32.totalorder %s5368_s18, %s7191_s5 }
  0x25   :  { %p5374_p10 = pnand %p5372_p9, %p5369_p8 }
  0x27   :  { %5377 = shalt.err (!%p5374_p10)
}
  0x28   :  { %s5378_s25 = scalar_lea.vmem %s73_s26, 1024  ;;  %p5383_p12 = scmp.lt.s32.totalorder %s73_s26, %s73_s26 }
  0x29   :  { %p5379_p11 = scmp.ne.s32.totalorder %s73_s26, %s5378_s25  ;;  %p5384_p13 = scmp.lt.s32.totalorder %s5378_s25, %s5378_s25 }
  0x2b   :  { %p5385_p0 = por %p5384_p13, %p5383_p12 }
  0x2d   :  { %p5386_p1 = pnand %p5385_p0, %p5379_p11 }
  0x2f   :  { %5389 = shalt.err (!%p5386_p1)
}
  0x30   :  { %s7211_s28 = smov 64   ;;  %s5564_s22 = smov 4  }
  0x31   :  { %78 = dma.hbm_to_vmem [thread:$0]  %s7191_s5, 1024, %s73_s26, [#allocation11], %s7211_s28, %s7211_s28, %s5564_s22  }
  0x32   :  { %s7259_s27 = sld [smem:[#allocation58_spill]] }
  0x38   :  { %s5390_s0 = scalar_lea.hbm %s7259_s27, 2048 }
  0x39   :  { %p5391_p2 = scmp.ne.s32.totalorder %s7259_s27, %s5390_s0  ;;  %p5394_p3 = scmp.lt.u32.totalorder %s5390_s0, %s7259_s27 }
  0x3b   :  { %p5396_p4 = pnand %p5394_p3, %p5391_p2 }
  0x3d   :  { %5399 = shalt.err (!%p5396_p4)
}
  0x3e   :  { %s5400_s25 = scalar_lea.vmem %s35_s29, 2048  ;;  %p5405_p6 = scmp.lt.s32.totalorder %s35_s29, %s35_s29 }
  0x3f   :  { %p5401_p5 = scmp.ne.s32.totalorder %s35_s29, %s5400_s25  ;;  %p5406_p7 = scmp.lt.s32.totalorder %s5400_s25, %s5400_s25 }
  0x41   :  { %p5407_p8 = por %p5406_p7, %p5405_p6 }
  0x43   :  { %p5408_p9 = pnand %p5407_p8, %p5401_p5 }
  0x45   :  { %5411 = shalt.err (!%p5408_p9)
}
  0x46   :  { %s5565_s5 = smov 256   ;;  %s5566_s26 = smov 16  }
  0x47   :  { %40 = dma.hbm_to_vmem [thread:$0]  %s7259_s27, 2048, %s35_s29, [#allocation5], %s5565_s5, %s5565_s5, %s5566_s26  }
  0x48   :  { %s5567_s15 = smov [#allocation9]   ;;  %s5568_s0 = smov [#allocation12]  }
  0x49   :  { %s58_s17 = sshll.u32 %s5567_s15, 4  ;;  %s86_s30 = sshll.u32 %s5568_s0, 4  ;;  %s59_s17 = int_to_ptr.vmem [resolvable:$true] %s58_s17  ;;  %s87_s30 = int_to_ptr.vmem [resolvable:$true] %s86_s30 }
  0x4a   :  { %s5412_s1 = scalar_lea.hbm %s7189_s3, 2048 }
  0x4b   :  { %p5413_p10 = scmp.ne.s32.totalorder %s7189_s3, %s5412_s1  ;;  %p5416_p11 = scmp.lt.u32.totalorder %s5412_s1, %s7189_s3 }
  0x4d   :  { %p5418_p12 = pnand %p5416_p11, %p5413_p10 }
  0x4f   :  { %5421 = shalt.err (!%p5418_p12)
}
  0x50   :  { %s5422_s29 = scalar_lea.vmem %s59_s17, 2048  ;;  %p5427_p0 = scmp.lt.s32.totalorder %s59_s17, %s59_s17 }
  0x51   :  { %p5423_p13 = scmp.ne.s32.totalorder %s59_s17, %s5422_s29  ;;  %p5428_p1 = scmp.lt.s32.totalorder %s5422_s29, %s5422_s29 }
  0x53   :  { %p5429_p2 = por %p5428_p1, %p5427_p0 }
  0x55   :  { %p5430_p3 = pnand %p5429_p2, %p5423_p13 }
  0x57   :  { %5433 = shalt.err (!%p5430_p3)
}
  0x58   :  { %s7260_s27 = smov 64   ;;  %s5434_s28 = scalar_lea.hbm %s7193_s7, 1024 }
  0x59   :  { %64 = dma.hbm_to_vmem [thread:$0]  %s7189_s3, 2048, %s59_s17, [#allocation8], %s7260_s27, %s7260_s27, %s5564_s22  }
  0x5a   :  { %p5435_p4 = scmp.ne.s32.totalorder %s7193_s7, %s5434_s28  ;;  %p5438_p5 = scmp.lt.u32.totalorder %s5434_s28, %s7193_s7 }
  0x5c   :  { %p5440_p6 = pnand %p5438_p5, %p5435_p4 }
  0x5e   :  { %5443 = shalt.err (!%p5440_p6)
}
  0x5f   :  { %s5444_s1 = scalar_lea.vmem %s87_s30, 1024  ;;  %p5449_p8 = scmp.lt.s32.totalorder %s87_s30, %s87_s30 }
  0x60   :  { %p5445_p7 = scmp.ne.s32.totalorder %s87_s30, %s5444_s1  ;;  %p5450_p9 = scmp.lt.s32.totalorder %s5444_s1, %s5444_s1 }
  0x62   :  { %p5451_p10 = por %p5450_p9, %p5449_p8 }
  0x64   :  { %p5452_p11 = pnand %p5451_p10, %p5445_p7 }
  0x66   :  { %5455 = shalt.err (!%p5452_p11)
}
  0x67   :  { %92 = dma.hbm_to_vmem [thread:$0]  %s7193_s7, 1024, %s87_s30, [#allocation11], %s7260_s27, %s7260_s27, %s5564_s22  }
  0x68   :  { %s5569_s25 = smov [#allocation13]   ;;  %s5456_s20 = scalar_lea.hbm %s7195_s9, 2048 }
  0x69   :  { %s100_s29 = sshll.u32 %s5569_s25, 4  ;;  %p5457_p12 = scmp.ne.s32.totalorder %s7195_s9, %s5456_s20  ;;  %s101_s29 = int_to_ptr.vmem [resolvable:$true] %s100_s29 }
  0x6a   :  { %p5460_p13 = scmp.lt.u32.totalorder %s5456_s20, %s7195_s9 }
  0x6c   :  { %p5462_p0 = pnand %p5460_p13, %p5457_p12 }
  0x6e   :  { %5465 = shalt.err (!%p5462_p0)
}
  0x6f   :  { %s5466_s18 = scalar_lea.vmem %s101_s29, 2048  ;;  %p5471_p2 = scmp.lt.s32.totalorder %s101_s29, %s101_s29 }
  0x70   :  { %p5467_p1 = scmp.ne.s32.totalorder %s101_s29, %s5466_s18  ;;  %p5472_p3 = scmp.lt.s32.totalorder %s5466_s18, %s5466_s18 }
  0x72   :  { %p5473_p4 = por %p5472_p3, %p5471_p2 }
  0x74   :  { %p5474_p5 = pnand %p5473_p4, %p5467_p1 }
  0x76   :  { %5477 = shalt.err (!%p5474_p5)
}
  0x77   :  { %s7261_s7 = smov 8   ;;  %s7262_s30 = smov 128  }
  0x78   :  { %106 = dma.hbm_to_vmem [thread:$0]  %s7195_s9, 2048, %s101_s29, [#allocation14], %s7262_s30, %s7262_s30, %s7261_s7  }
  0x79   :  { %5544 = dma.done.wait [#allocation5], 2048  }
  0x7a   :  { %5545 = vsyncadd [#allocation5], 4294965248 }
  0x7b   :  { %5546 = dma.done.wait [#allocation8], 2560  }
  0x7c   :  { %5547 = vsyncadd [#allocation8], 4294964736 }
  0x7d   :  { %5548 = dma.done.wait [#allocation11], 2048  }
  0x7e   :  { %5549 = vsyncadd [#allocation11], 4294965248 }
  0x7f   :  { %5550 = dma.done.wait [#allocation14], 2048  }
  0x80   :  { %5551 = vsyncadd [#allocation14], 4294965248  ;;  %s140_s3 = sld [smem:[#allocation0]]   ;;  %152 = sst [smem:[#allocation20]] %s5565_s5  ;;  %v5570_v0 = vmov 0.0   ;;  %vm228_vm0 = vcmask 1040384  }
  0x81   :  { %4645 = vmatprep.subr.bf16.mxu0 %v5570_v0  ;;  %154 = sst [smem:[#allocation20 + $0x1]] %s5565_s5  ;;  %s5571_s17 = smov [#allocation2]   ;;  %vm5575_vm1 = vmmov 0  }
  0x82   :  { %s148_s25 = sshll.u32 %s5571_s17, 4  ;;  %s5572_s23 = smov 2   ;;  %4661 = vmatprep.mubr.msk.bf16.mxu0 %vm5575_vm1, %v5570_v0  ;;  %s149_s25 = int_to_ptr.vmem [resolvable:$true] %s148_s25 }
  0x83   :  { %156 = sst [smem:[#allocation20 + $0x2]] %s5572_s23  ;;  %s5573_s24 = smov [#allocation3]  }
  0x84   :  { %158 = sst [smem:[#allocation20 + $0x3]] %s7260_s27  ;;  %s5574_s20 = smov [#allocation19]  }
  0x85   :  { %160 = sst [smem:[#allocation20 + $0x4]] %s7262_s30 }
  0x86   :  { %162 = sst [smem:[#allocation20 + $0x5]] %s5572_s23  ;;  %s4371_s9 = sshll.u32 %s140_s3, 26 }
  0x87   :  { %164 = sst [smem:[#allocation20 + $0x6]] %s7262_s30  ;;  %s4372_s29 = sadd.s32 134217728, %s4371_s9 }
  0x88   :  { %166 = sst [smem:[#allocation20 + $0x7]] %s7260_s27 }
  0x89   :  { %168 = sst [smem:[#allocation20 + $0x8]] %s5564_s22 }
  0x8a   :  { %170 = dma.general %s7188_s2, 16384, %s149_s25, %s5573_s24, %s5574_s20, [#allocation20], %s4372_s29, 0  }
  0x8b   :  { %v4898_v1 = vld [vmem:[#allocation9 + $0x40] sm:$0xff]   ;;  %v4900_v3 = vld [vmem:[#allocation9 + $0x48] sm:$0xff]   ;;  %v4902_v5 = vld [vmem:[#allocation9 + $0x50] sm:$0xff]  }
  0x8c   :  { %v4899_v2 = vld [vmem:[#allocation9] sm:$0xff]   ;;  %4489 = vmatprep.subr.bf16.mxu1 %v4898_v1  ;;  %v4901_v4 = vld [vmem:[#allocation9 + $0x8] sm:$0xff]   ;;  %v4903_v6 = vld [vmem:[#allocation9 + $0x10] sm:$0xff]  }
  0x8d   :  { %4490 = vmatpush3.bf16.msra.mxu1 %v4899_v2  ;;  %v4904_v7 = vld [vmem:[#allocation9 + $0x58] sm:$0xff]   ;;  %v4906_v9 = vld [vmem:[#allocation9 + $0x60] sm:$0xff]   ;;  %v4908_v11 = vld [vmem:[#allocation9 + $0x68] sm:$0xff]  }
  0x8e   :  { %4491 = vmatprep.subr.bf16.mxu1 %v4900_v3  ;;  %v4905_v8 = vld [vmem:[#allocation9 + $0x18] sm:$0xff]   ;;  %v4907_v10 = vld [vmem:[#allocation9 + $0x20] sm:$0xff]   ;;  %v172_v12 = vld [vmem:[#allocation4 + $0x8] sm:$0xff] }
  0x8f   :  { %v174_v13 = vld [vmem:[#allocation4 + $0x18] sm:$0xff]  ;;  %v176_v14 = vld [vmem:[#allocation4 + $0x28] sm:$0xff]  ;;  %v4910_v19 = vld [vmem:[#allocation9 + $0x70] sm:$0xff]  }
  0x90   :  { %v4909_v15 = vld [vmem:[#allocation9 + $0x28] sm:$0xff]   ;;  %v188_v16 = vadd.f32 %v174_v13, %v172_v12  ;;  %v203_v18 = vld [vmem:[#allocation4 + $0x58] sm:$0xff]  ;;  %v171_v23 = vld [vmem:[#allocation4] sm:$0xff] }
  0x91   :  { %4492 = vmatpush3.bf16.msra.mxu1 %v4901_v4  ;;  %v201_v17 = vld [vmem:[#allocation4 + $0x48] sm:$0xff]  ;;  %v178_v20 = vld [vmem:[#allocation4 + $0x38] sm:$0xff]  ;;  %v173_v26 = vld [vmem:[#allocation4 + $0x10] sm:$0xff] }
  0x92   :  { %4493 = vmatprep.subr.bf16.mxu1 %v4902_v5  ;;  %v205_v21 = vld [vmem:[#allocation4 + $0x68] sm:$0xff]  ;;  %v217_v22 = vadd.f32 %v203_v18, %v201_v17  ;;  %v189_v24 = vadd.f32 %v188_v16, %v176_v14  ;;  %v207_v25 = vld [vmem:[#allocation4 + $0x78] sm:$0xff]  ;;  %v175_v27 = vld [vmem:[#allocation4 + $0x20] sm:$0xff]  ;;  %v179_v29 = vadd.f32 %v173_v26, %v171_v23 }
  0x93   :  { %v200_v30 = vld [vmem:[#allocation4 + $0x40] sm:$0xff]  ;;  %v202_v31 = vld [vmem:[#allocation4 + $0x50] sm:$0xff]  ;;  %v4912_v42 = vld [vmem:[#allocation9 + $0x78] sm:$0xff]  }
  0x94   :  { %v218_v28 = vadd.f32 %v217_v22, %v205_v21  ;;  %v204_v32 = vld [vmem:[#allocation4 + $0x60] sm:$0xff]  ;;  %v190_v33 = vadd.f32 %v189_v24, %v178_v20  ;;  %v177_v34 = vld [vmem:[#allocation4 + $0x30] sm:$0xff]  ;;  %v208_v35 = vadd.f32 %v202_v31, %v200_v30  ;;  %v180_v37 = vadd.f32 %v179_v29, %v175_v27  ;;  %v4913_v49 = vld [vmem:[#allocation9 + $0x38] sm:$0xff]  }
  0x95   :  { %4494 = vmatpush3.bf16.msra.mxu1 %v4903_v6  ;;  %v206_v38 = vld [vmem:[#allocation4 + $0x70] sm:$0xff]  ;;  %v4914_v13 = vld [vmem:[#allocation10] sm:$0xff]   ;;  %v4917_v17 = vld [vmem:[#allocation10 + $0x18] sm:$0xff]  }
  0x96   :  { %4495 = vmatprep.subr.bf16.mxu1 %v4904_v7  ;;  %v219_v36 = vadd.f32 %v218_v28, %v207_v25  ;;  %v4911_v39 = vld [vmem:[#allocation9 + $0x30] sm:$0xff]   ;;  %v191_v40 = vrot.slane %v190_v33, 4  ;;  %v209_v41 = vadd.f32 %v208_v35, %v204_v32  ;;  %v181_v44 = vadd.f32 %v180_v37, %v177_v34  ;;  %v4918_v18 = vld [vmem:[#allocation10 + $0x20] sm:$0xff]   ;;  %v4921_v21 = vld [vmem:[#allocation10 + $0x38] sm:$0xff]  }
  0x97   :  { %v4916_v16 = vld [vmem:[#allocation10 + $0x10] sm:$0xff]   ;;  %v4924_v22 = vld [vmem:[#allocation13 + $0x4] ss:$8 sps:$4 sm:$0xff]   ;;  %v4946_v26 = vld [vmem:[#allocation12 + $0x18] sm:$0xff]  }
  0x98   :  { %v220_v43 = vrot.slane %v219_v36, 4  ;;  %v192_v45 = vadd.f32 %v191_v40, %v190_v33  ;;  %v210_v46 = vadd.f32 %v209_v41, %v206_v38  ;;  %v182_v48 = vrot.slane %v181_v44, 4  ;;  %v4920_v20 = vld [vmem:[#allocation10 + $0x30] sm:$0xff]   ;;  %v4934_v23 = vld [vmem:[#allocation12] sm:$0xff]   ;;  %v4938_v24 = vld [vmem:[#allocation12 + $0x8] sm:$0xff]  }
  0x99   :  { %4496 = vmatpush3.bf16.msra.mxu1 %v4905_v8  ;;  %4646 = vmatpush3.bf16.msra.mxu0 %v4934_v23  ;;  %v4942_v25 = vld [vmem:[#allocation12 + $0x10] sm:$0xff]   ;;  %v4950_v27 = vld [vmem:[#allocation12 + $0x20] sm:$0xff]   ;;  %v4951_v28 = vld [vmem:[#allocation12 + $0x28] sm:$0xff]   ;;  %v5576_v40 = vmov 0  }
  0x9a   :  { %4497 = vmatprep.subr.bf16.mxu1 %v4906_v9  ;;  %v221_v47 = vadd.f32 %v220_v43, %v219_v36  ;;  %v193_v50 = vrot.slane %v192_v45, 2  ;;  %v211_v51 = vrot.slane %v210_v46, 4  ;;  %v183_v53 = vadd.f32 %v182_v48, %v181_v44  ;;  %4647 = vmatprep.subr.bf16.mxu0 %v5570_v0  ;;  %v4373_v30 = vld [vmem:[%s7190_s4] ss:$0 sm:$0xff]  ;;  %v4927_v38 = vld [vmem:[#allocation13 + $0x14] ss:$8 sps:$4 sm:$0xff]  }
  0x9b   :  { %v4922_v36 = vld [vmem:[#allocation13] ss:$8 sps:$4 sm:$0xff]   ;;  %v4930_v41 = vld [vmem:[#allocation13 + $0x24] ss:$8 sps:$4 sm:$0xff]   ;;  %v4933_v43 = vld [vmem:[#allocation13 + $0x34] ss:$8 sps:$4 sm:$0xff]  }
  0x9c   :  { %v222_v52 = vrot.slane %v221_v47, 2  ;;  %v194_v54 = vadd.f32 %v193_v50, %v192_v45  ;;  %v212_v55 = vadd.f32 %v211_v51, %v210_v46  ;;  %v184_v57 = vrot.slane %v183_v53, 2  ;;  %v4931_v44 = vld [vmem:[#allocation13 + $0x30] ss:$8 sps:$4 sm:$0xff]   ;;  %v4937_v45 = vld [vmem:[#allocation13 + $0x44] ss:$8 sps:$4 sm:$0xff]  }
  0x9d   :  { %4498 = vmatpush3.bf16.msra.mxu1 %v4907_v10  ;;  %4648 = vmatpush3.bf16.msra.mxu0 %v4938_v24  ;;  %v4935_v46 = vld [vmem:[#allocation13 + $0x40] ss:$8 sps:$4 sm:$0xff]   ;;  %v4939_v48 = vld [vmem:[#allocation13 + $0x50] ss:$8 sps:$4 sm:$0xff]   ;;  %v4949_v51 = vld [vmem:[#allocation13 + $0x74] ss:$8 sps:$4 sm:$0xff]  }
  0x9e   :  { %4499 = vmatprep.subr.bf16.mxu1 %v4908_v11  ;;  %v223_v56 = vadd.f32 %v222_v52, %v221_v47  ;;  %v195_v58 = vrot.slane %v194_v54, 1  ;;  %v213_v59 = vrot.slane %v212_v55, 2  ;;  %v185_v61 = vadd.f32 %v184_v57, %v183_v53  ;;  %4649 = vmatprep.subr.bf16.mxu0 %v5570_v0  ;;  %v4941_v47 = vld [vmem:[#allocation13 + $0x54] ss:$8 sps:$4 sm:$0xff]   ;;  %v4943_v50 = vld [vmem:[#allocation13 + $0x60] ss:$8 sps:$4 sm:$0xff]  }
  0x9f   :  { %v4947_v52 = vld [vmem:[#allocation13 + $0x70] ss:$8 sps:$4 sm:$0xff]   ;;  %v635_v53 = vld [vmem:[#allocation7] sm:$0xff] }
  0xa0   :  { %v224_v60 = vrot.slane %v223_v56, 1  ;;  %v196_v62 = vadd.f32 %v195_v58, %v194_v54  ;;  %v214_v63 = vadd.f32 %v213_v59, %v212_v55  ;;  %v186_v2 = vrot.slane %v185_v61, 1  ;;  %v636_v54 = vld [vmem:[#allocation7 + $0x8] sm:$0xff]  ;;  %v637_v57 = vld [vmem:[#allocation7 + $0x10] sm:$0xff]  ;;  %v638_v58 = vld [vmem:[#allocation7 + $0x18] sm:$0xff] }
  0xa1   :  { %4500 = vmatpush3.bf16.msra.mxu1 %v4909_v15  ;;  %v4915_v15 = vld [vmem:[#allocation10 + $0x8] sm:$0xff]   ;;  %4650 = vmatpush3.bf16.msra.mxu0 %v4942_v25  ;;  %v639_v55 = vpack.c.bf16 %v636_v54, %v635_v53  ;;  %v640_v59 = vpack.c.bf16 %v638_v58, %v637_v57 }
  0xa2   :  { %4501 = vmatprep.subr.bf16.mxu1 %v4910_v19  ;;  %v225_v1 = vadd.f32 %v224_v60, %v223_v56  ;;  %v199_v3 = vmul.f32 0.03125, %v196_v62  ;;  %v215_v4 = vrot.slane %v214_v63, 1  ;;  %v187_v6 = vadd.f32 %v186_v2, %v185_v61  ;;  %v4919_v19 = vld [vmem:[#allocation10 + $0x28] sm:$0xff]   ;;  %4651 = vmatprep.subr.bf16.mxu0 %v5570_v0  ;;  %v4952_v56 = vld [vmem:[#allocation12 + $0x30] sm:$0xff]   ;;  %v4953_v60 = vld [vmem:[#allocation12 + $0x38] sm:$0xff]  }
  0xa3   :  { %v4390_v61 = vld [vmem:[%s7192_s6] ss:$0 sm:$0xff] }
  0xa4   :  { %v227_v5 = vmul.f32 0.03125, %v225_v1  ;;  %v216_v7 = vadd.f32 %v215_v4, %v214_v63  ;;  %v198_v9 = vmul.f32 0.03125, %v187_v6  ;;  %v659_v6 = vlaneseq }
  0xa5   :  { %4502 = vmatpush3.bf16.msra.mxu1 %v4911_v39  ;;  %4652 = vmatpush3.bf16.msra.mxu0 %v4946_v26  ;;  %v4925_v39 = vld [vmem:[#allocation13 + $0x10] ss:$8 sps:$4 sm:$0xff]  }
  0xa6   :  { %4503 = vmatprep.subr.bf16.mxu1 %v4912_v42  ;;  %v230_v8 = vsel %vm228_vm0, %v199_v3, %v227_v5  ;;  %v226_v11 = vmul.f32 0.03125, %v216_v7  ;;  %4653 = vmatprep.subr.bf16.mxu0 %v5570_v0  ;;  %v4928_v42 = vld [vmem:[#allocation13 + $0x20] ss:$8 sps:$4 sm:$0xff]   ;;  %v660_v7 = vshrl.u32 %v659_v6, 7 }
  0xa7   :  { %v232_v10 = vpack.c.bf16 %v230_v8, %v230_v8 }
  0xa8   :  { %v229_v12 = vsel %vm228_vm0, %v198_v9, %v226_v11  ;;  %v5798_v8 = vsub.s32 0, %v660_v7  ;;  %v5803_v9 = vsub.s32 1, %v660_v7 }
  0xa9   :  { %4504 = vmatpush3.bf16.msra.mxu1 %v4913_v49  ;;  %400 = vmatprep.mubr.bf16.mxu1 %v232_v10  ;;  %v231_v14 = vpack.c.bf16 %v229_v12, %v229_v12  ;;  %v4945_v49 = vld [vmem:[#allocation13 + $0x64] ss:$8 sps:$4 sm:$0xff]  }
  0xaa   :  { %4625 = vmatprep.subr.bf16.mxu1 %v5570_v0  ;;  %4654 = vmatpush3.bf16.msra.mxu0 %v4950_v27  ;;  %7263 = vst [vmem:[#allocation28_spill] sm:$0xff] %v5798_v8  ;;  %7264 = vst [vmem:[#allocation29_spill] sm:$0xff] %v5803_v9 }
  0xab   :  { %4655 = vmatprep.subr.bf16.mxu0 %v5570_v0 }
  0xac   :  { %401 = vmatmul.mubr.bf16.vlgmr.msra.gmra.mrb[0].mxu1 %v231_v14 }
  0xad   :  { %4626 = vmatpush3.bf16.msra.mxu1 %v4914_v13  ;;  %4641 = vmatprep.mubr.msk.bf16.mxu1 %vm5575_vm1, %v5570_v0 }
  0xae   :  { %4627 = vmatprep.subr.bf16.mxu1 %v5570_v0  ;;  %4656 = vmatpush3.bf16.msra.mxu0 %v4951_v28 }
  0xaf   :  { %4657 = vmatprep.subr.bf16.mxu0 %v5570_v0 }
  0xb1   :  { %4628 = vmatpush3.bf16.msra.mxu1 %v4915_v15 }
  0xb2   :  { %4629 = vmatprep.subr.bf16.mxu1 %v5570_v0  ;;  %4658 = vmatpush3.bf16.msra.mxu0 %v4952_v56 }
  0xb3   :  { %4659 = vmatprep.subr.bf16.mxu0 %v5570_v0 }
  0xb5   :  { %4630 = vmatpush3.bf16.msra.mxu1 %v4916_v16 }
  0xb6   :  { %4631 = vmatprep.subr.bf16.mxu1 %v5570_v0  ;;  %4660 = vmatpush3.bf16.msra.mxu0 %v4953_v60 }
  0xb9   :  { %4632 = vmatpush3.bf16.msra.mxu1 %v4917_v17 }
  0xba   :  { %4633 = vmatprep.subr.bf16.mxu1 %v5570_v0 }
  0xbd   :  { %4634 = vmatpush3.bf16.msra.mxu1 %v4918_v18 }
  0xbe   :  { %4635 = vmatprep.subr.bf16.mxu1 %v5570_v0 }
  0xc1   :  { %4636 = vmatpush3.bf16.msra.mxu1 %v4919_v19 }
  0xc2   :  { %4637 = vmatprep.subr.bf16.mxu1 %v5570_v0 }
  0xc5   :  { %4638 = vmatpush3.bf16.msra.mxu1 %v4920_v20 }
  0xc6   :  { %4639 = vmatprep.subr.bf16.mxu1 %v5570_v0  ;;  %v657_v0 = vld [vmem:[%s7196_s10] sm:$0x3] }
  0xc7   :  { %v662_v10 = vrot.slane %v657_v0, %v5798_v8  ;;  %v666_v11 = vrot.slane %v657_v0, %v5803_v9 }
  0xc9   :  { %4640 = vmatpush3.bf16.msra.mxu1 %v4921_v21 }
  0xca   :  { %749 = vmatprep.subr.bf16.mxu1 %v4924_v22 }
 0x17f   :  { %v4505_v29 = vpop.f32.mrb[0].mxu1 }
 0x180   :  { %v4506_v31 = vpop.f32.mrb[1].mxu1 }
 0x181   :  { %v4507_v32 = vadd.f32 %v4506_v31, %v4505_v29  ;;  %v4508_v33 = vpop.f32.mrb[2].mxu1 }
 0x182   :  { %v4509_v34 = vpop.f32.mrb[3].mxu1 }
 0x183   :  { %v403_v35 = vadd.f32 %v4507_v32, %v4373_v30  ;;  %v4399_v32 = vld [vmem:[%s7194_s8] ss:$0 sm:$0xff] }
 0x185   :  { %408 = vst [vmem:[#allocation16] sm:$0x3] %v403_v35  ;;  %v409_v37 = vpack.c.bf16 %v403_v35, %v403_v35 }
 0x187   :  { %4642 = vmatmul.mubr.bf16.vlgmr.msra.gmra.mrb[4].mxu1 %v409_v37 }
 0x188   :  { %750 = vmatpush1.bf16.msra.mxu1 %v4922_v36  ;;  %781 = vmatprep.mubr.bf16.mxu1 %v5576_v40 }
 0x189   :  { %751 = vmatprep.subr.bf16.mxu1 %v4927_v38 }
 0x18c   :  { %752 = vmatpush1.bf16.msra.mxu1 %v4925_v39 }
 0x18d   :  { %753 = vmatprep.subr.bf16.mxu1 %v4930_v41 }
 0x190   :  { %754 = vmatpush1.bf16.msra.mxu1 %v4928_v42 }
 0x191   :  { %755 = vmatprep.subr.bf16.mxu1 %v4933_v43 }
 0x194   :  { %756 = vmatpush1.bf16.msra.mxu1 %v4931_v44 }
 0x195   :  { %757 = vmatprep.subr.bf16.mxu1 %v4937_v45 }
 0x198   :  { %758 = vmatpush1.bf16.msra.mxu1 %v4935_v46 }
 0x199   :  { %759 = vmatprep.subr.bf16.mxu1 %v4941_v47 }
 0x19c   :  { %760 = vmatpush1.bf16.msra.mxu1 %v4939_v48 }
 0x19d   :  { %761 = vmatprep.subr.bf16.mxu1 %v4945_v49 }
 0x1a0   :  { %762 = vmatpush1.bf16.msra.mxu1 %v4943_v50 }
 0x1a1   :  { %763 = vmatprep.subr.bf16.mxu1 %v4949_v51 }
 0x1a4   :  { %764 = vmatpush1.bf16.msra.mxu1 %v4947_v52 }
 0x1a7   :  { %782 = vmatmul.mubr.bf16.vlgmr.msra.gmra.mrb[8].mxu1 %v639_v55 }
 0x1a8   :  { %791 = vmatprep.mubr.bf16.mxu1 %v5576_v40 }
 0x1af   :  { %792 = vmatmul.mubr.bf16.gmra.mrb[12].mxu1 %v640_v59 }
 0x25a   :  { %v515_v62 = vpop.f32.mrb[4].mxu1 }
 0x25b   :  { %v516_v63 = vadd.f32 %v4390_v61, %v515_v62  ;;  %v4643_v1 = vpop.f32.mrb[5].mxu1 }
 0x25c   :  { %v518_v2 = vpop.f32.mrb[6].mxu1 }
 0x25d   :  { %v521_v3 = vmax.f32 %v516_v63, 0.0  ;;  %v4644_v4 = vpop.f32.mrb[7].mxu1 }
 0x25f   :  { %v522_v5 = vpack.c.bf16 %v521_v3, %v521_v3 }
 0x261   :  { %4662 = vmatmul.mubr.bf16.vlgmr.msra.gmra.mrb[0].mxu0 %v522_v5 }
 0x27a   :  { %v783_v12 = vpop.f32.mrb[8].mxu1 }
 0x27b   :  { %v784_v13 = vadd.f32 %v783_v12, %v662_v10  ;;  %v785_v14 = vpop.f32.mrb[9].mxu1 }
 0x27c   :  { %v786_v15 = vadd.f32 %v785_v14, %v666_v11  ;;  %v787_v16 = vpop.f32.mrb[10].mxu1 }
 0x27d   :  { %v788_v17 = vadd.f32 %v787_v16, %v662_v10  ;;  %v789_v18 = vpop.f32.mrb[11].mxu1 }
 0x27e   :  { %v790_v19 = vadd.f32 %v789_v18, %v666_v11 }
 0x27f   :  { %v5807_v20 = vpack.c.bf16 %v788_v17, %v784_v13 }
 0x280   :  { %v5809_v21 = vpack.c.bf16 %v790_v19, %v786_v15 }
 0x282   :  { %v793_v22 = vpop.f32.mrb[12].mxu1 }
 0x283   :  { %v794_v23 = vadd.f32 %v793_v22, %v662_v10  ;;  %v795_v24 = vpop.f32.mrb[13].mxu1 }
 0x284   :  { %v796_v25 = vadd.f32 %v795_v24, %v666_v11  ;;  %v797_v26 = vpop.f32.mrb[14].mxu1 }
 0x285   :  { %v798_v27 = vadd.f32 %v797_v26, %v662_v10  ;;  %v799_v28 = vpop.f32.mrb[15].mxu1 }
 0x286   :  { %v800_v29 = vadd.f32 %v799_v28, %v666_v11 }
 0x287   :  { %v5811_v30 = vpack.c.bf16 %v798_v27, %v794_v23 }
 0x288   :  { %v5813_v31 = vpack.c.bf16 %v800_v29, %v796_v25 }
 0x334   :  { %v628_v33 = vpop.f32.mrb[0].mxu0 }
 0x335   :  { %v629_v34 = vadd.f32 %v4399_v32, %v628_v33  ;;  %v4663_v35 = vpop.f32.mrb[1].mxu0 }
 0x336   :  { %v631_v36 = vpop.f32.mrb[2].mxu0 }
 0x337   :  { %634 = vst [vmem:[#allocation18] sm:$0x3] %v629_v34  ;;  %v4664_v37 = vpop.f32.mrb[3].mxu0 }
 0x338   :  { %5552 = dma.done.wait [#allocation3], 16384 }
 0x339   :  { %5553 = vsyncadd [#allocation3], 4294950912  ;;  %1053 = vmatprep.mubr.bf16.mxu1 %v5809_v21  ;;  %v836_v38 = vld [vmem:[#allocation2 + $0x8] sm:$0xff]  ;;  %v835_v40 = vld [vmem:[#allocation2] sm:$0xff]  ;;  %vm1180_vm2 = vcmask 261120   ;;  %vm2261_vm4 = vcmask 130048  }
 0x33a   :  { %v978_v39 = vld [vmem:[#allocation2 + $0x108] sm:$0xff]  ;;  %879 = vmatprep.subr.bf16.mxu0 %v836_v38  ;;  %v977_v41 = vld [vmem:[#allocation2 + $0x100] sm:$0xff]  ;;  %v838_v42 = vld [vmem:[#allocation2 + $0x18] sm:$0xff]  ;;  %vm3558_vm5 = vcmask 523264   ;;  %vm3563_vm6 = vcmask 785408  }
 0x33b   :  { %1021 = vmatprep.subr.bf16.mxu1 %v978_v39  ;;  %v980_v43 = vld [vmem:[#allocation2 + $0x118] sm:$0xff]  ;;  %880 = vmatpush1.bf16.msra.mxu0 %v835_v40  ;;  %v837_v44 = vld [vmem:[#allocation2 + $0x10] sm:$0xff]  ;;  %v840_v46 = vld [vmem:[#allocation2 + $0x28] sm:$0xff] }
 0x33c   :  { %1022 = vmatpush1.bf16.msra.mxu1 %v977_v41  ;;  %881 = vmatprep.subr.bf16.mxu0 %v838_v42  ;;  %v979_v45 = vld [vmem:[#allocation2 + $0x110] sm:$0xff]  ;;  %v982_v47 = vld [vmem:[#allocation2 + $0x128] sm:$0xff]  ;;  %v839_v48 = vld [vmem:[#allocation2 + $0x20] sm:$0xff] }
 0x33d   :  { %1023 = vmatprep.subr.bf16.mxu1 %v980_v43  ;;  %v981_v49 = vld [vmem:[#allocation2 + $0x120] sm:$0xff]  ;;  %v842_v50 = vld [vmem:[#allocation2 + $0x38] sm:$0xff]  ;;  %v841_v52 = vld [vmem:[#allocation2 + $0x30] sm:$0xff] }
 0x33e   :  { %v984_v51 = vld [vmem:[#allocation2 + $0x138] sm:$0xff]  ;;  %v983_v53 = vld [vmem:[#allocation2 + $0x130] sm:$0xff]  ;;  %v844_v54 = vld [vmem:[#allocation2 + $0x48] sm:$0xff] }
 0x33f   :  { %882 = vmatpush1.bf16.msra.mxu0 %v837_v44  ;;  %v986_v55 = vld [vmem:[#allocation2 + $0x148] sm:$0xff]  ;;  %v843_v56 = vld [vmem:[#allocation2 + $0x40] sm:$0xff]  ;;  %v846_v58 = vld [vmem:[#allocation2 + $0x58] sm:$0xff] }
 0x340   :  { %1024 = vmatpush1.bf16.msra.mxu1 %v979_v45  ;;  %883 = vmatprep.subr.bf16.mxu0 %v840_v46  ;;  %v985_v57 = vld [vmem:[#allocation2 + $0x140] sm:$0xff]  ;;  %v988_v59 = vld [vmem:[#allocation2 + $0x158] sm:$0xff]  ;;  %v845_v60 = vld [vmem:[#allocation2 + $0x50] sm:$0xff] }
 0x341   :  { %1025 = vmatprep.subr.bf16.mxu1 %v982_v47  ;;  %v987_v61 = vld [vmem:[#allocation2 + $0x150] sm:$0xff]  ;;  %v848_v62 = vld [vmem:[#allocation2 + $0x68] sm:$0xff]  ;;  %v814_v2 = vld [vmem:[#allocation4 + $0x18] sm:$0xff] }
 0x342   :  { %v990_v63 = vld [vmem:[#allocation2 + $0x168] sm:$0xff]  ;;  %v847_v4 = vld [vmem:[#allocation2 + $0x60] sm:$0xff]  ;;  %v850_v7 = vld [vmem:[#allocation2 + $0x78] sm:$0xff] }
 0x343   :  { %884 = vmatpush1.bf16.msra.mxu0 %v839_v48  ;;  %v812_v1 = vld [vmem:[#allocation4 + $0x8] sm:$0xff]  ;;  %v989_v5 = vld [vmem:[#allocation2 + $0x160] sm:$0xff]  ;;  %v992_v0 = vld [vmem:[#allocation2 + $0x178] sm:$0xff] }
 0x344   :  { %1026 = vmatpush1.bf16.msra.mxu1 %v981_v49  ;;  %885 = vmatprep.subr.bf16.mxu0 %v842_v50  ;;  %v828_v3 = vpack.c.bf16 %v814_v2, %v812_v1  ;;  %v849_v10 = vld [vmem:[#allocation2 + $0x70] sm:$0xff]  ;;  %v852_v12 = vld [vmem:[#allocation2 + $0x88] sm:$0xff]  ;;  %v851_v14 = vld [vmem:[#allocation2 + $0x80] sm:$0xff] }
 0x345   :  { %1027 = vmatprep.subr.bf16.mxu1 %v984_v51  ;;  %v991_v11 = vld [vmem:[#allocation2 + $0x170] sm:$0xff]  ;;  %v994_v13 = vld [vmem:[#allocation2 + $0x188] sm:$0xff]  ;;  %v993_v15 = vld [vmem:[#allocation2 + $0x180] sm:$0xff] }
 0x346   :  { %911 = vmatprep.mubr.bf16.mxu0 %v828_v3  ;;  %v854_v16 = vld [vmem:[#allocation2 + $0x98] sm:$0xff]  ;;  %v853_v18 = vld [vmem:[#allocation2 + $0x90] sm:$0xff]  ;;  %v856_v22 = vld [vmem:[#allocation2 + $0xa8] sm:$0xff] }
 0x347   :  { %886 = vmatpush1.bf16.msra.mxu0 %v841_v52  ;;  %v996_v17 = vld [vmem:[#allocation2 + $0x198] sm:$0xff]  ;;  %v995_v19 = vld [vmem:[#allocation2 + $0x190] sm:$0xff]  ;;  %v998_v23 = vld [vmem:[#allocation2 + $0x1a8] sm:$0xff] }
 0x348   :  { %1028 = vmatpush1.bf16.msra.mxu1 %v983_v53  ;;  %887 = vmatprep.subr.bf16.mxu0 %v844_v54  ;;  %v855_v24 = vld [vmem:[#allocation2 + $0xa0] sm:$0xff]  ;;  %v858_v26 = vld [vmem:[#allocation2 + $0xb8] sm:$0xff]  ;;  %v857_v28 = vld [vmem:[#allocation2 + $0xb0] sm:$0xff] }
 0x349   :  { %1029 = vmatprep.subr.bf16.mxu1 %v986_v55  ;;  %v997_v25 = vld [vmem:[#allocation2 + $0x1a0] sm:$0xff]  ;;  %v1000_v27 = vld [vmem:[#allocation2 + $0x1b8] sm:$0xff]  ;;  %v999_v29 = vld [vmem:[#allocation2 + $0x1b0] sm:$0xff] }
 0x34a   :  { %v860_v32 = vld [vmem:[#allocation2 + $0xc8] sm:$0xff]  ;;  %v859_v34 = vld [vmem:[#allocation2 + $0xc0] sm:$0xff]  ;;  %v862_v36 = vld [vmem:[#allocation2 + $0xd8] sm:$0xff] }
 0x34b   :  { %888 = vmatpush1.bf16.msra.mxu0 %v843_v56  ;;  %v1002_v33 = vld [vmem:[#allocation2 + $0x1c8] sm:$0xff]  ;;  %v1001_v35 = vld [vmem:[#allocation2 + $0x1c0] sm:$0xff]  ;;  %v1004_v37 = vld [vmem:[#allocation2 + $0x1d8] sm:$0xff] }
 0x34c   :  { %1030 = vmatpush1.bf16.msra.mxu1 %v985_v57  ;;  %889 = vmatprep.subr.bf16.mxu0 %v846_v58  ;;  %v861_v38 = vld [vmem:[#allocation2 + $0xd0] sm:$0xff]  ;;  %v864_v40 = vld [vmem:[#allocation2 + $0xe8] sm:$0xff]  ;;  %v863_v42 = vld [vmem:[#allocation2 + $0xe0] sm:$0xff] }
 0x34d   :  { %1031 = vmatprep.subr.bf16.mxu1 %v988_v59  ;;  %v1003_v39 = vld [vmem:[#allocation2 + $0x1d0] sm:$0xff]  ;;  %v1006_v41 = vld [vmem:[#allocation2 + $0x1e8] sm:$0xff]  ;;  %v1005_v43 = vld [vmem:[#allocation2 + $0x1e0] sm:$0xff] }
 0x34e   :  { %v866_v44 = vld [vmem:[#allocation2 + $0xf8] sm:$0xff]  ;;  %v865_v46 = vld [vmem:[#allocation2 + $0xf0] sm:$0xff]  ;;  %v811_v47 = vld [vmem:[#allocation4] sm:$0xff] }
 0x34f   :  { %890 = vmatpush1.bf16.msra.mxu0 %v845_v60  ;;  %v1008_v45 = vld [vmem:[#allocation2 + $0x1f8] sm:$0xff]  ;;  %v813_v48 = vld [vmem:[#allocation4 + $0x10] sm:$0xff]  ;;  %v816_v50 = vld [vmem:[#allocation4 + $0x28] sm:$0xff] }
 0x350   :  { %1032 = vmatpush1.bf16.msra.mxu1 %v987_v61  ;;  %891 = vmatprep.subr.bf16.mxu0 %v848_v62  ;;  %v1007_v49 = vld [vmem:[#allocation2 + $0x1f0] sm:$0xff]  ;;  %v818_v51 = vld [vmem:[#allocation4 + $0x38] sm:$0xff]  ;;  %v1080_v52 = vld [vmem:[#allocation2 + $0x208] sm:$0xff]  ;;  %v827_v53 = vpack.c.bf16 %v813_v48, %v811_v47 }
 0x351   :  { %1033 = vmatprep.subr.bf16.mxu1 %v990_v63  ;;  %v830_v54 = vpack.c.bf16 %v818_v51, %v816_v50  ;;  %v1079_v55 = vld [vmem:[#allocation2 + $0x200] sm:$0xff]  ;;  %v1082_v56 = vld [vmem:[#allocation2 + $0x218] sm:$0xff]  ;;  %v817_v58 = vld [vmem:[#allocation4 + $0x30] sm:$0xff] }
 0x352   :  { %v815_v57 = vld [vmem:[#allocation4 + $0x20] sm:$0xff]  ;;  %v820_v59 = vld [vmem:[#allocation4 + $0x48] sm:$0xff]  ;;  %v822_v60 = vld [vmem:[#allocation4 + $0x58] sm:$0xff] }
 0x353   :  { %892 = vmatpush1.bf16.msra.mxu0 %v847_v4  ;;  %v1081_v61 = vld [vmem:[#allocation2 + $0x210] sm:$0xff]  ;;  %v829_v62 = vpack.c.bf16 %v817_v58, %v815_v57  ;;  %v1084_v63 = vld [vmem:[#allocation2 + $0x228] sm:$0xff]  ;;  %v832_v1 = vpack.c.bf16 %v822_v60, %v820_v59  ;;  %v1083_v2 = vld [vmem:[#allocation2 + $0x220] sm:$0xff] }
 0x354   :  { %1034 = vmatpush1.bf16.msra.mxu1 %v989_v5  ;;  %893 = vmatprep.subr.bf16.mxu0 %v850_v7  ;;  %v1086_v3 = vld [vmem:[#allocation2 + $0x238] sm:$0xff]  ;;  %v819_v4 = vld [vmem:[#allocation4 + $0x40] sm:$0xff]  ;;  %v821_v5 = vld [vmem:[#allocation4 + $0x50] sm:$0xff] }
 0x355   :  { %1035 = vmatprep.subr.bf16.mxu1 %v992_v0  ;;  %v824_v7 = vld [vmem:[#allocation4 + $0x68] sm:$0xff]  ;;  %v826_v0 = vld [vmem:[#allocation4 + $0x78] sm:$0xff] }
 0x357   :  { %894 = vmatpush1.bf16.msra.mxu0 %v849_v10  ;;  %v1085_v10 = vld [vmem:[#allocation2 + $0x230] sm:$0xff] }
 0x358   :  { %1036 = vmatpush1.bf16.msra.mxu1 %v991_v11  ;;  %895 = vmatprep.subr.bf16.mxu0 %v852_v12  ;;  %v831_v11 = vpack.c.bf16 %v821_v5, %v819_v4  ;;  %v1088_v12 = vld [vmem:[#allocation2 + $0x248] sm:$0xff] }
 0x359   :  { %1037 = vmatprep.subr.bf16.mxu1 %v994_v13  ;;  %v834_v13 = vpack.c.bf16 %v826_v0, %v824_v7 }
 0x35b   :  { %896 = vmatpush1.bf16.msra.mxu0 %v851_v14  ;;  %v1087_v14 = vld [vmem:[#allocation2 + $0x240] sm:$0xff] }
 0x35c   :  { %1038 = vmatpush1.bf16.msra.mxu1 %v993_v15  ;;  %897 = vmatprep.subr.bf16.mxu0 %v854_v16  ;;  %v1090_v15 = vld [vmem:[#allocation2 + $0x258] sm:$0xff]  ;;  %v823_v16 = vld [vmem:[#allocation4 + $0x60] sm:$0xff] }
 0x35d   :  { %1039 = vmatprep.subr.bf16.mxu1 %v996_v17  ;;  %v825_v17 = vld [vmem:[#allocation4 + $0x70] sm:$0xff] }
 0x35f   :  { %898 = vmatpush1.bf16.msra.mxu0 %v853_v18  ;;  %v1089_v18 = vld [vmem:[#allocation2 + $0x250] sm:$0xff] }
 0x360   :  { %1040 = vmatpush1.bf16.msra.mxu1 %v995_v19  ;;  %899 = vmatprep.subr.bf16.mxu0 %v856_v22  ;;  %v833_v19 = vpack.c.bf16 %v825_v17, %v823_v16  ;;  %v1092_v22 = vld [vmem:[#allocation2 + $0x268] sm:$0xff] }
 0x361   :  { %1041 = vmatprep.subr.bf16.mxu1 %v998_v23  ;;  %v1091_v23 = vld [vmem:[#allocation2 + $0x260] sm:$0xff] }
 0x363   :  { %900 = vmatpush1.bf16.msra.mxu0 %v855_v24  ;;  %v1094_v24 = vld [vmem:[#allocation2 + $0x278] sm:$0xff] }
 0x364   :  { %1042 = vmatpush1.bf16.msra.mxu1 %v997_v25  ;;  %901 = vmatprep.subr.bf16.mxu0 %v858_v26  ;;  %v1093_v25 = vld [vmem:[#allocation2 + $0x270] sm:$0xff]  ;;  %v1096_v26 = vld [vmem:[#allocation2 + $0x288] sm:$0xff] }
 0x365   :  { %1043 = vmatprep.subr.bf16.mxu1 %v1000_v27  ;;  %v1095_v27 = vld [vmem:[#allocation2 + $0x280] sm:$0xff] }
 0x367   :  { %902 = vmatpush1.bf16.msra.mxu0 %v857_v28  ;;  %v1098_v28 = vld [vmem:[#allocation2 + $0x298] sm:$0xff] }
 0x368   :  { %1044 = vmatpush1.bf16.msra.mxu1 %v999_v29  ;;  %903 = vmatprep.subr.bf16.mxu0 %v860_v32  ;;  %v1097_v29 = vld [vmem:[#allocation2 + $0x290] sm:$0xff]  ;;  %v1100_v32 = vld [vmem:[#allocation2 + $0x2a8] sm:$0xff] }
 0x369   :  { %1045 = vmatprep.subr.bf16.mxu1 %v1002_v33  ;;  %v1099_v33 = vld [vmem:[#allocation2 + $0x2a0] sm:$0xff] }
 0x36b   :  { %904 = vmatpush1.bf16.msra.mxu0 %v859_v34  ;;  %v1102_v34 = vld [vmem:[#allocation2 + $0x2b8] sm:$0xff] }
 0x36c   :  { %1046 = vmatpush1.bf16.msra.mxu1 %v1001_v35  ;;  %905 = vmatprep.subr.bf16.mxu0 %v862_v36  ;;  %v1101_v35 = vld [vmem:[#allocation2 + $0x2b0] sm:$0xff]  ;;  %v1103_v36 = vld [vmem:[#allocation2 + $0x2c0] sm:$0xff] }
 0x36d   :  { %1047 = vmatprep.subr.bf16.mxu1 %v1004_v37  ;;  %v1106_v37 = vld [vmem:[#allocation2 + $0x2d8] sm:$0xff] }
 0x36f   :  { %906 = vmatpush1.bf16.msra.mxu0 %v861_v38  ;;  %v1105_v38 = vld [vmem:[#allocation2 + $0x2d0] sm:$0xff] }
 0x370   :  { %1048 = vmatpush1.bf16.msra.mxu1 %v1003_v39  ;;  %907 = vmatprep.subr.bf16.mxu0 %v864_v40  ;;  %v1108_v39 = vld [vmem:[#allocation2 + $0x2e8] sm:$0xff]  ;;  %v1107_v40 = vld [vmem:[#allocation2 + $0x2e0] sm:$0xff] }
 0x371   :  { %1049 = vmatprep.subr.bf16.mxu1 %v1006_v41  ;;  %v1110_v41 = vld [vmem:[#allocation2 + $0x2f8] sm:$0xff] }
 0x373   :  { %908 = vmatpush1.bf16.msra.mxu0 %v863_v42  ;;  %v1109_v42 = vld [vmem:[#allocation2 + $0x2f0] sm:$0xff] }
 0x374   :  { %1050 = vmatpush1.bf16.msra.mxu1 %v1005_v43  ;;  %909 = vmatprep.subr.bf16.mxu0 %v866_v44  ;;  %v867_v43 = vld [vmem:[%s7197_s11] sm:$0x3]  ;;  %s5577_s11 = smov 96  }
 0x375   :  { %1051 = vmatprep.subr.bf16.mxu1 %v1008_v45  ;;  %v1009_v44 = vld [vmem:[%s7198_s12] sm:$0x3]  ;;  %v5833_v45 = vrot.slane %v867_v43, %v5798_v8  ;;  %s5578_s12 = smov 32  }
 0x377   :  { %910 = vmatpush1.bf16.msra.mxu0 %v865_v46  ;;  %v5836_v46 = vrot.slane %v867_v43, %v5803_v9 }
 0x378   :  { %1052 = vmatpush1.bf16.msra.mxu1 %v1007_v49  ;;  %1123 = vmatprep.subr.bf16.mxu0 %v1080_v52 }
 0x37a   :  { %912 = vmatmul.mubr.bf16.vlgmr.msra.gmra.mrb[4].mxu0 %v827_v53 }
 0x37b   :  { %1054 = vmatmul.mubr.bf16.vlgmr.msra.gmra.mrb[16].mxu1 %v5807_v20  ;;  %921 = vmatprep.mubr.bf16.mxu0 %v830_v54 }
 0x37c   :  { %1063 = vmatprep.mubr.bf16.mxu1 %v5813_v31  ;;  %1124 = vmatpush1.bf16.msra.mxu0 %v1079_v55 }
 0x37d   :  { %1125 = vmatprep.subr.bf16.mxu0 %v1082_v56 }
 0x380   :  { %1126 = vmatpush1.bf16.msra.mxu0 %v1081_v61 }
 0x381   :  { %1127 = vmatprep.subr.bf16.mxu0 %v1084_v63 }
 0x382   :  { %922 = vmatmul.mubr.bf16.gmra.mrb[8].mxu0 %v829_v62 }
 0x383   :  { %1064 = vmatmul.mubr.bf16.gmra.mrb[20].mxu1 %v5811_v30  ;;  %931 = vmatprep.mubr.bf16.mxu0 %v832_v1 }
 0x384   :  { %1128 = vmatpush1.bf16.msra.mxu0 %v1083_v2 }
 0x385   :  { %1129 = vmatprep.subr.bf16.mxu0 %v1086_v3 }
 0x388   :  { %1130 = vmatpush1.bf16.msra.mxu0 %v1085_v10 }
 0x389   :  { %1131 = vmatprep.subr.bf16.mxu0 %v1088_v12 }
 0x38a   :  { %932 = vmatmul.mubr.bf16.gmra.mrb[12].mxu0 %v831_v11 }
 0x38b   :  { %941 = vmatprep.mubr.bf16.mxu0 %v834_v13 }
 0x38c   :  { %1132 = vmatpush1.bf16.msra.mxu0 %v1087_v14 }
 0x38d   :  { %1133 = vmatprep.subr.bf16.mxu0 %v1090_v15 }
 0x390   :  { %1134 = vmatpush1.bf16.msra.mxu0 %v1089_v18 }
 0x391   :  { %1135 = vmatprep.subr.bf16.mxu0 %v1092_v22 }
 0x392   :  { %942 = vmatmul.mubr.bf16.gmra.mrb[16].mxu0 %v833_v19 }
 0x393   :  { %1155 = vmatprep.mubr.bf16.mxu0 %v5809_v21  ;;  %v1104_v21 = vld [vmem:[#allocation2 + $0x2c8] sm:$0xff] }
 0x394   :  { %1136 = vmatpush1.bf16.msra.mxu0 %v1091_v23 }
 0x395   :  { %1137 = vmatprep.subr.bf16.mxu0 %v1094_v24 }
 0x398   :  { %1138 = vmatpush1.bf16.msra.mxu0 %v1093_v25 }
 0x399   :  { %1139 = vmatprep.subr.bf16.mxu0 %v1096_v26 }
 0x39c   :  { %1140 = vmatpush1.bf16.msra.mxu0 %v1095_v27 }
 0x39d   :  { %1141 = vmatprep.subr.bf16.mxu0 %v1098_v28 }
 0x3a0   :  { %1142 = vmatpush1.bf16.msra.mxu0 %v1097_v29 }
 0x3a1   :  { %1143 = vmatprep.subr.bf16.mxu0 %v1100_v32 }
 0x3a4   :  { %1144 = vmatpush1.bf16.msra.mxu0 %v1099_v33 }
 0x3a5   :  { %1145 = vmatprep.subr.bf16.mxu0 %v1102_v34 }
 0x3a8   :  { %1146 = vmatpush1.bf16.msra.mxu0 %v1101_v35 }
 0x3a9   :  { %1147 = vmatprep.subr.bf16.mxu0 %v1104_v21 }
 0x3ac   :  { %1148 = vmatpush1.bf16.msra.mxu0 %v1103_v36 }
 0x3ad   :  { %1149 = vmatprep.subr.bf16.mxu0 %v1106_v37 }
 0x3b0   :  { %1150 = vmatpush1.bf16.msra.mxu0 %v1105_v38 }
 0x3b1   :  { %1151 = vmatprep.subr.bf16.mxu0 %v1108_v39 }
 0x3b4   :  { %1152 = vmatpush1.bf16.msra.mxu0 %v1107_v40 }
 0x3b5   :  { %1153 = vmatprep.subr.bf16.mxu0 %v1110_v41 }
 0x3b8   :  { %1154 = vmatpush1.bf16.msra.mxu0 %v1109_v42 }
 0x3bb   :  { %1156 = vmatmul.mubr.bf16.vlgmr.msra.gmra.mrb[20].mxu0 %v5807_v20  ;;  %v1014_v20 = vrot.slane %v1009_v44, %v5798_v8 }
 0x3bc   :  { %1165 = vmatprep.mubr.bf16.mxu0 %v5813_v31 }
 0x3c3   :  { %1166 = vmatmul.mubr.bf16.gmra.mrb[24].mxu0 %v5811_v30  ;;  %v1018_v30 = vrot.slane %v1009_v44, %v5803_v9 }
 0x44d   :  { %v913_v47 = vpop.f32.mrb[4].mxu0 }
 0x44e   :  { %v1055_v31 = vpop.f32.mrb[16].mxu1  ;;  %v914_v48 = vadd.f32 %v913_v47, %v5833_v45  ;;  %v915_v49 = vpop.f32.mrb[5].mxu0 }
 0x44f   :  { %v1057_v50 = vpop.f32.mrb[17].mxu1  ;;  %v916_v51 = vadd.f32 %v915_v49, %v5836_v46  ;;  %v917_v52 = vpop.f32.mrb[6].mxu0  ;;  %v1056_v55 = vadd.f32 %v1055_v31, %v1014_v20 }
 0x450   :  { %v1059_v53 = vpop.f32.mrb[18].mxu1  ;;  %v952_v54 = vmul.f32 0.17677669, %v914_v48  ;;  %v918_v56 = vadd.f32 %v917_v52, %v5833_v45  ;;  %v919_v58 = vpop.f32.mrb[7].mxu0  ;;  %v1058_v60 = vadd.f32 %v1057_v50, %v1018_v30 }
 0x451   :  { %v1060_v57 = vadd.f32 %v1059_v53, %v1014_v20  ;;  %v1061_v59 = vpop.f32.mrb[19].mxu1  ;;  %v920_v61 = vadd.f32 %v919_v58, %v5836_v46  ;;  %v953_v2 = vmul.f32 0.17677669, %v916_v51 }
 0x452   :  { %v1062_v62 = vadd.f32 %v1061_v59, %v1018_v30  ;;  %v954_v63 = vmul.f32 0.17677669, %v918_v56 }
 0x453   :  { %v1074_v1 = vpack.c.bf16 %v1060_v57, %v1056_v55  ;;  %v955_v3 = vmul.f32 0.17677669, %v920_v61 }
 0x454   :  { %v5844_v4 = vpack.c.bf16 %v1062_v62, %v1058_v60  ;;  %v5846_v5 = vpack.c.bf16 %v954_v63, %v952_v54 }
 0x455   :  { %1246 = vrot.lane.b32.xlu0 %v1074_v1, %s5577_s11  ;;  %4857 = vmatprep.subr.msk.bf16.mxu1 %vm1180_vm2, %v1074_v1  ;;  %v1188_v7 = vsel %vm1180_vm2, %v1074_v1, 0  ;;  %v5851_v0 = vpack.c.bf16 %v955_v3, %v953_v2  ;;  %v923_v10 = vpop.f32.mrb[8].mxu0 }
 0x456   :  { %4666 = vmatpush3.bf16.xpose.msra.mxu1 %v1188_v7  ;;  %v1065_v11 = vpop.f32.mrb[20].mxu1  ;;  %v924_v12 = vadd.f32 %v923_v10, %v5833_v45  ;;  %v925_v13 = vpop.f32.mrb[9].mxu0  ;;  %4667 = vmatprep.mubr.msk.bf16.mxu1 %vm1180_vm2, %v5846_v5 }
 0x457   :  { %v1066_v14 = vadd.f32 %v1065_v11, %v1014_v20  ;;  %v1067_v15 = vpop.f32.mrb[21].mxu1  ;;  %v926_v16 = vadd.f32 %v925_v13, %v5836_v46  ;;  %v927_v17 = vpop.f32.mrb[10].mxu0 }
 0x458   :  { %v1068_v18 = vadd.f32 %v1067_v15, %v1018_v30  ;;  %v1069_v19 = vpop.f32.mrb[22].mxu1  ;;  %v956_v22 = vmul.f32 0.17677669, %v924_v12  ;;  %v928_v23 = vadd.f32 %v927_v17, %v5833_v45  ;;  %v929_v24 = vpop.f32.mrb[11].mxu0 }
 0x459   :  { %1241 = vrot.lane.b32.xlu0 %v5846_v5, %s5577_s11  ;;  %v1070_v25 = vadd.f32 %v1069_v19, %v1014_v20  ;;  %v1071_v26 = vpop.f32.mrb[23].mxu1  ;;  %v930_v27 = vadd.f32 %v929_v24, %v5836_v46  ;;  %v957_v33 = vmul.f32 0.17677669, %v926_v16 }
 0x45a   :  { %v1072_v28 = vadd.f32 %v1071_v26, %v1018_v30  ;;  %v958_v29 = vmul.f32 0.17677669, %v928_v23 }
 0x45b   :  { %v5861_v32 = vpack.c.bf16 %v1070_v25, %v1066_v14  ;;  %v959_v34 = vmul.f32 0.17677669, %v930_v27 }
 0x45c   :  { %v5863_v35 = vpack.c.bf16 %v1072_v28, %v1068_v18  ;;  %v970_v21 = vpack.c.bf16 %v958_v29, %v956_v22 }
 0x45d   :  { %1306 = vrot.lane.b32.xlu0 %v5846_v5, %s7260_s27  ;;  %v5867_v36 = vpack.c.bf16 %v959_v34, %v957_v33  ;;  %v933_v37 = vpop.f32.mrb[12].mxu0 }
 0x45e   :  { %1243 = vrot.lane.b32.xlu1 %v970_v21, %s5577_s11  ;;  %4668 = vmatmul.mubr.msk.bf16.vlgmr.msra.gmra.mrb[24].mxu1 %vm1180_vm2, %v970_v21  ;;  %v934_v38 = vadd.f32 %v933_v37, %v5833_v45  ;;  %v935_v39 = vpop.f32.mrb[13].mxu0 }
 0x45f   :  { %v936_v40 = vadd.f32 %v935_v39, %v5836_v46  ;;  %v937_v41 = vpop.f32.mrb[14].mxu0 }
 0x460   :  { %v960_v42 = vmul.f32 0.17677669, %v934_v38  ;;  %v938_v43 = vadd.f32 %v937_v41, %v5833_v45  ;;  %v939_v44 = vpop.f32.mrb[15].mxu0 }
 0x461   :  { %1374 = vrot.lane.b32.xlu0 %v1074_v1, %s5578_s12  ;;  %v961_v20 = vmul.f32 0.17677669, %v936_v40  ;;  %v940_v47 = vadd.f32 %v939_v44, %v5836_v46 }
 0x462   :  { %1310 = vrot.lane.b32.xlu1 %v1074_v1, %s7260_s27  ;;  %v962_v31 = vmul.f32 0.17677669, %v938_v43 }
 0x463   :  { %v963_v30 = vmul.f32 0.17677669, %v940_v47 }
 0x464   :  { %v5878_v48 = vpack.c.bf16 %v962_v31, %v960_v42 }
 0x465   :  { %1372 = vrot.lane.b32.xlu0 %v970_v21, %s5578_s12  ;;  %v5880_v49 = vpack.c.bf16 %v963_v30, %v961_v20  ;;  %v943_v50 = vpop.f32.mrb[16].mxu0 }
 0x466   :  { %1308 = vrot.lane.b32.xlu1 %v970_v21, %s7260_s27  ;;  %v944_v51 = vadd.f32 %v943_v50, %v5833_v45  ;;  %v945_v52 = vpop.f32.mrb[17].mxu0  ;;  %v1441_v50 = vsel %vm1180_vm2, %v5844_v4, 0 }
 0x467   :  { %v946_v53 = vadd.f32 %v945_v52, %v5836_v46  ;;  %v947_v54 = vpop.f32.mrb[18].mxu0 }
 0x468   :  { %v964_v55 = vmul.f32 0.17677669, %v944_v51  ;;  %v948_v56 = vadd.f32 %v947_v54, %v5833_v45  ;;  %v949_v57 = vpop.f32.mrb[19].mxu0  ;;  %v1111_v45 = vld [vmem:[%s7199_s13] sm:$0x3]  ;;  %s5580_s13 = smov [#allocation16]  }
 0x469   :  { %1494 = vrot.lane.b32.xlu0 %v5851_v0, %s5577_s11  ;;  %v965_v58 = vmul.f32 0.17677669, %v946_v53  ;;  %v950_v59 = vadd.f32 %v949_v57, %v5836_v46  ;;  %v1116_v46 = vrot.slane %v1111_v45, %v5798_v8  ;;  %v1120_v1 = vrot.slane %v1111_v45, %v5803_v9 }
 0x46a   :  { %1370 = vrot.lane.b32.xlu1 %v5846_v5, %s5578_s12  ;;  %v966_v60 = vmul.f32 0.17677669, %v948_v56  ;;  %v1947_v45 = vsel %vm1180_vm2, %v5863_v35, 0 }
 0x46b   :  { %v967_v61 = vmul.f32 0.17677669, %v950_v59 }
 0x46c   :  { %v5893_v62 = vpack.c.bf16 %v966_v60, %v964_v55 }
 0x46d   :  { %1563 = vrot.lane.b32.xlu0 %v5844_v4, %s7260_s27  ;;  %v5895_v63 = vpack.c.bf16 %v967_v61, %v965_v58 }
 0x46e   :  { %1499 = vrot.lane.b32.xlu1 %v5844_v4, %s5577_s11 }
 0x471   :  { %1561 = vrot.lane.b32.xlu0 %v5867_v36, %s7260_s27 }
 0x472   :  { %1496 = vrot.lane.b32.xlu1 %v5867_v36, %s5577_s11 }
 0x475   :  { %1623 = vrot.lane.b32.xlu0 %v5851_v0, %s5578_s12 }
 0x476   :  { %1559 = vrot.lane.b32.xlu1 %v5851_v0, %s7260_s27 }
 0x479   :  { %1752 = vrot.lane.b32.xlu0 %v5861_v32, %s5577_s11 }
 0x47a   :  { %1627 = vrot.lane.b32.xlu1 %v5844_v4, %s5578_s12 }
 0x47d   :  { %1816 = vrot.lane.b32.xlu0 %v5861_v32, %s7260_s27 }
 0x47e   :  { %1625 = vrot.lane.b32.xlu1 %v5867_v36, %s5578_s12 }
 0x481   :  { %1880 = vrot.lane.b32.xlu0 %v5861_v32, %s5578_s12 }
 0x482   :  { %1747 = vrot.lane.b32.xlu1 %v5878_v48, %s5577_s11 }
 0x485   :  { %2000 = vrot.lane.b32.xlu0 %v5880_v49, %s5577_s11 }
 0x486   :  { %1812 = vrot.lane.b32.xlu1 %v5878_v48, %s7260_s27 }
 0x489   :  { %1814 = vrot.lane.b32.xlu0 %v5893_v62, %s7260_s27 }
 0x48a   :  { %1749 = vrot.lane.b32.xlu1 %v5893_v62, %s5577_s11 }
 0x48d   :  { %1878 = vrot.lane.b32.xlu0 %v5893_v62, %s5578_s12 }
 0x48e   :  { %1876 = vrot.lane.b32.xlu1 %v5878_v48, %s5578_s12  ;;  %v1157_v2 = vpop.f32.mrb[20].mxu0 }
 0x48f   :  { %v1158_v3 = vadd.f32 %v1157_v2, %v1116_v46  ;;  %v1159_v5 = vpop.f32.mrb[21].mxu0 }
 0x490   :  { %v1160_v7 = vadd.f32 %v1159_v5, %v1120_v1  ;;  %v1161_v10 = vpop.f32.mrb[22].mxu0 }
 0x491   :  { %2065 = vrot.lane.b32.xlu0 %v5880_v49, %s7260_s27  ;;  %v1162_v11 = vadd.f32 %v1161_v10, %v1116_v46  ;;  %v1163_v12 = vpop.f32.mrb[23].mxu0 }
 0x492   :  { %2005 = vrot.lane.b32.xlu1 %v5863_v35, %s5577_s11  ;;  %v1164_v13 = vadd.f32 %v1163_v12, %v1120_v1 }
 0x493   :  { %v5940_v14 = vpack.c.bf16 %v1162_v11, %v1158_v3 }
 0x494   :  { %v5944_v15 = vpack.c.bf16 %v1164_v13, %v1160_v7 }
 0x495   :  { %2002 = vrot.lane.b32.xlu0 %v5895_v63, %s5577_s11 }
 0x496   :  { %7265 = vst [vmem:[#allocation30_spill] sm:$0xff] %v5944_v15  ;;  %2069 = vrot.lane.b32.xlu1 %v5863_v35, %s7260_s27  ;;  %v1167_v16 = vpop.f32.mrb[24].mxu0 }
 0x497   :  { %v1168_v17 = vadd.f32 %v1167_v16, %v1116_v46  ;;  %v1169_v18 = vpop.f32.mrb[25].mxu0 }
 0x498   :  { %v1170_v19 = vadd.f32 %v1169_v18, %v1120_v1  ;;  %v1171_v22 = vpop.f32.mrb[26].mxu0 }
 0x499   :  { %2129 = vrot.lane.b32.xlu0 %v5880_v49, %s5578_s12  ;;  %v1172_v23 = vadd.f32 %v1171_v22, %v1116_v46  ;;  %v1173_v25 = vpop.f32.mrb[27].mxu0 }
 0x49a   :  { %2133 = vrot.lane.b32.xlu1 %v5863_v35, %s5578_s12  ;;  %v1174_v26 = vadd.f32 %v1173_v25, %v1120_v1 }
 0x49b   :  { %v5952_v24 = vpack.c.bf16 %v1172_v23, %v1168_v17  ;;  %v5579_v23 = vmov -1e+30  }
 0x49c   :  { %v5974_v27 = vpack.c.bf16 %v1174_v26, %v1170_v19  ;;  %v2194_v19 = vand.u32 127, %v659_v6 }
 0x49d   :  { %7266 = vst [vmem:[#allocation31_spill] sm:$0xff] %v5952_v24  ;;  %3112 = vrot.lane.b32.xlu0 %v5940_v14, %s7260_s27 }
 0x49e   :  { %2067 = vrot.lane.b32.xlu1 %v5895_v63, %s7260_s27  ;;  %7267 = vst [vmem:[#allocation32_spill] sm:$0xff] %v5974_v27  ;;  %vm2195_vm3 = vcmp.lt.s32.totalorder %v2194_v19, 15 }
 0x49f   :  { %v6056_v25 = vsel %vm2195_vm3, 0.0, %v5579_v23 }
 0x4a1   :  { %3170 = vrot.lane.b32.xlu0 %v5940_v14, %s5578_s12 }
 0x4a2   :  { %2131 = vrot.lane.b32.xlu1 %v5895_v63, %s5578_s12 }
 0x4a5   :  { %3342 = vrot.lane.b32.xlu0 %v5944_v15, %s7260_s27 }
 0x4a6   :  { %3054 = vrot.lane.b32.xlu1 %v5940_v14, %s5577_s11 }
 0x4a9   :  { %3636 = vrot.lane.b32.xlu0 %v5952_v24, %s5577_s11 }
 0x4aa   :  { %3284 = vrot.lane.b32.xlu1 %v5944_v15, %s5577_s11 }
 0x4ae   :  { %3400 = vrot.lane.b32.xlu1 %v5944_v15, %s5578_s12 }
 0x4b2   :  { %3694 = vrot.lane.b32.xlu1 %v5952_v24, %s7260_s27 }
 0x4c7   :  { %v1247_v28 = vpop.permute.xlu0 %1246 }
 0x4c8   :  { %4858 = vmatprep.subr.msk.bf16.mxu1 %vm1180_vm2, %v1247_v28  ;;  %v1255_v29 = vsel %vm1180_vm2, %v1247_v28, 0 }
 0x4c9   :  { %4672 = vmatpush3.bf16.xpose.msra.mxu1 %v1255_v29 }
 0x4cb   :  { %v1242_v33 = vpop.permute.xlu0 %1241 }
 0x4cc   :  { %4673 = vmatprep.mubr.msk.bf16.mxu1 %vm1180_vm2, %v1242_v33 }
 0x4cf   :  { %v1307_v34 = vpop.permute.xlu0 %1306 }
 0x4d0   :  { %v1244_v21 = vpop.permute.xlu1 %1243 }
 0x4d1   :  { %4674 = vmatmul.mubr.msk.bf16.vlgmr.msra.gmra.mrb[28].mxu1 %vm1180_vm2, %v1244_v21 }
 0x4d2   :  { %4679 = vmatprep.mubr.msk.bf16.mxu1 %vm1180_vm2, %v1307_v34 }
 0x4d3   :  { %v1375_v37 = vpop.permute.xlu0 %1374 }
 0x4d4   :  { %v1311_v38 = vpop.permute.xlu1 %1310  ;;  %v1383_v44 = vsel %vm1180_vm2, %v1375_v37, 0 }
 0x4d5   :  { %4859 = vmatprep.subr.msk.bf16.mxu1 %vm1180_vm2, %v1311_v38  ;;  %v1319_v39 = vsel %vm1180_vm2, %v1311_v38, 0 }
 0x4d6   :  { %4678 = vmatpush3.bf16.xpose.msra.mxu1 %v1319_v39 }
 0x4d7   :  { %v1373_v40 = vpop.permute.xlu0 %1372  ;;  %4860 = vmatprep.subr.msk.bf16.mxu1 %vm1180_vm2, %v1375_v37 }
 0x4d8   :  { %v1309_v41 = vpop.permute.xlu1 %1308 }
 0x4db   :  { %v1495_v42 = vpop.permute.xlu0 %1494 }
 0x4dc   :  { %v1371_v43 = vpop.permute.xlu1 %1370 }
 0x4dd   :  { %4680 = vmatmul.mubr.msk.bf16.vlgmr.msra.gmra.mrb[32].mxu1 %vm1180_vm2, %v1309_v41 }
 0x4de   :  { %4684 = vmatpush3.bf16.xpose.msra.mxu1 %v1383_v44  ;;  %4685 = vmatprep.mubr.msk.bf16.mxu1 %vm1180_vm2, %v1371_v43 }
 0x4df   :  { %v1564_v20 = vpop.permute.xlu0 %1563  ;;  %4861 = vmatprep.subr.msk.bf16.mxu1 %vm1180_vm2, %v5844_v4 }
 0x4e0   :  { %v1500_v47 = vpop.permute.xlu1 %1499 }
 0x4e1   :  { %v1508_v55 = vsel %vm1180_vm2, %v1500_v47, 0 }
 0x4e3   :  { %v1562_v31 = vpop.permute.xlu0 %1561 }
 0x4e4   :  { %v1497_v30 = vpop.permute.xlu1 %1496 }
 0x4e5   :  { %4686 = vmatmul.mubr.msk.bf16.vlgmr.msra.gmra.mrb[36].mxu1 %vm1180_vm2, %v1373_v40 }
 0x4e6   :  { %4690 = vmatpush3.bf16.xpose.msra.mxu1 %v1441_v50  ;;  %4691 = vmatprep.mubr.msk.bf16.mxu1 %vm1180_vm2, %v5851_v0 }
 0x4e7   :  { %v1624_v51 = vpop.permute.xlu0 %1623  ;;  %4862 = vmatprep.subr.msk.bf16.mxu1 %vm1180_vm2, %v1500_v47 }
 0x4e8   :  { %v1560_v52 = vpop.permute.xlu1 %1559 }
 0x4eb   :  { %v1753_v53 = vpop.permute.xlu0 %1752 }
 0x4ec   :  { %v1628_v54 = vpop.permute.xlu1 %1627 }
 0x4ed   :  { %4692 = vmatmul.mubr.msk.bf16.vlgmr.msra.gmra.mrb[40].mxu1 %vm1180_vm2, %v5867_v36  ;;  %v1572_v36 = vsel %vm1180_vm2, %v1564_v20, 0  ;;  %v1636_v1 = vsel %vm1180_vm2, %v1628_v54, 0 }
 0x4ee   :  { %4696 = vmatpush3.bf16.xpose.msra.mxu1 %v1508_v55  ;;  %4697 = vmatprep.mubr.msk.bf16.mxu1 %vm1180_vm2, %v1495_v42 }
 0x4ef   :  { %v1817_v56 = vpop.permute.xlu0 %1816  ;;  %4863 = vmatprep.subr.msk.bf16.mxu1 %vm1180_vm2, %v1564_v20 }
 0x4f0   :  { %4867 = vmatprep.subr.msk.bf16.mxu0 %vm1180_vm2, %v1817_v56  ;;  %v1825_v4 = vsel %vm1180_vm2, %v1817_v56, 0  ;;  %v1626_v0 = vpop.permute.xlu1 %1625 }
 0x4f1   :  { %4726 = vmatpush3.bf16.xpose.msra.mxu0 %v1825_v4 }
 0x4f2   :  { %4869 = vmatprep.subr.msk.bf16.mxu0 %vm1180_vm2, %v5863_v35 }
 0x4f3   :  { %v1881_v57 = vpop.permute.xlu0 %1880 }
 0x4f4   :  { %v1748_v58 = vpop.permute.xlu1 %1747  ;;  %v1889_v11 = vsel %vm1180_vm2, %v1881_v57, 0 }
 0x4f5   :  { %4698 = vmatmul.mubr.msk.bf16.vlgmr.msra.gmra.mrb[44].mxu1 %vm1180_vm2, %v1497_v30 }
 0x4f6   :  { %4702 = vmatpush3.bf16.xpose.msra.mxu1 %v1572_v36  ;;  %4703 = vmatprep.mubr.msk.bf16.mxu1 %vm1180_vm2, %v1560_v52 }
 0x4f7   :  { %v2001_v59 = vpop.permute.xlu0 %2000  ;;  %4864 = vmatprep.subr.msk.bf16.mxu1 %vm1180_vm2, %v1628_v54 }
 0x4f8   :  { %v1813_v60 = vpop.permute.xlu1 %1812 }
 0x4f9   :  { %4727 = vmatprep.mubr.msk.bf16.mxu0 %vm1180_vm2, %v1813_v60 }
 0x4fb   :  { %v1815_v61 = vpop.permute.xlu0 %1814 }
 0x4fc   :  { %4728 = vmatmul.mubr.msk.bf16.vlgmr.msra.gmra.mrb[28].mxu0 %vm1180_vm2, %v1815_v61  ;;  %v1750_v46 = vpop.permute.xlu1 %1749 }
 0x4fd   :  { %4738 = vmatpush3.bf16.xpose.msra.mxu0 %v1947_v45  ;;  %4739 = vmatprep.mubr.msk.bf16.mxu0 %vm1180_vm2, %v5880_v49  ;;  %v1694_v49 = vsel %vm1180_vm2, %v5861_v32, 0 }
 0x4fe   :  { %4704 = vmatmul.mubr.msk.bf16.vlgmr.msra.gmra.mrb[48].mxu1 %vm1180_vm2, %v1562_v31 }
 0x4ff   :  { %v1879_v2 = vpop.permute.xlu0 %1878  ;;  %4708 = vmatpush3.bf16.xpose.msra.mxu1 %v1636_v1  ;;  %4709 = vmatprep.mubr.msk.bf16.mxu1 %vm1180_vm2, %v1624_v51 }
 0x500   :  { %4865 = vmatprep.subr.msk.bf16.mxu1 %vm1180_vm2, %v5861_v32  ;;  %v1877_v3 = vpop.permute.xlu1 %1876  ;;  %v1761_v32 = vsel %vm1180_vm2, %v1753_v53, 0 }
 0x503   :  { %v2066_v5 = vpop.permute.xlu0 %2065 }
 0x504   :  { %4740 = vmatmul.mubr.msk.bf16.vlgmr.msra.gmra.mrb[32].mxu0 %vm1180_vm2, %v5895_v63  ;;  %v2006_v35 = vpop.permute.xlu1 %2005 }
 0x505   :  { %4751 = vmatprep.mubr.msk.bf16.mxu0 %vm1180_vm2, %v2066_v5  ;;  %v2014_v12 = vsel %vm1180_vm2, %v2006_v35, 0 }
 0x506   :  { %4710 = vmatmul.mubr.msk.bf16.vlgmr.msra.gmra.mrb[52].mxu1 %vm1180_vm2, %v1626_v0 }
 0x507   :  { %4714 = vmatpush3.bf16.xpose.msra.mxu1 %v1694_v49  ;;  %4715 = vmatprep.mubr.msk.bf16.mxu1 %vm1180_vm2, %v5878_v48 }
 0x508   :  { %4866 = vmatprep.subr.msk.bf16.mxu1 %vm1180_vm2, %v1753_v53  ;;  %v2070_v7 = vpop.permute.xlu1 %2069 }
 0x509   :  { %4871 = vmatprep.subr.msk.bf16.mxu0 %vm1180_vm2, %v2070_v7  ;;  %v2078_v10 = vsel %vm1180_vm2, %v2070_v7, 0 }
 0x50a   :  { %4750 = vmatpush3.bf16.xpose.msra.mxu0 %v2078_v10 }
 0x50b   :  { %4761 = vmatprep.subr.bf16.mxu0 %v5940_v14 }
 0x50c   :  { %v2134_v63 = vpop.permute.xlu1 %2133 }
 0x50d   :  { %v2142_v16 = vsel %vm1180_vm2, %v2134_v63, 0 }
 0x50e   :  { %4716 = vmatmul.mubr.msk.bf16.vlgmr.msra.gmra.mrb[56].mxu1 %vm1180_vm2, %v5893_v62  ;;  %v2003_v62 = vpop.permute.xlu0 %2002 }
 0x50f   :  { %4720 = vmatpush3.bf16.xpose.msra.mxu1 %v1761_v32  ;;  %4721 = vmatprep.mubr.msk.bf16.mxu1 %vm1180_vm2, %v1748_v58 }
 0x510   :  { %4868 = vmatprep.subr.msk.bf16.mxu1 %vm1180_vm2, %v1881_v57  ;;  %v2068_v48 = vpop.permute.xlu1 %2067 }
 0x511   :  { %4752 = vmatmul.mubr.msk.bf16.vlgmr.msra.gmra.mrb[36].mxu0 %vm1180_vm2, %v2068_v48 }
 0x512   :  { %4762 = vmatpush3.bf16.msra.mxu0 %v5940_v14  ;;  %v2130_v13 = vpop.permute.xlu0 %2129 }
 0x514   :  { %v2132_v14 = vpop.permute.xlu1 %2131 }
 0x516   :  { %4722 = vmatmul.mubr.msk.bf16.vlgmr.msra.gmra.mrb[60].mxu1 %vm1180_vm2, %v1750_v46  ;;  %v6049_v18 = vpop.permute.xlu0 %3112 }
 0x517   :  { %4732 = vmatpush3.bf16.xpose.msra.mxu1 %v1889_v11  ;;  %4733 = vmatprep.mubr.msk.bf16.mxu1 %vm1180_vm2, %v1877_v3  ;;  %7268 = vst [vmem:[#allocation33_spill] sm:$0xff] %v6049_v18 }
 0x518   :  { %4870 = vmatprep.subr.msk.bf16.mxu1 %vm1180_vm2, %v2006_v35  ;;  %v3055_v17 = vpop.permute.xlu1 %3054  ;;  %4773 = vmatprep.subr.bf16.mxu0 %v6049_v18 }
 0x51a   :  { %v6054_v22 = vpop.permute.xlu0 %3170 }
 0x51b   :  { %7269 = vst [vmem:[#allocation34_spill] sm:$0xff] %v6054_v22 }
 0x51e   :  { %4734 = vmatmul.mubr.msk.bf16.vlgmr.msra.gmra.mrb[64].mxu1 %vm1180_vm2, %v1879_v2 }
 0x51f   :  { %4744 = vmatpush3.bf16.xpose.msra.mxu1 %v2014_v12  ;;  %4745 = vmatprep.mubr.msk.bf16.mxu1 %vm1180_vm2, %v2001_v59 }
 0x520   :  { %4872 = vmatprep.subr.msk.bf16.mxu1 %vm1180_vm2, %v2134_v63 }
 0x526   :  { %4746 = vmatmul.mubr.msk.bf16.vlgmr.msra.gmra.mrb[68].mxu1 %vm1180_vm2, %v2003_v62 }
 0x527   :  { %4756 = vmatpush3.bf16.xpose.msra.mxu1 %v2142_v16  ;;  %4757 = vmatprep.mubr.msk.bf16.mxu1 %vm1180_vm2, %v2130_v13 }
 0x528   :  { %4767 = vmatprep.subr.bf16.mxu1 %v3055_v17 }
 0x52e   :  { %4758 = vmatmul.mubr.msk.bf16.vlgmr.msra.gmra.mrb[72].mxu1 %vm1180_vm2, %v2132_v14 }
 0x52f   :  { %4768 = vmatpush3.bf16.msra.mxu1 %v3055_v17 }
 0x530   :  { %4779 = vmatprep.subr.bf16.mxu1 %v6054_v22 }
 0x531   :  { %v4669_v26 = vpop.f32.mrb[24].mxu1 }
 0x532   :  { %v6060_v28 = vadd.f32 %v4669_v26, %v6056_v25  ;;  %v1224_v29 = vpop.f32.mrb[25].mxu1 }
 0x533   :  { %v4670_v33 = vpop.f32.mrb[26].mxu1  ;;  %v6063_v6 = vadd.f32 %v6056_v25, %v1224_v29 }
 0x534   :  { %v1227_v34 = vpop.f32.mrb[27].mxu1  ;;  %v2268_v21 = vsel %vm2261_vm4, %v6060_v28, -inf  ;;  %v6073_v39 = vadd.f32 %v4670_v33, %v6056_v25 }
 0x535   :  { %v6068_v37 = vadd.f32 %v6056_v25, %v1227_v34  ;;  %2269 = vmax.xlane.f32.xlu0 %v2268_v21  ;;  %v2262_v40 = vsel %vm2261_vm4, %v6063_v6, -inf }
 0x536   :  { %v2271_v41 = vsel %vm2261_vm4, %v6073_v39, -inf }
 0x537   :  { %v2265_v38 = vsel %vm2261_vm4, %v6068_v37, -inf }
 0x538   :  { %2266 = vmax.xlane.f32.xlu1 %v2265_v38 }
 0x539   :  { %2263 = vmax.xlane.f32.xlu0 %v2262_v40 }
 0x53d   :  { %2272 = vmax.xlane.f32.xlu0 %v2271_v41 }
 0x5a4   :  { %v4675_v42 = vpop.f32.mrb[28].mxu1 }
 0x5a5   :  { %v6080_v43 = vadd.f32 %v4675_v42, %v6056_v25  ;;  %v1291_v44 = vpop.f32.mrb[29].mxu1 }
 0x5a6   :  { %v4676_v20 = vpop.f32.mrb[30].mxu1  ;;  %v6083_v47 = vadd.f32 %v6056_v25, %v1291_v44 }
 0x5a7   :  { %v6086_v31 = vadd.f32 %v4676_v20, %v6056_v25  ;;  %v2280_v30 = vsel %vm2261_vm4, %v6080_v43, -inf  ;;  %v1294_v50 = vpop.f32.mrb[31].mxu1 }
 0x5a8   :  { %2281 = vmax.xlane.f32.xlu1 %v2280_v30  ;;  %v6091_v51 = vadd.f32 %v6056_v25, %v1294_v50  ;;  %v2274_v53 = vsel %vm2261_vm4, %v6083_v47, -inf }
 0x5a9   :  { %v2283_v52 = vsel %vm2261_vm4, %v6086_v31, -inf }
 0x5aa   :  { %2284 = vmax.xlane.f32.xlu0 %v2283_v52  ;;  %v2277_v54 = vsel %vm2261_vm4, %v6091_v51, -inf }
 0x5ac   :  { %2275 = vmax.xlane.f32.xlu1 %v2274_v53 }
 0x5ae   :  { %2278 = vmax.xlane.f32.xlu0 %v2277_v54 }
 0x5b0   :  { %v4681_v55 = vpop.f32.mrb[32].mxu1 }
 0x5b1   :  { %v6100_v56 = vadd.f32 %v4681_v55, %v6056_v25  ;;  %v1355_v4 = vpop.f32.mrb[33].mxu1 }
 0x5b2   :  { %v4682_v0 = vpop.f32.mrb[34].mxu1  ;;  %v6103_v57 = vadd.f32 %v6056_v25, %v1355_v4 }
 0x5b3   :  { %v6106_v58 = vadd.f32 %v4682_v0, %v6056_v25  ;;  %v1358_v36 = vpop.f32.mrb[35].mxu1  ;;  %v2292_v59 = vsel %vm2261_vm4, %v6100_v56, -inf }
 0x5b4   :  { %2293 = vmax.xlane.f32.xlu1 %v2292_v59  ;;  %v6111_v60 = vadd.f32 %v6056_v25, %v1358_v36  ;;  %v2286_v45 = vsel %vm2261_vm4, %v6103_v57, -inf }
 0x5b5   :  { %v2295_v61 = vsel %vm2261_vm4, %v6106_v58, -inf }
 0x5b6   :  { %2296 = vmax.xlane.f32.xlu0 %v2295_v61  ;;  %v2289_v3 = vsel %vm2261_vm4, %v6111_v60, -inf }
 0x5b8   :  { %2287 = vmax.xlane.f32.xlu1 %v2286_v45  ;;  %v4687_v46 = vpop.f32.mrb[36].mxu1 }
 0x5b9   :  { %v6118_v1 = vadd.f32 %v4687_v46, %v6056_v25  ;;  %v1419_v2 = vpop.f32.mrb[37].mxu1  ;;  %v6182_v46 = vpop.permute.xlu0 %3342 }
 0x5ba   :  { %2290 = vmax.xlane.f32.xlu0 %v2289_v3  ;;  %v4688_v5 = vpop.f32.mrb[38].mxu1  ;;  %v6143_v29 = vadd.f32 %v6056_v25, %v1419_v2  ;;  %7270 = vst [vmem:[#allocation35_spill] sm:$0xff] %v6182_v46 }
 0x5bb   :  { %v6123_v35 = vadd.f32 %v4688_v5, %v6056_v25  ;;  %v1422_v49 = vpop.f32.mrb[39].mxu1  ;;  %v2304_v7 = vsel %vm2261_vm4, %v6118_v1, -inf }
 0x5bc   :  { %2305 = vmax.xlane.f32.xlu1 %v2304_v7  ;;  %v6155_v41 = vadd.f32 %v6056_v25, %v1422_v49  ;;  %v2298_v30 = vsel %vm2261_vm4, %v6143_v29, -inf }
 0x5bd   :  { %v2307_v10 = vsel %vm2261_vm4, %v6123_v35, -inf }
 0x5be   :  { %2308 = vmax.xlane.f32.xlu0 %v2307_v10  ;;  %v2301_v54 = vsel %vm2261_vm4, %v6155_v41, -inf  ;;  %v6196_v10 = vpop.permute.xlu0 %3636 }
 0x5bf   :  { %7271 = vst [vmem:[#allocation36_spill] sm:$0xff] %v6196_v10 }
 0x5c0   :  { %v4693_v63 = vpop.f32.mrb[40].mxu1 }
 0x5c1   :  { %v1477_v32 = vpop.f32.mrb[41].mxu1  ;;  %v6174_v0 = vadd.f32 %v4693_v63, %v6056_v25 }
 0x5c2   :  { %v4694_v48 = vpop.f32.mrb[42].mxu1 }
 0x5c3   :  { %v1480_v11 = vpop.f32.mrb[43].mxu1  ;;  %v6185_v2 = vadd.f32 %v4694_v48, %v6056_v25  ;;  %v2316_v7 = vsel %vm2261_vm4, %v6174_v0, -inf }
 0x5c5   :  { %v2319_v48 = vsel %vm2261_vm4, %v6185_v2, -inf }
 0x5c8   :  { %v6129_v62 = vpop.f32.mrb[44].mxu1 }
 0x5c9   :  { %v6131_v12 = vpop.f32.mrb[45].mxu1 }
 0x5ca   :  { %v6133_v13 = vpop.f32.mrb[46].mxu1 }
 0x5cb   :  { %v6135_v14 = vpop.f32.mrb[47].mxu1 }
 0x5cf   :  { %v4729_v16 = vpop.f32.mrb[28].mxu0 }
 0x5d0   :  { %v6138_v17 = vadd.f32 %v4729_v16, %v6056_v25  ;;  %v1861_v19 = vpop.f32.mrb[29].mxu0 }
 0x5d1   :  { %v6140_v23 = vpop.f32.mrb[48].mxu1  ;;  %v4730_v26 = vpop.f32.mrb[30].mxu0  ;;  %v6162_v20 = vadd.f32 %v6056_v25, %v1861_v19  ;;  %v6206_v19 = vadd.f32 %v6056_v25, %v1477_v32 }
 0x5d2   :  { %v6146_v33 = vadd.f32 %v4730_v26, %v6056_v25  ;;  %v6148_v34 = vpop.f32.mrb[49].mxu1  ;;  %v1864_v21 = vpop.f32.mrb[31].mxu0  ;;  %v2388_v38 = vsel %vm2261_vm4, %v6138_v17, -inf }
 0x5d3   :  { %2389 = vmax.xlane.f32.xlu1 %v2388_v38  ;;  %v6152_v40 = vpop.f32.mrb[50].mxu1  ;;  %v6167_v52 = vadd.f32 %v6056_v25, %v1864_v21  ;;  %v2382_v61 = vsel %vm2261_vm4, %v6162_v20, -inf  ;;  %v6221_v32 = vpop.permute.xlu1 %3284 }
 0x5d4   :  { %v6157_v42 = vpop.f32.mrb[51].mxu1  ;;  %v2391_v44 = vsel %vm2261_vm4, %v6146_v33, -inf  ;;  %7272 = vst [vmem:[#allocation37_spill] sm:$0xff] %v6221_v32 }
 0x5d5   :  { %2392 = vmax.xlane.f32.xlu0 %v2391_v44  ;;  %v2385_v5 = vsel %vm2261_vm4, %v6167_v52, -inf  ;;  %v2270_v44 = vpop.xlane.xlu0 %2269 }
 0x5d6   :  { %v2456_v15 = vsub.f32 %v6060_v28, %v2270_v44  ;;  %v6283_v28 = vadd.f32 %v6056_v25, %v6135_v14 }
 0x5d7   :  { %v4741_v50 = vpop.f32.mrb[32].mxu0  ;;  %2299 = vmax.xlane.f32.xlu1 %v2298_v30  ;;  %v6215_v30 = vadd.f32 %v6056_v25, %v1480_v11  ;;  %v6245_v46 = vpop.permute.xlu1 %3400 }
 0x5d8   :  { %v1983_v53 = vpop.f32.mrb[33].mxu0  ;;  %v6192_v49 = vadd.f32 %v4741_v50, %v6056_v25  ;;  %7274 = vst [vmem:[#allocation39_spill] sm:$0xff] %v6245_v46 }
 0x5d9   :  { %v4742_v55 = vpop.f32.mrb[34].mxu0  ;;  %2302 = vmax.xlane.f32.xlu0 %v2301_v54  ;;  %v6171_v4 = vpop.f32.mrb[52].mxu1  ;;  %v2313_v9 = vsel %vm2261_vm4, %v6215_v30, -inf }
 0x5da   :  { %v6176_v36 = vpop.f32.mrb[53].mxu1  ;;  %v1986_v59 = vpop.f32.mrb[35].mxu0  ;;  %v6199_v63 = vadd.f32 %v4742_v55, %v6056_v25  ;;  %v2412_v21 = vsel %vm2261_vm4, %v6192_v49, -inf }
 0x5db   :  { %2383 = vmax.xlane.f32.xlu1 %v2382_v61  ;;  %v6180_v45 = vpop.f32.mrb[54].mxu1  ;;  %v6224_v61 = vadd.f32 %v6056_v25, %v1983_v53  ;;  %v6229_v11 = vadd.f32 %v6056_v25, %v1986_v59  ;;  %v2264_v8 = vpop.xlane.xlu0 %2263  ;;  %v6237_v53 = vadd.f32 %v6129_v62, %v6056_v25 }
 0x5dc   :  { %v6187_v3 = vpop.f32.mrb[55].mxu1  ;;  %v2415_v54 = vsel %vm2261_vm4, %v6199_v63, -inf  ;;  %v6260_v27 = vpop.permute.xlu1 %3694 }
 0x5dd   :  { %2386 = vmax.xlane.f32.xlu0 %v2385_v5  ;;  %7273 = vst [vmem:[#allocation38_spill] sm:$0xff] %v6229_v11  ;;  %v2409_v62 = vsel %vm2261_vm4, %v6229_v11, -inf  ;;  %7277 = vst [vmem:[#allocation42_spill] sm:$0xff] %v6260_v27  ;;  %v2454_v11 = vsub.f32 %v6063_v6, %v2264_v8  ;;  %v6305_v6 = vadd.f32 %v6140_v23, %v6056_v25 }
 0x5df   :  { %2317 = vmax.xlane.f32.xlu1 %v2316_v7  ;;  %v2310_v7 = vsel %vm2261_vm4, %v6206_v19, -inf  ;;  %v2273_v46 = vpop.xlane.xlu0 %2272 }
 0x5e1   :  { %2320 = vmax.xlane.f32.xlu0 %v2319_v48  ;;  %v6203_v16 = vpop.f32.mrb[56].mxu1 }
 0x5e2   :  { %v6208_v26 = vpop.f32.mrb[57].mxu1 }
 0x5e3   :  { %2413 = vmax.xlane.f32.xlu1 %v2412_v21  ;;  %v6212_v38 = vpop.f32.mrb[58].mxu1 }
 0x5e4   :  { %v6217_v50 = vpop.f32.mrb[59].mxu1  ;;  %v4753_v55 = vpop.f32.mrb[36].mxu0 }
 0x5e5   :  { %2416 = vmax.xlane.f32.xlu0 %v2415_v54  ;;  %v2114_v5 = vpop.f32.mrb[37].mxu0  ;;  %v6256_v22 = vadd.f32 %v4753_v55, %v6056_v25  ;;  %v6272_v55 = vadd.f32 %v6056_v25, %v6131_v12 }
 0x5e6   :  { %v4754_v48 = vpop.f32.mrb[38].mxu0 }
 0x5e7   :  { %2311 = vmax.xlane.f32.xlu1 %v2310_v7  ;;  %v2117_v21 = vpop.f32.mrb[39].mxu0  ;;  %v2406_v7 = vsel %vm2261_vm4, %v6224_v61, -inf  ;;  %7276 = vst [vmem:[#allocation41_spill] sm:$0xff] %v6256_v22  ;;  %v6263_v24 = vadd.f32 %v4754_v48, %v6056_v25  ;;  %v2457_v48 = vsub.f32 %v6073_v39, %v2273_v46  ;;  %v2322_v39 = vsel %vm2261_vm4, %v6272_v55, -inf }
 0x5e8   :  { %v6297_v14 = vadd.f32 %v6056_v25, %v2117_v21 }
 0x5e9   :  { %2314 = vmax.xlane.f32.xlu0 %v2313_v9  ;;  %v6233_v54 = vpop.f32.mrb[60].mxu1  ;;  %v6249_v9 = vadd.f32 %v6133_v13, %v6056_v25  ;;  %7278 = vst [vmem:[#allocation43_spill] sm:$0xff] %v6263_v24  ;;  %v2439_v12 = vsel %vm2261_vm4, %v6263_v24, -inf  ;;  %v2325_v24 = vsel %vm2261_vm4, %v6283_v28, -inf }
 0x5ea   :  { %v6239_v10 = vpop.f32.mrb[61].mxu1  ;;  %v2433_v23 = vsel %vm2261_vm4, %v6297_v14, -inf }
 0x5eb   :  { %2407 = vmax.xlane.f32.xlu1 %v2406_v7  ;;  %v6243_v59 = vpop.f32.mrb[62].mxu1  ;;  %7275 = vst [vmem:[#allocation40_spill] sm:$0xff] %v6249_v9  ;;  %v2328_v7 = vsel %vm2261_vm4, %v6237_v53, -inf  ;;  %v2331_v13 = vsel %vm2261_vm4, %v6249_v9, -inf  ;;  %v2267_v9 = vpop.xlane.xlu1 %2266 }
 0x5ec   :  { %v6251_v32 = vpop.f32.mrb[63].mxu1  ;;  %v2455_v46 = vsub.f32 %v6068_v37, %v2267_v9 }
 0x5ed   :  { %2410 = vmax.xlane.f32.xlu0 %v2409_v62 }
 0x5ee   :  { %v2520_v9 = vmul.f32 1.442695, %v2455_v46 }
 0x5ef   :  { %2329 = vmax.xlane.f32.xlu1 %v2328_v7  ;;  %v2436_v7 = vsel %vm2261_vm4, %v6256_v22, -inf  ;;  %v6291_v22 = vadd.f32 %v6056_v25, %v2114_v5 }
 0x5f1   :  { %2332 = vmax.xlane.f32.xlu0 %v2331_v13  ;;  %v6268_v62 = vpop.f32.mrb[64].mxu1  ;;  %v2522_v13 = vmul.f32 1.442695, %v2456_v15  ;;  %v2518_v15 = vmul.f32 1.442695, %v2454_v11  ;;  %v2430_v37 = vsel %vm2261_vm4, %v6291_v22, -inf  ;;  %v6315_v11 = vadd.f32 %v6152_v40, %v6056_v25 }
 0x5f2   :  { %v6274_v18 = vpop.f32.mrb[65].mxu1  ;;  %v6329_v40 = vadd.f32 %v6056_v25, %v6157_v42 }
 0x5f3   :  { %2437 = vmax.xlane.f32.xlu1 %v2436_v7  ;;  %v6279_v27 = vpop.f32.mrb[66].mxu1  ;;  %v2524_v7 = vmul.f32 1.442695, %v2457_v48  ;;  %5074 = vpow2.f32 %v2522_v13  ;;  %7279 = vst [vmem:[#allocation44_spill] sm:$0xff] %v6315_v11  ;;  %v6323_v48 = vadd.f32 %v6056_v25, %v6148_v34  ;;  %v2343_v13 = vsel %vm2261_vm4, %v6315_v11, -inf }
 0x5f4   :  { %v6285_v44 = vpop.f32.mrb[67].mxu1  ;;  %7280 = vst [vmem:[#allocation45_spill] sm:$0xff] %v6329_v40  ;;  %v2337_v42 = vsel %vm2261_vm4, %v6329_v40, -inf  ;;  %v6359_v11 = vadd.f32 %v6171_v4, %v6056_v25 }
 0x5f5   :  { %2440 = vmax.xlane.f32.xlu0 %v2439_v12  ;;  %5076 = vpow2.f32 %v2524_v7  ;;  %v2340_v12 = vsel %vm2261_vm4, %v6305_v6, -inf  ;;  %v2334_v34 = vsel %vm2261_vm4, %v6323_v48, -inf }
 0x5f6   :  { %5078 = vpow2.f32 %v2518_v15  ;;  %v2352_v4 = vsel %vm2261_vm4, %v6359_v11, -inf }
 0x5f7   :  { %2323 = vmax.xlane.f32.xlu1 %v2322_v39  ;;  %5080 = vpow2.f32 %v2520_v9 }
 0x5f9   :  { %2326 = vmax.xlane.f32.xlu0 %v2325_v24  ;;  %v6301_v8 = vpop.f32.mrb[68].mxu1 }
 0x5fa   :  { %v6307_v5 = vpop.f32.mrb[69].mxu1 }
 0x5fb   :  { %2431 = vmax.xlane.f32.xlu1 %v2430_v37  ;;  %v6311_v21 = vpop.f32.mrb[70].mxu1 }
 0x5fc   :  { %v6317_v24 = vpop.f32.mrb[71].mxu1 }
 0x5fd   :  { %2434 = vmax.xlane.f32.xlu0 %v2433_v23  ;;  %v6339_v7 = vpop.eup %5074 }
 0x5fe   :  { %7281 = vst [vmem:[#allocation46_spill] sm:$0xff] %v6339_v7  ;;  %v2652_v23 = vsel %vm2261_vm4, %v6339_v7, 0.0  ;;  %v6371_v7 = vadd.f32 %v6056_v25, %v6176_v36 }
 0x5ff   :  { %2341 = vmax.xlane.f32.xlu1 %v2340_v12  ;;  %v6347_v9 = vpop.eup %5076 }
 0x600   :  { %v6351_v12 = vpop.eup %5078  ;;  %v2346_v36 = vsel %vm2261_vm4, %v6371_v7, -inf }
 0x601   :  { %2344 = vmax.xlane.f32.xlu0 %v2343_v13  ;;  %v6333_v39 = vpop.f32.mrb[72].mxu1  ;;  %v2655_v13 = vsel %vm2261_vm4, %v6347_v9, 0.0  ;;  %v2646_v40 = vsel %vm2261_vm4, %v6351_v12, 0.0 }
 0x602   :  { %v6335_v46 = vpop.f32.mrb[73].mxu1 }
 0x603   :  { %2335 = vmax.xlane.f32.xlu1 %v2334_v34  ;;  %v6341_v15 = vpop.f32.mrb[74].mxu1  ;;  %v6355_v34 = vpop.eup %5080 }
 0x604   :  { %v6343_v37 = vpop.f32.mrb[75].mxu1 }
 0x605   :  { %2338 = vmax.xlane.f32.xlu0 %v2337_v42  ;;  %v6365_v42 = vadd.f32 %v6180_v45, %v6056_v25 }
 0x607   :  { %2653 = vadd.xlane.f32.xlu1 %v2652_v23  ;;  %v2649_v23 = vsel %vm2261_vm4, %v6355_v34, 0.0  ;;  %v2355_v45 = vsel %vm2261_vm4, %v6365_v42, -inf }
 0x609   :  { %2656 = vadd.xlane.f32.xlu0 %v2655_v13  ;;  %v6377_v13 = vadd.f32 %v6056_v25, %v6187_v3 }
 0x60b   :  { %2647 = vadd.xlane.f32.xlu1 %v2646_v40  ;;  %v6383_v40 = vadd.f32 %v6203_v16, %v6056_v25  ;;  %v2349_v3 = vsel %vm2261_vm4, %v6377_v13, -inf }
 0x60d   :  { %2650 = vadd.xlane.f32.xlu0 %v2649_v23  ;;  %v6389_v23 = vadd.f32 %v6212_v38, %v6056_v25  ;;  %v2364_v16 = vsel %vm2261_vm4, %v6383_v40, -inf }
 0x60f   :  { %2353 = vmax.xlane.f32.xlu1 %v2352_v4  ;;  %v6395_v4 = vadd.f32 %v6056_v25, %v6208_v26  ;;  %v2367_v38 = vsel %vm2261_vm4, %v6389_v23, -inf }
 0x611   :  { %2356 = vmax.xlane.f32.xlu0 %v2355_v45  ;;  %v6401_v45 = vadd.f32 %v6056_v25, %v6217_v50  ;;  %v2358_v26 = vsel %vm2261_vm4, %v6395_v4, -inf }
 0x613   :  { %2347 = vmax.xlane.f32.xlu1 %v2346_v36  ;;  %v6407_v36 = vadd.f32 %v6233_v54, %v6056_v25  ;;  %v2361_v50 = vsel %vm2261_vm4, %v6401_v45, -inf }
 0x615   :  { %2350 = vmax.xlane.f32.xlu0 %v2349_v3  ;;  %v6413_v3 = vadd.f32 %v6243_v59, %v6056_v25  ;;  %v2376_v54 = vsel %vm2261_vm4, %v6407_v36, -inf }
 0x617   :  { %2365 = vmax.xlane.f32.xlu1 %v2364_v16  ;;  %v6419_v16 = vadd.f32 %v6056_v25, %v6239_v10  ;;  %v2379_v59 = vsel %vm2261_vm4, %v6413_v3, -inf }
 0x619   :  { %2368 = vmax.xlane.f32.xlu0 %v2367_v38  ;;  %v6425_v38 = vadd.f32 %v6056_v25, %v6251_v32  ;;  %v2370_v10 = vsel %vm2261_vm4, %v6419_v16, -inf }
 0x61b   :  { %2359 = vmax.xlane.f32.xlu1 %v2358_v26  ;;  %v6431_v26 = vadd.f32 %v6268_v62, %v6056_v25  ;;  %v2373_v32 = vsel %vm2261_vm4, %v6425_v38, -inf }
 0x61d   :  { %2362 = vmax.xlane.f32.xlu0 %v2361_v50  ;;  %v6437_v50 = vadd.f32 %v6279_v27, %v6056_v25  ;;  %v2400_v62 = vsel %vm2261_vm4, %v6431_v26, -inf }
 0x61f   :  { %2377 = vmax.xlane.f32.xlu1 %v2376_v54  ;;  %v6443_v54 = vadd.f32 %v6056_v25, %v6274_v18  ;;  %v2403_v27 = vsel %vm2261_vm4, %v6437_v50, -inf }
 0x621   :  { %2380 = vmax.xlane.f32.xlu0 %v2379_v59  ;;  %v6449_v59 = vadd.f32 %v6056_v25, %v6285_v44  ;;  %v2394_v18 = vsel %vm2261_vm4, %v6443_v54, -inf }
 0x623   :  { %2371 = vmax.xlane.f32.xlu1 %v2370_v10  ;;  %v6455_v10 = vadd.f32 %v6301_v8, %v6056_v25  ;;  %v2397_v44 = vsel %vm2261_vm4, %v6449_v59, -inf }
 0x625   :  { %2374 = vmax.xlane.f32.xlu0 %v2373_v32  ;;  %7282 = vst [vmem:[#allocation47_spill] sm:$0xff] %v6455_v10  ;;  %v6461_v32 = vadd.f32 %v6311_v21, %v6056_v25  ;;  %v2424_v8 = vsel %vm2261_vm4, %v6455_v10, -inf }
 0x627   :  { %2401 = vmax.xlane.f32.xlu1 %v2400_v62  ;;  %7283 = vst [vmem:[#allocation48_spill] sm:$0xff] %v6461_v32  ;;  %v6467_v62 = vadd.f32 %v6056_v25, %v6307_v5  ;;  %v2427_v21 = vsel %vm2261_vm4, %v6461_v32, -inf }
 0x629   :  { %2404 = vmax.xlane.f32.xlu0 %v2403_v27  ;;  %7284 = vst [vmem:[#allocation49_spill] sm:$0xff] %v6467_v62  ;;  %v6473_v27 = vadd.f32 %v6056_v25, %v6317_v24  ;;  %v2418_v5 = vsel %vm2261_vm4, %v6467_v62, -inf }
 0x62b   :  { %2395 = vmax.xlane.f32.xlu1 %v2394_v18  ;;  %7285 = vst [vmem:[#allocation50_spill] sm:$0xff] %v6473_v27  ;;  %v6479_v18 = vadd.f32 %v6333_v39, %v6056_v25  ;;  %v2421_v24 = vsel %vm2261_vm4, %v6473_v27, -inf }
 0x62d   :  { %2398 = vmax.xlane.f32.xlu0 %v2397_v44  ;;  %7286 = vst [vmem:[#allocation51_spill] sm:$0xff] %v6479_v18  ;;  %v6485_v44 = vadd.f32 %v6341_v15, %v6056_v25  ;;  %v2448_v39 = vsel %vm2261_vm4, %v6479_v18, -inf }
 0x62f   :  { %2425 = vmax.xlane.f32.xlu1 %v2424_v8  ;;  %v6491_v8 = vadd.f32 %v6056_v25, %v6335_v46  ;;  %v2451_v27 = vsel %vm2261_vm4, %v6485_v44, -inf }
 0x631   :  { %2428 = vmax.xlane.f32.xlu0 %v2427_v21  ;;  %v2442_v10 = vsel %vm2261_vm4, %v6491_v8, -inf }
 0x633   :  { %2419 = vmax.xlane.f32.xlu1 %v2418_v5  ;;  %v6498_v5 = vadd.f32 %v6056_v25, %v6343_v37 }
 0x635   :  { %2422 = vmax.xlane.f32.xlu0 %v2421_v24  ;;  %v2282_v21 = vpop.xlane.xlu1 %2281  ;;  %7287 = vst [vmem:[#allocation52_spill] sm:$0xff] %v6498_v5  ;;  %v2445_v25 = vsel %vm2261_vm4, %v6498_v5, -inf }
 0x636   :  { %v2460_v32 = vsub.f32 %v6080_v43, %v2282_v21 }
 0x637   :  { %2449 = vmax.xlane.f32.xlu1 %v2448_v39  ;;  %v2285_v15 = vpop.xlane.xlu0 %2284 }
 0x638   :  { %v2530_v24 = vmul.f32 1.442695, %v2460_v32  ;;  %v2461_v62 = vsub.f32 %v6086_v31, %v2285_v15 }
 0x639   :  { %2452 = vmax.xlane.f32.xlu0 %v2451_v27  ;;  %v2276_v46 = vpop.xlane.xlu1 %2275 }
 0x63a   :  { %5082 = vpow2.f32 %v2530_v24  ;;  %v2532_v18 = vmul.f32 1.442695, %v2461_v62  ;;  %v2458_v43 = vsub.f32 %v6083_v47, %v2276_v46 }
 0x63b   :  { %2443 = vmax.xlane.f32.xlu1 %v2442_v10  ;;  %v2279_v21 = vpop.xlane.xlu0 %2278 }
 0x63c   :  { %5084 = vpow2.f32 %v2532_v18  ;;  %v2526_v37 = vmul.f32 1.442695, %v2458_v43  ;;  %v2459_v32 = vsub.f32 %v6091_v51, %v2279_v21 }
 0x63d   :  { %2446 = vmax.xlane.f32.xlu0 %v2445_v25 }
 0x63e   :  { %5086 = vpow2.f32 %v2526_v37  ;;  %v2528_v31 = vmul.f32 1.442695, %v2459_v32 }
 0x640   :  { %5088 = vpow2.f32 %v2528_v31 }
 0x641   :  { %v2294_v27 = vpop.xlane.xlu1 %2293 }
 0x642   :  { %v2464_v39 = vsub.f32 %v6100_v56, %v2294_v27 }
 0x643   :  { %v2297_v15 = vpop.xlane.xlu0 %2296 }
 0x644   :  { %v6510_v62 = vpop.eup %5082  ;;  %v2538_v47 = vmul.f32 1.442695, %v2464_v39  ;;  %v2465_v10 = vsub.f32 %v6106_v58, %v2297_v15 }
 0x645   :  { %v2288_v24 = vpop.xlane.xlu1 %2287  ;;  %v2664_v18 = vsel %vm2261_vm4, %v6510_v62, 0.0 }
 0x646   :  { %v6515_v46 = vpop.eup %5084  ;;  %5090 = vpow2.f32 %v2538_v47  ;;  %v2540_v51 = vmul.f32 1.442695, %v2465_v10  ;;  %v2462_v43 = vsub.f32 %v6103_v57, %v2288_v24  ;;  %2665 = vadd.xlane.f32.xlu1 %v2664_v18 }
 0x647   :  { %v2291_v21 = vpop.xlane.xlu0 %2290  ;;  %v2667_v56 = vsel %vm2261_vm4, %v6515_v46, 0.0 }
 0x648   :  { %v6520_v25 = vpop.eup %5086  ;;  %5092 = vpow2.f32 %v2540_v51  ;;  %v2534_v37 = vmul.f32 1.442695, %v2462_v43  ;;  %v2463_v58 = vsub.f32 %v6111_v60, %v2291_v21  ;;  %2668 = vadd.xlane.f32.xlu0 %v2667_v56 }
 0x649   :  { %v2306_v32 = vpop.xlane.xlu1 %2305  ;;  %v2658_v31 = vsel %vm2261_vm4, %v6520_v25, 0.0 }
 0x64a   :  { %v6525_v27 = vpop.eup %5088  ;;  %5094 = vpow2.f32 %v2534_v37  ;;  %v2536_v57 = vmul.f32 1.442695, %v2463_v58  ;;  %v2468_v39 = vsub.f32 %v6118_v1, %v2306_v32  ;;  %2659 = vadd.xlane.f32.xlu1 %v2658_v31 }
 0x64b   :  { %v2309_v15 = vpop.xlane.xlu0 %2308  ;;  %v2661_v47 = vsel %vm2261_vm4, %v6525_v27, 0.0 }
 0x64c   :  { %5096 = vpow2.f32 %v2536_v57  ;;  %v2546_v10 = vmul.f32 1.442695, %v2468_v39  ;;  %v2469_v60 = vsub.f32 %v6123_v35, %v2309_v15  ;;  %2662 = vadd.xlane.f32.xlu0 %v2661_v47 }
 0x64e   :  { %5098 = vpow2.f32 %v2546_v10  ;;  %v2548_v24 = vmul.f32 1.442695, %v2469_v60 }
 0x650   :  { %v6531_v18 = vpop.eup %5090  ;;  %5100 = vpow2.f32 %v2548_v24 }
 0x651   :  { %v2676_v51 = vsel %vm2261_vm4, %v6531_v18, 0.0 }
 0x652   :  { %v6535_v43 = vpop.eup %5092  ;;  %2677 = vadd.xlane.f32.xlu1 %v2676_v51 }
 0x653   :  { %v2679_v1 = vsel %vm2261_vm4, %v6535_v43, 0.0 }
 0x654   :  { %v6539_v21 = vpop.eup %5094  ;;  %2680 = vadd.xlane.f32.xlu0 %v2679_v1 }
 0x655   :  { %v2670_v35 = vsel %vm2261_vm4, %v6539_v21, 0.0 }
 0x656   :  { %v6543_v56 = vpop.eup %5096  ;;  %2671 = vadd.xlane.f32.xlu1 %v2670_v35 }
 0x657   :  { %v2673_v37 = vsel %vm2261_vm4, %v6543_v56, 0.0 }
 0x658   :  { %v6547_v58 = vpop.eup %5098  ;;  %2674 = vadd.xlane.f32.xlu0 %v2673_v37 }
 0x659   :  { %7288 = vst [vmem:[#allocation53_spill] sm:$0xff] %v6547_v58  ;;  %v2688_v32 = vsel %vm2261_vm4, %v6547_v58, 0.0 }
 0x65a   :  { %v6551_v31 = vpop.eup %5100  ;;  %2689 = vadd.xlane.f32.xlu1 %v2688_v32 }
 0x65b   :  { %7289 = vst [vmem:[#allocation54_spill] sm:$0xff] %v6551_v31  ;;  %v2691_v57 = vsel %vm2261_vm4, %v6551_v31, 0.0 }
 0x65c   :  { %2692 = vadd.xlane.f32.xlu0 %v2691_v57 }
 0x660   :  { %v2390_v39 = vpop.xlane.xlu1 %2389 }
 0x661   :  { %v2496_v15 = vsub.f32 %v6138_v17, %v2390_v39 }
 0x662   :  { %v2393_v47 = vpop.xlane.xlu0 %2392 }
 0x663   :  { %v2602_v10 = vmul.f32 1.442695, %v2496_v15  ;;  %v2497_v51 = vsub.f32 %v6146_v33, %v2393_v47 }
 0x664   :  { %v2300_v60 = vpop.xlane.xlu1 %2299 }
 0x665   :  { %5102 = vpow2.f32 %v2602_v10  ;;  %v2466_v24 = vsub.f32 %v6143_v29, %v2300_v60  ;;  %v2604_v31 = vmul.f32 1.442695, %v2497_v51 }
 0x666   :  { %v2303_v1 = vpop.xlane.xlu0 %2302 }
 0x667   :  { %v2542_v35 = vmul.f32 1.442695, %v2466_v24  ;;  %v2467_v37 = vsub.f32 %v6155_v41, %v2303_v1 }
 0x668   :  { %v2384_v32 = vpop.xlane.xlu1 %2383 }
 0x669   :  { %5104 = vpow2.f32 %v2542_v35  ;;  %v2544_v58 = vmul.f32 1.442695, %v2467_v37  ;;  %v2494_v57 = vsub.f32 %v6162_v20, %v2384_v32 }
 0x66a   :  { %v2387_v5 = vpop.xlane.xlu0 %2386 }
 0x66b   :  { %5106 = vpow2.f32 %v2544_v58  ;;  %v2598_v17 = vmul.f32 1.442695, %v2494_v57  ;;  %v2495_v39 = vsub.f32 %v6167_v52, %v2387_v5 }
 0x66c   :  { %v2318_v15 = vpop.xlane.xlu1 %2317 }
 0x66d   :  { %5108 = vpow2.f32 %v2598_v17  ;;  %v2600_v29 = vmul.f32 1.442695, %v2495_v39  ;;  %v2472_v33 = vsub.f32 %v6174_v0, %v2318_v15 }
 0x66e   :  { %5110 = vpow2.f32 %v2604_v31  ;;  %v2321_v47 = vpop.xlane.xlu0 %2320 }
 0x66f   :  { %v6562_v10 = vpop.eup %5102  ;;  %5112 = vpow2.f32 %v2600_v29  ;;  %v2554_v41 = vmul.f32 1.442695, %v2472_v33  ;;  %v2473_v57 = vsub.f32 %v6185_v2, %v2321_v47 }
 0x670   :  { %v2414_v60 = vpop.xlane.xlu1 %2413  ;;  %v2772_v20 = vsel %vm2261_vm4, %v6562_v10, 0.0 }
 0x671   :  { %v2504_v58 = vsub.f32 %v6192_v49, %v2414_v60  ;;  %2773 = vadd.xlane.f32.xlu1 %v2772_v20  ;;  %5114 = vpow2.f32 %v2554_v41  ;;  %v2556_v2 = vmul.f32 1.442695, %v2473_v57 }
 0x672   :  { %v2417_v24 = vpop.xlane.xlu0 %2416 }
 0x673   :  { %v6567_v52 = vpop.eup %5104  ;;  %v2618_v5 = vmul.f32 1.442695, %v2504_v58  ;;  %v2505_v0 = vsub.f32 %v6199_v63, %v2417_v24 }
 0x674   :  { %v2312_v31 = vpop.xlane.xlu1 %2311  ;;  %v2682_v51 = vsel %vm2261_vm4, %v6567_v52, 0.0 }
 0x675   :  { %v6572_v1 = vpop.eup %5106  ;;  %5116 = vpow2.f32 %v2618_v5  ;;  %v2470_v35 = vsub.f32 %v6206_v19, %v2312_v31  ;;  %2683 = vadd.xlane.f32.xlu1 %v2682_v51  ;;  %v2620_v17 = vmul.f32 1.442695, %v2505_v0 }
 0x676   :  { %v2315_v37 = vpop.xlane.xlu0 %2314  ;;  %v2685_v49 = vsel %vm2261_vm4, %v6572_v1, 0.0 }
 0x677   :  { %v6577_v32 = vpop.eup %5108  ;;  %v2550_v63 = vmul.f32 1.442695, %v2470_v35  ;;  %2686 = vadd.xlane.f32.xlu0 %v2685_v49  ;;  %v2471_v47 = vsub.f32 %v6215_v30, %v2315_v37  ;;  %v7291_v35 = vld [vmem:[#allocation38_spill] sm:$0xff] }
 0x678   :  { %v6580_v39 = vpop.eup %5110  ;;  %v2408_v15 = vpop.xlane.xlu1 %2407  ;;  %v2766_v29 = vsel %vm2261_vm4, %v6577_v32, 0.0 }
 0x679   :  { %v6584_v33 = vpop.eup %5112  ;;  %5118 = vpow2.f32 %v2550_v63  ;;  %v2502_v19 = vsub.f32 %v6224_v61, %v2408_v15  ;;  %2767 = vadd.xlane.f32.xlu1 %v2766_v29  ;;  %v2775_v24 = vsel %vm2261_vm4, %v6580_v39, 0.0  ;;  %v2552_v51 = vmul.f32 1.442695, %v2471_v47  ;;  %v7292_v29 = vld [vmem:[#allocation41_spill] sm:$0xff] }
 0x67a   :  { %v2411_v41 = vpop.xlane.xlu0 %2410  ;;  %v2769_v60 = vsel %vm2261_vm4, %v6584_v33, 0.0  ;;  %5120 = vpow2.f32 %v2620_v17 }
 0x67b   :  { %v2614_v20 = vmul.f32 1.442695, %v2502_v19  ;;  %2770 = vadd.xlane.f32.xlu0 %v2769_v60  ;;  %v6592_v5 = vpop.eup %5114  ;;  %v2503_v49 = vsub.f32 %v7291_v35, %v2411_v41 }
 0x67c   :  { %v2330_v58 = vpop.xlane.xlu1 %2329  ;;  %v2700_v57 = vsel %vm2261_vm4, %v6592_v5, 0.0 }
 0x67d   :  { %5122 = vpow2.f32 %v2614_v20  ;;  %v2476_v61 = vsub.f32 %v6237_v53, %v2330_v58  ;;  %2776 = vadd.xlane.f32.xlu1 %v2775_v24  ;;  %v2616_v15 = vmul.f32 1.442695, %v2503_v49 }
 0x67e   :  { %v2333_v0 = vpop.xlane.xlu0 %2332  ;;  %5124 = vpow2.f32 %v2556_v2 }
 0x67f   :  { %v6595_v31 = vpop.eup %5116  ;;  %v2562_v30 = vmul.f32 1.442695, %v2476_v61 }
 0x680   :  { %7290 = vst [vmem:[#allocation55_spill] sm:$0xff] %v6595_v31  ;;  %v2438_v37 = vpop.xlane.xlu1 %2437  ;;  %v2796_v17 = vsel %vm2261_vm4, %v6595_v31, 0.0 }
 0x681   :  { %5126 = vpow2.f32 %v2562_v30  ;;  %2701 = vadd.xlane.f32.xlu1 %v2700_v57  ;;  %2797 = vadd.xlane.f32.xlu0 %v2796_v17  ;;  %v2512_v19 = vsub.f32 %v7292_v29, %v2438_v37  ;;  %v7295_v17 = vld [vmem:[#allocation40_spill] sm:$0xff] }
 0x682   :  { %v2441_v53 = vpop.xlane.xlu0 %2440  ;;  %5128 = vpow2.f32 %v2552_v51 }
 0x683   :  { %v6602_v63 = vpop.eup %5118  ;;  %5130 = vpow2.f32 %v2616_v15  ;;  %v2634_v24 = vmul.f32 1.442695, %v2512_v19  ;;  %v2477_v15 = vsub.f32 %v7295_v17, %v2333_v0 }
 0x684   :  { %v2324_v60 = vpop.xlane.xlu1 %2323  ;;  %v2694_v41 = vsel %vm2261_vm4, %v6602_v63, 0.0  ;;  %v6607_v2 = vpop.eup %5120 }
 0x685   :  { %7293 = vst [vmem:[#allocation38_spill] sm:$0xff] %v6607_v2  ;;  %v2474_v47 = vsub.f32 %v6272_v55, %v2324_v60  ;;  %2695 = vadd.xlane.f32.xlu1 %v2694_v41  ;;  %v2799_v51 = vsel %vm2261_vm4, %v6607_v2, 0.0 }
 0x686   :  { %v2327_v20 = vpop.xlane.xlu0 %2326 }
 0x687   :  { %v6610_v58 = vpop.eup %5122  ;;  %v2558_v61 = vmul.f32 1.442695, %v2474_v47 }
 0x688   :  { %7294 = vst [vmem:[#allocation41_spill] sm:$0xff] %v6610_v58  ;;  %v2432_v35 = vpop.xlane.xlu1 %2431  ;;  %v2790_v49 = vsel %vm2261_vm4, %v6610_v58, 0.0  ;;  %v6616_v30 = vpop.eup %5124 }
 0x689   :  { %5132 = vpow2.f32 %v2558_v61  ;;  %v2510_v37 = vsub.f32 %v6291_v22, %v2432_v35  ;;  %2800 = vadd.xlane.f32.xlu1 %v2799_v51  ;;  %2791 = vadd.xlane.f32.xlu0 %v2790_v49  ;;  %v2703_v47 = vsel %vm2261_vm4, %v6616_v30, 0.0  ;;  %v7296_v51 = vld [vmem:[#allocation43_spill] sm:$0xff]  ;;  %v2564_v49 = vmul.f32 1.442695, %v2477_v15 }
 0x68a   :  { %v2435_v55 = vpop.xlane.xlu0 %2434  ;;  %5134 = vpow2.f32 %v2634_v24  ;;  %v2513_v0 = vsub.f32 %v7296_v51, %v2441_v53 }
 0x68b   :  { %v6619_v57 = vpop.eup %5126  ;;  %v2630_v29 = vmul.f32 1.442695, %v2510_v37  ;;  %v2511_v19 = vsub.f32 %v6297_v14, %v2435_v55  ;;  %v2475_v14 = vsub.f32 %v6283_v28, %v2327_v20 }
 0x68c   :  { %v2342_v60 = vpop.xlane.xlu1 %2341  ;;  %v2712_v41 = vsel %vm2261_vm4, %v6619_v57, 0.0  ;;  %v6627_v61 = vpop.eup %5128 }
 0x68d   :  { %v2632_v22 = vmul.f32 1.442695, %v2511_v19  ;;  %v2480_v35 = vsub.f32 %v6305_v6, %v2342_v60  ;;  %2713 = vadd.xlane.f32.xlu1 %v2712_v41  ;;  %2704 = vadd.xlane.f32.xlu0 %v2703_v47  ;;  %5136 = vpow2.f32 %v2630_v29  ;;  %v2697_v17 = vsel %vm2261_vm4, %v6627_v61, 0.0  ;;  %v6634_v31 = vpop.eup %5130 }
 0x68e   :  { %v2345_v24 = vpop.xlane.xlu0 %2344  ;;  %v2636_v19 = vmul.f32 1.442695, %v2513_v0  ;;  %v2560_v15 = vmul.f32 1.442695, %v2475_v14  ;;  %v2793_v41 = vsel %vm2261_vm4, %v6634_v31, 0.0 }
 0x68f   :  { %5138 = vpow2.f32 %v2632_v22  ;;  %v2570_v37 = vmul.f32 1.442695, %v2480_v35  ;;  %v7298_v35 = vld [vmem:[#allocation44_spill] sm:$0xff] }
 0x690   :  { %v2336_v55 = vpop.xlane.xlu1 %2335  ;;  %v2481_v51 = vsub.f32 %v7298_v35, %v2345_v24  ;;  %v7300_v24 = vld [vmem:[#allocation45_spill] sm:$0xff] }
 0x691   :  { %5140 = vpow2.f32 %v2570_v37  ;;  %v2478_v6 = vsub.f32 %v6323_v48, %v2336_v55  ;;  %2698 = vadd.xlane.f32.xlu0 %v2697_v17 }
 0x692   :  { %v2339_v60 = vpop.xlane.xlu0 %2338  ;;  %5142 = vpow2.f32 %v2564_v49 }
 0x693   :  { %v6637_v53 = vpop.eup %5132  ;;  %v2566_v29 = vmul.f32 1.442695, %v2478_v6  ;;  %v2572_v6 = vmul.f32 1.442695, %v2481_v51 }
 0x694   :  { %v2654_v28 = vpop.xlane.xlu1 %2653  ;;  %v2706_v20 = vsel %vm2261_vm4, %v6637_v53, 0.0  ;;  %v6643_v47 = vpop.eup %5134 }
 0x695   :  { %5144 = vpow2.f32 %v2566_v29  ;;  %2707 = vadd.xlane.f32.xlu1 %v2706_v20  ;;  %2794 = vadd.xlane.f32.xlu0 %v2793_v41  ;;  %v2820_v49 = vsel %vm2261_vm4, %v6643_v47, 0.0 }
 0x696   :  { %5146 = vpow2.f32 %v2636_v19  ;;  %v2657_v48 = vpop.xlane.xlu0 %2656  ;;  %v2479_v19 = vsub.f32 %v7300_v24, %v2339_v60 }
 0x697   :  { %5148 = vpow2.f32 %v2560_v15  ;;  %v6645_v22 = vpop.eup %5136 }
 0x698   :  { %7297 = vst [vmem:[#allocation40_spill] sm:$0xff] %v6645_v22  ;;  %5150 = vrcp.f32 %v2657_v48  ;;  %v2648_v0 = vpop.xlane.xlu1 %2647  ;;  %v2814_v29 = vsel %vm2261_vm4, %v6645_v22, 0.0  ;;  %v2568_v60 = vmul.f32 1.442695, %v2479_v19 }
 0x699   :  { %v6650_v14 = vpop.eup %5138  ;;  %5152 = vrcp.f32 %v2648_v0  ;;  %2821 = vadd.xlane.f32.xlu0 %v2820_v49 }
 0x69a   :  { %7299 = vst [vmem:[#allocation43_spill] sm:$0xff] %v6650_v14  ;;  %5154 = vrcp.f32 %v2654_v28  ;;  %v2651_v37 = vpop.xlane.xlu0 %2650  ;;  %v2817_v55 = vsel %vm2261_vm4, %v6650_v14, 0.0 }
 0x69b   :  { %v6654_v17 = vpop.eup %5140  ;;  %5156 = vrcp.f32 %v2651_v37  ;;  %2818 = vadd.xlane.f32.xlu1 %v2817_v55 }
 0x69c   :  { %v2354_v15 = vpop.xlane.xlu1 %2353  ;;  %v6659_v20 = vpop.eup %5142  ;;  %v2724_v48 = vsel %vm2261_vm4, %v6654_v17, 0.0  ;;  %5158 = vpow2.f32 %v2572_v6 }
 0x69d   :  { %v2484_v41 = vsub.f32 %v6359_v11, %v2354_v15  ;;  %2815 = vadd.xlane.f32.xlu0 %v2814_v29  ;;  %v2715_v55 = vsel %vm2261_vm4, %v6659_v20, 0.0 }
 0x69e   :  { %v2357_v28 = vpop.xlane.xlu0 %2356 }
 0x69f   :  { %v6664_v35 = vpop.eup %5144  ;;  %v2578_v0 = vmul.f32 1.442695, %v2484_v41  ;;  %2725 = vadd.xlane.f32.xlu1 %v2724_v48  ;;  %v2485_v49 = vsub.f32 %v6365_v42, %v2357_v28 }
 0x6a0   :  { %v6666_v51 = vpop.eup %5146  ;;  %v2348_v37 = vpop.xlane.xlu1 %2347  ;;  %v2718_v41 = vsel %vm2261_vm4, %v6664_v35, 0.0 }
 0x6a1   :  { %v6671_v11 = vpop.eup %5148  ;;  %5160 = vpow2.f32 %v2578_v0  ;;  %v2482_v24 = vsub.f32 %v6371_v7, %v2348_v37  ;;  %2716 = vadd.xlane.f32.xlu0 %v2715_v55  ;;  %v2580_v42 = vmul.f32 1.442695, %v2485_v49  ;;  %v2823_v0 = vsel %vm2261_vm4, %v6666_v51, 0.0 }
 0x6a2   :  { %v5151_v15 = vpop.eup %5150  ;;  %v2351_v29 = vpop.xlane.xlu0 %2350  ;;  %5162 = vpow2.f32 %v2568_v60  ;;  %v2709_v60 = vsel %vm2261_vm4, %v6671_v11, 0.0 }
 0x6a3   :  { %v5153_v48 = vpop.eup %5152  ;;  %v2574_v6 = vmul.f32 1.442695, %v2482_v24  ;;  %2719 = vadd.xlane.f32.xlu1 %v2718_v41  ;;  %v2483_v28 = vsub.f32 %v6377_v13, %v2351_v29  ;;  %v2905_v7 = vmul.f32 %v5151_v15, %v6347_v9  ;;  %v7301_v41 = vld [vmem:[#allocation46_spill] sm:$0xff] }
 0x6a4   :  { %v5155_v19 = vpop.eup %5154  ;;  %v2366_v14 = vpop.xlane.xlu1 %2365  ;;  %v2902_v55 = vmul.f32 %v5153_v48, %v6351_v12 }
 0x6a5   :  { %v5157_v22 = vpop.eup %5156  ;;  %5164 = vpow2.f32 %v2574_v6  ;;  %2824 = vadd.xlane.f32.xlu0 %v2823_v0  ;;  %v2904_v2 = vmul.f32 %v5155_v19, %v7301_v41  ;;  %v2576_v13 = vmul.f32 1.442695, %v2483_v28  ;;  %v2488_v49 = vsub.f32 %v6383_v40, %v2366_v14  ;;  %v7302_v6 = vld [vmem:[#allocation33_spill] sm:$0xff] }
 0x6a6   :  { %v2369_v37 = vpop.xlane.xlu0 %2368  ;;  %v2903_v24 = vmul.f32 %v5157_v22, %v6355_v34  ;;  %5166 = vpow2.f32 %v2580_v42  ;;  %v6686_v15 = vpop.eup %5158 }
 0x6a7   :  { %v2967_v9 = vpack.c.bf16 %v2905_v7, %v2904_v2  ;;  %5168 = vpow2.f32 %v2576_v13  ;;  %v2586_v34 = vmul.f32 1.442695, %v2488_v49  ;;  %v7303_v2 = vld [vmem:[#allocation30_spill] sm:$0xff] }
 0x6a8   :  { %v2360_v29 = vpop.xlane.xlu1 %2359  ;;  %v2966_v58 = vpack.c.bf16 %v2903_v24, %v2902_v55 }
 0x6a9   :  { %2710 = vadd.xlane.f32.xlu0 %v2709_v60  ;;  %v2486_v22 = vsub.f32 %v6395_v4, %v2360_v29  ;;  %5170 = vpow2.f32 %v2586_v34  ;;  %v2489_v4 = vsub.f32 %v6389_v23, %v2369_v37 }
 0x6aa   :  { %4763 = vmatprep.mubr.msk.bf16.mxu0 %vm2261_vm4, %v2966_v58  ;;  %v2363_v12 = vpop.xlane.xlu0 %2362  ;;  %v2727_v58 = vsel %vm2261_vm4, %v6686_v15, 0.0 }
 0x6ab   :  { %v6689_v48 = vpop.eup %5160  ;;  %4764 = vmatmul.mubr.msk.bf16.vlgmr.msra.gmra.mrb[40].mxu0 %vm2261_vm4, %v2967_v9  ;;  %v2582_v0 = vmul.f32 1.442695, %v2486_v22  ;;  %v2588_v29 = vmul.f32 1.442695, %v2489_v4  ;;  %v2487_v23 = vsub.f32 %v6401_v45, %v2363_v12 }
 0x6ac   :  { %4774 = vmatpush3.bf16.msra.mxu0 %v7302_v6  ;;  %v2378_v40 = vpop.xlane.xlu1 %2377  ;;  %v2736_v14 = vsel %vm2261_vm4, %v6689_v48, 0.0  ;;  %v6699_v19 = vpop.eup %5162 }
 0x6ad   :  { %4785 = vmatprep.subr.bf16.mxu0 %v7303_v2  ;;  %2737 = vadd.xlane.f32.xlu1 %v2736_v14  ;;  %v2721_v41 = vsel %vm2261_vm4, %v6699_v19, 0.0  ;;  %5172 = vpow2.f32 %v2582_v0  ;;  %v2492_v4 = vsub.f32 %v6407_v36, %v2378_v40 }
 0x6ae   :  { %2728 = vadd.xlane.f32.xlu0 %v2727_v58  ;;  %v2381_v42 = vpop.xlane.xlu0 %2380  ;;  %v2584_v58 = vmul.f32 1.442695, %v2487_v23 }
 0x6af   :  { %v6701_v28 = vpop.eup %5164 }
 0x6b0   :  { %v2372_v7 = vpop.xlane.xlu1 %2371  ;;  %v2730_v55 = vsel %vm2261_vm4, %v6701_v28, 0.0  ;;  %v6709_v60 = vpop.eup %5166 }
 0x6b1   :  { %v2490_v24 = vsub.f32 %v6419_v16, %v2372_v7  ;;  %2731 = vadd.xlane.f32.xlu1 %v2730_v55  ;;  %v2739_v16 = vsel %vm2261_vm4, %v6709_v60, 0.0  ;;  %v6715_v34 = vpop.eup %5168 }
 0x6b2   :  { %2722 = vadd.xlane.f32.xlu0 %v2721_v41  ;;  %v2375_v13 = vpop.xlane.xlu0 %2374 }
 0x6b3   :  { %v2590_v49 = vmul.f32 1.442695, %v2490_v24  ;;  %v6722_v12 = vpop.eup %5170 }
 0x6b4   :  { %v2402_v37 = vpop.xlane.xlu1 %2401  ;;  %v2748_v36 = vsel %vm2261_vm4, %v6722_v12, 0.0 }
 0x6b5   :  { %5174 = vpow2.f32 %v2590_v49  ;;  %v2500_v9 = vsub.f32 %v6431_v26, %v2402_v37  ;;  %v2733_v26 = vsel %vm2261_vm4, %v6715_v34, 0.0  ;;  %v2493_v49 = vsub.f32 %v6413_v3, %v2381_v42 }
 0x6b6   :  { %2740 = vadd.xlane.f32.xlu0 %v2739_v16  ;;  %v2405_v22 = vpop.xlane.xlu0 %2404  ;;  %5176 = vpow2.f32 %v2588_v29 }
 0x6b7   :  { %v2610_v6 = vmul.f32 1.442695, %v2500_v9  ;;  %v2501_v14 = vsub.f32 %v6437_v50, %v2405_v22  ;;  %v2594_v50 = vmul.f32 1.442695, %v2492_v4  ;;  %v2596_v37 = vmul.f32 1.442695, %v2493_v49 }
 0x6b8   :  { %v2396_v0 = vpop.xlane.xlu1 %2395 }
 0x6b9   :  { %5178 = vpow2.f32 %v2610_v6  ;;  %v2498_v45 = vsub.f32 %v6443_v54, %v2396_v0  ;;  %v2612_v55 = vmul.f32 1.442695, %v2501_v14  ;;  %v6728_v54 = vpop.eup %5172 }
 0x6ba   :  { %2734 = vadd.xlane.f32.xlu0 %v2733_v26  ;;  %v2399_v7 = vpop.xlane.xlu0 %2398  ;;  %5180 = vpow2.f32 %v2584_v58  ;;  %v2742_v42 = vsel %vm2261_vm4, %v6728_v54, 0.0 }
 0x6bb   :  { %v2606_v24 = vmul.f32 1.442695, %v2498_v45  ;;  %v2499_v41 = vsub.f32 %v6449_v59, %v2399_v7  ;;  %v2491_v59 = vsub.f32 %v6425_v38, %v2375_v13 }
 0x6bc   :  { %v6730_v40 = vpop.xlane.xlu1 %2425 }
 0x6bd   :  { %5182 = vpow2.f32 %v2606_v24  ;;  %v2608_v23 = vmul.f32 1.442695, %v2499_v41  ;;  %v2592_v6 = vmul.f32 1.442695, %v2491_v59 }
 0x6be   :  { %2749 = vadd.xlane.f32.xlu0 %v2748_v36  ;;  %5184 = vpow2.f32 %v2612_v55  ;;  %v6735_v9 = vpop.xlane.xlu0 %2428 }
 0x6bf   :  { %v6732_v29 = vpop.eup %5174  ;;  %5186 = vpow2.f32 %v2594_v50 }
 0x6c0   :  { %7304 = vst [vmem:[#allocation44_spill] sm:$0xff] %v6732_v29  ;;  %v2754_v3 = vsel %vm2261_vm4, %v6732_v29, 0.0  ;;  %v6741_v16 = vpop.eup %5176  ;;  %5188 = vpow2.f32 %v2608_v23  ;;  %v6745_v14 = vpop.xlane.xlu1 %2419 }
 0x6c1   :  { %2755 = vadd.xlane.f32.xlu1 %v2754_v3  ;;  %5190 = vpow2.f32 %v2596_v37  ;;  %v2751_v13 = vsel %vm2261_vm4, %v6741_v16, 0.0 }
 0x6c2   :  { %2743 = vadd.xlane.f32.xlu0 %v2742_v42  ;;  %v6753_v4 = vpop.xlane.xlu0 %2422  ;;  %5192 = vpow2.f32 %v2592_v6 }
 0x6c3   :  { %v6743_v22 = vpop.eup %5178 }
 0x6c4   :  { %7305 = vst [vmem:[#allocation45_spill] sm:$0xff] %v6743_v22  ;;  %v2784_v38 = vsel %vm2261_vm4, %v6743_v22, 0.0  ;;  %v6751_v58 = vpop.eup %5180  ;;  %v6765_v24 = vpop.xlane.xlu1 %2449  ;;  %v7311_v22 = vld [vmem:[#allocation31_spill] sm:$0xff] }
 0x6c5   :  { %2785 = vadd.xlane.f32.xlu1 %v2784_v38  ;;  %v2745_v7 = vsel %vm2261_vm4, %v6751_v58, 0.0 }
 0x6c6   :  { %2752 = vadd.xlane.f32.xlu0 %v2751_v13  ;;  %v2453_v41 = vpop.xlane.xlu0 %2452 }
 0x6c7   :  { %v6755_v0 = vpop.eup %5182 }
 0x6c8   :  { %7306 = vst [vmem:[#allocation46_spill] sm:$0xff] %v6755_v0  ;;  %v2778_v45 = vsel %vm2261_vm4, %v6755_v0, 0.0  ;;  %v6759_v26 = vpop.eup %5184  ;;  %v6775_v37 = vpop.xlane.xlu1 %2443 }
 0x6c9   :  { %7307 = vst [vmem:[#allocation33_spill] sm:$0xff] %v6759_v26  ;;  %2779 = vadd.xlane.f32.xlu1 %v2778_v45  ;;  %v6763_v55 = vpop.eup %5186  ;;  %v2787_v50 = vsel %vm2261_vm4, %v6759_v26, 0.0 }
 0x6ca   :  { %7308 = vst [vmem:[#allocation30_spill] sm:$0xff] %v6763_v55  ;;  %2746 = vadd.xlane.f32.xlu0 %v2745_v7  ;;  %v6769_v49 = vpop.eup %5188  ;;  %v2760_v36 = vsel %vm2261_vm4, %v6763_v55, 0.0  ;;  %v6783_v6 = vpop.xlane.xlu0 %2446 }
 0x6cb   :  { %7309 = vst [vmem:[#allocation56_spill] sm:$0xff] %v6769_v49  ;;  %v6773_v23 = vpop.eup %5190  ;;  %v2781_v59 = vsel %vm2261_vm4, %v6769_v49, 0.0 }
 0x6cc   :  { %v2763_v3 = vsel %vm2261_vm4, %v6773_v23, 0.0  ;;  %v6781_v42 = vpop.eup %5192 }
 0x6cd   :  { %2788 = vadd.xlane.f32.xlu1 %v2787_v50  ;;  %7310 = vst [vmem:[#allocation57_spill] sm:$0xff] %v6781_v42  ;;  %v2757_v13 = vsel %vm2261_vm4, %v6781_v42, 0.0 }
 0x6ce   :  { %2761 = vadd.xlane.f32.xlu0 %v2760_v36 }
 0x6d1   :  { %2782 = vadd.xlane.f32.xlu1 %v2781_v59 }
 0x6d2   :  { %2764 = vadd.xlane.f32.xlu0 %v2763_v3 }
 0x6d3   :  { %v2666_v38 = vpop.xlane.xlu1 %2665 }
 0x6d5   :  { %v2669_v45 = vpop.xlane.xlu0 %2668 }
 0x6d6   :  { %2758 = vadd.xlane.f32.xlu0 %v2757_v13  ;;  %5194 = vrcp.f32 %v2669_v45 }
 0x6d7   :  { %v2660_v7 = vpop.xlane.xlu1 %2659 }
 0x6d8   :  { %5196 = vrcp.f32 %v2660_v7 }
 0x6d9   :  { %5198 = vrcp.f32 %v2666_v38  ;;  %v2663_v50 = vpop.xlane.xlu0 %2662 }
 0x6da   :  { %5200 = vrcp.f32 %v2663_v50 }
 0x6df   :  { %v2678_v36 = vpop.xlane.xlu1 %2677 }
 0x6e0   :  { %v5195_v59 = vpop.eup %5194 }
 0x6e1   :  { %v2681_v26 = vpop.xlane.xlu0 %2680  ;;  %v2909_v13 = vmul.f32 %v5195_v59, %v6515_v46  ;;  %v7313_v46 = vld [vmem:[#allocation34_spill] sm:$0xff] }
 0x6e2   :  { %3752 = vrot.lane.b32.xlu1 %v7311_v22, %s5578_s12  ;;  %v5197_v0 = vpop.eup %5196  ;;  %5202 = vrcp.f32 %v2681_v26  ;;  %v7312_v26 = vld [vmem:[#allocation32_spill] sm:$0xff] }
 0x6e3   :  { %v5199_v3 = vpop.eup %5198  ;;  %v2672_v55 = vpop.xlane.xlu1 %2671  ;;  %v2906_v38 = vmul.f32 %v5197_v0, %v6520_v25 }
 0x6e4   :  { %v5201_v49 = vpop.eup %5200  ;;  %5204 = vrcp.f32 %v2672_v55  ;;  %v2908_v50 = vmul.f32 %v5199_v3, %v6510_v62  ;;  %v7314_v55 = vld [vmem:[#allocation37_spill] sm:$0xff] }
 0x6e5   :  { %5206 = vrcp.f32 %v2678_v36  ;;  %v2675_v45 = vpop.xlane.xlu0 %2674  ;;  %v2907_v7 = vmul.f32 %v5201_v49, %v6525_v27  ;;  %v2517_v27 = vsub.f32 %v6485_v44, %v2453_v41  ;;  %v7316_v44 = vld [vmem:[#allocation48_spill] sm:$0xff] }
 0x6e6   :  { %5208 = vrcp.f32 %v2675_v45  ;;  %v2969_v29 = vpack.c.bf16 %v2909_v13, %v2908_v50  ;;  %v7315_v45 = vld [vmem:[#allocation47_spill] sm:$0xff]  ;;  %v2509_v41 = vsub.f32 %v7316_v44, %v6735_v9 }
 0x6e7   :  { %v2968_v42 = vpack.c.bf16 %v2907_v7, %v2906_v38  ;;  %v2644_v3 = vmul.f32 1.442695, %v2517_v27  ;;  %v2508_v38 = vsub.f32 %v7315_v45, %v6730_v40  ;;  %v2690_v50 = vpop.xlane.xlu1 %2689  ;;  %v2514_v45 = vsub.f32 %v6491_v8, %v6775_v37 }
 0x6e9   :  { %4769 = vmatprep.mubr.msk.bf16.mxu1 %vm2261_vm4, %v2968_v42  ;;  %5210 = vpow2.f32 %v2644_v3  ;;  %v2693_v27 = vpop.xlane.xlu0 %2692 }
 0x6ea   :  { %4770 = vmatmul.mubr.msk.bf16.vlgmr.msra.gmra.mrb[76].mxu1 %vm2261_vm4, %v2969_v29 }
 0x6eb   :  { %4780 = vmatpush3.bf16.msra.mxu1 %v7313_v46  ;;  %v2628_v46 = vmul.f32 1.442695, %v2509_v41 }
 0x6ec   :  { %3866 = vrot.lane.b32.xlu0 %v7312_v26, %s5577_s11  ;;  %4791 = vmatprep.subr.bf16.mxu1 %v7314_v55  ;;  %v5203_v36 = vpop.eup %5202 }
 0x6ed   :  { %v2913_v49 = vmul.f32 %v5203_v36, %v6535_v43  ;;  %v2626_v43 = vmul.f32 1.442695, %v2508_v38  ;;  %v7319_v36 = vld [vmem:[#allocation50_spill] sm:$0xff] }
 0x6ee   :  { %v5205_v25 = vpop.eup %5204 }
 0x6ef   :  { %v5207_v0 = vpop.eup %5206  ;;  %v2910_v59 = vmul.f32 %v5205_v25, %v6539_v21  ;;  %v7317_v21 = vld [vmem:[#allocation49_spill] sm:$0xff]  ;;  %5212 = vpow2.f32 %v2626_v43  ;;  %v2507_v25 = vsub.f32 %v7319_v36, %v6753_v4 }
 0x6f0   :  { %v5209_v62 = vpop.eup %5208  ;;  %v2912_v29 = vmul.f32 %v5207_v0, %v6531_v18  ;;  %v2506_v18 = vsub.f32 %v7317_v21, %v6745_v14  ;;  %5214 = vpow2.f32 %v2628_v46  ;;  %v2638_v21 = vmul.f32 1.442695, %v2514_v45 }
 0x6f1   :  { %v2911_v42 = vmul.f32 %v5209_v62, %v6543_v56  ;;  %v7318_v56 = vld [vmem:[#allocation35_spill] sm:$0xff] }
 0x6f2   :  { %v2971_v7 = vpack.c.bf16 %v2913_v49, %v2912_v29  ;;  %v2622_v40 = vmul.f32 1.442695, %v2506_v18  ;;  %v7320_v49 = vld [vmem:[#allocation51_spill] sm:$0xff]  ;;  %v7321_v18 = vld [vmem:[#allocation52_spill] sm:$0xff] }
 0x6f3   :  { %v2970_v13 = vpack.c.bf16 %v2911_v42, %v2910_v59  ;;  %v6816_v9 = vpop.eup %5210  ;;  %v2516_v59 = vsub.f32 %v7320_v49, %v6765_v24 }
 0x6f4   :  { %5216 = vpow2.f32 %v2622_v40  ;;  %v2835_v42 = vsel %vm2261_vm4, %v6816_v9, 0.0  ;;  %v7322_v40 = vld [vmem:[#allocation54_spill] sm:$0xff] }
 0x6f5   :  { %4775 = vmatprep.mubr.msk.bf16.mxu0 %vm2261_vm4, %v2970_v13  ;;  %5218 = vrcp.f32 %v2693_v27  ;;  %v2642_v13 = vmul.f32 1.442695, %v2516_v59 }
 0x6f6   :  { %4776 = vmatmul.mubr.msk.bf16.vlgmr.msra.gmra.mrb[44].mxu0 %vm2261_vm4, %v2971_v7 }
 0x6f7   :  { %4786 = vmatpush3.bf16.msra.mxu0 %v7303_v2  ;;  %v2624_v2 = vmul.f32 1.442695, %v2507_v25 }
 0x6f8   :  { %4797 = vmatprep.subr.bf16.mxu0 %v7318_v56 }
 0x6f9   :  { %v6822_v29 = vpop.eup %5212 }
 0x6fa   :  { %v6826_v38 = vpop.eup %5214  ;;  %v2808_v7 = vsel %vm2261_vm4, %v6822_v29, 0.0 }
 0x6fe   :  { %v2774_v0 = vpop.xlane.xlu1 %2773  ;;  %v6830_v44 = vpop.eup %5216 }
 0x6ff   :  { %v5219_v41 = vpop.eup %5218  ;;  %v2802_v8 = vsel %vm2261_vm4, %v6830_v44, 0.0 }
 0x700   :  { %v2917_v36 = vmul.f32 %v5219_v41, %v7322_v40 }
 0x702   :  { %v2684_v62 = vpop.xlane.xlu1 %2683 }
 0x703   :  { %5220 = vrcp.f32 %v2684_v62 }
 0x704   :  { %5222 = vrcp.f32 %v2690_v50  ;;  %v2687_v14 = vpop.xlane.xlu0 %2686  ;;  %v2515_v50 = vsub.f32 %v7321_v18, %v6783_v6  ;;  %v7324_v18 = vld [vmem:[#allocation39_spill] sm:$0xff] }
 0x705   :  { %5224 = vrcp.f32 %v2687_v14  ;;  %v7323_v14 = vld [vmem:[#allocation53_spill] sm:$0xff] }
 0x706   :  { %5226 = vpow2.f32 %v2624_v2  ;;  %v2768_v4 = vpop.xlane.xlu1 %2767  ;;  %2836 = vadd.xlane.f32.xlu1 %v2835_v42  ;;  %v2640_v62 = vmul.f32 1.442695, %v2515_v50  ;;  %v2811_v42 = vsel %vm2261_vm4, %v6826_v38, 0.0 }
 0x707   :  { %5228 = vrcp.f32 %v2768_v4 }
 0x708   :  { %5230 = vrcp.f32 %v2774_v0  ;;  %v2771_v3 = vpop.xlane.xlu0 %2770 }
 0x709   :  { %5232 = vrcp.f32 %v2771_v3 }
 0x70a   :  { %v2777_v24 = vpop.xlane.xlu1 %2776 }
 0x70b   :  { %5234 = vrcp.f32 %v2777_v24  ;;  %2809 = vadd.xlane.f32.xlu0 %v2808_v7 }
 0x70c   :  { %5236 = vpow2.f32 %v2642_v13 }
 0x70d   :  { %v5221_v43 = vpop.eup %5220  ;;  %5238 = vpow2.f32 %v2638_v21 }
 0x70e   :  { %v5223_v46 = vpop.eup %5222  ;;  %v2914_v0 = vmul.f32 %v5221_v43, %v6567_v52  ;;  %v6842_v59 = vpop.xlane.xlu0 %2797  ;;  %5240 = vpow2.f32 %v2640_v62 }
 0x70f   :  { %v5225_v37 = vpop.eup %5224  ;;  %2803 = vadd.xlane.f32.xlu0 %v2802_v8  ;;  %v2916_v49 = vmul.f32 %v5223_v46, %v7323_v14  ;;  %v2702_v13 = vpop.xlane.xlu1 %2701 }
 0x710   :  { %v6837_v25 = vpop.eup %5226  ;;  %v2915_v27 = vmul.f32 %v5225_v37, %v6572_v1 }
 0x711   :  { %v5229_v2 = vpop.eup %5228  ;;  %v2973_v45 = vpack.c.bf16 %v2917_v36, %v2916_v49  ;;  %v2805_v43 = vsel %vm2261_vm4, %v6837_v25, 0.0 }
 0x712   :  { %v5231_v6 = vpop.eup %5230  ;;  %v2972_v4 = vpack.c.bf16 %v2915_v27, %v2914_v0  ;;  %v6848_v52 = vmul.f32 %v5229_v2, %v6577_v32 }
 0x713   :  { %v5233_v3 = vpop.eup %5232  ;;  %2812 = vadd.xlane.f32.xlu0 %v2811_v42  ;;  %v6855_v7 = vmul.f32 %v5231_v6, %v6562_v10 }
 0x714   :  { %4781 = vmatprep.mubr.msk.bf16.mxu1 %vm2261_vm4, %v2972_v4  ;;  %v6851_v1 = vmul.f32 %v5233_v3, %v6584_v33 }
 0x715   :  { %v5235_v24 = vpop.eup %5234  ;;  %4782 = vmatmul.mubr.msk.bf16.vlgmr.msra.gmra.mrb[80].mxu1 %vm2261_vm4, %v2973_v45 }
 0x716   :  { %v6858_v41 = vmul.f32 %v5235_v24, %v6580_v39  ;;  %4792 = vmatpush3.bf16.msra.mxu1 %v7314_v55  ;;  %v6863_v32 = vpop.xlane.xlu0 %2791  ;;  %v2986_v33 = vpack.c.bf16 %v6851_v1, %v6848_v52  ;;  %v6867_v21 = vpop.eup %5236  ;;  %v7329_v1 = vld [vmem:[#allocation57_spill] sm:$0xff] }
 0x717   :  { %2806 = vadd.xlane.f32.xlu0 %v2805_v43  ;;  %4803 = vmatprep.subr.bf16.mxu1 %v7324_v18  ;;  %v2696_v39 = vpop.xlane.xlu1 %2695  ;;  %v2832_v55 = vsel %vm2261_vm4, %v6867_v21, 0.0  ;;  %v6876_v46 = vpop.eup %5238 }
 0x718   :  { %3924 = vrot.lane.b32.xlu1 %v7312_v26, %s7260_s27  ;;  %v2987_v10 = vpack.c.bf16 %v6858_v41, %v6855_v7  ;;  %v2826_v8 = vsel %vm2261_vm4, %v6876_v46, 0.0  ;;  %v6880_v40 = vpop.eup %5240  ;;  %v7335_v41 = vld [vmem:[#allocation55_spill] sm:$0xff] }
 0x719   :  { %v2829_v0 = vsel %vm2261_vm4, %v6880_v40, 0.0 }
 0x71a   :  { %v2705_v50 = vpop.xlane.xlu0 %2704 }
 0x71b   :  { %2833 = vadd.xlane.f32.xlu0 %v2832_v55  ;;  %5242 = vrcp.f32 %v2705_v50  ;;  %v6882_v36 = vpop.xlane.xlu1 %2800 }
 0x71c   :  { %5244 = vrcp.f32 %v2696_v39 }
 0x71d   :  { %5246 = vrcp.f32 %v2702_v13 }
 0x71e   :  { %v2699_v37 = vpop.xlane.xlu0 %2698 }
 0x71f   :  { %2827 = vadd.xlane.f32.xlu0 %v2826_v8  ;;  %5248 = vrcp.f32 %v2699_v37  ;;  %v2714_v2 = vpop.xlane.xlu1 %2713 }
 0x722   :  { %v6886_v27 = vpop.xlane.xlu0 %2794 }
 0x723   :  { %2830 = vadd.xlane.f32.xlu0 %v2829_v0  ;;  %v2708_v3 = vpop.xlane.xlu1 %2707 }
 0x725   :  { %v5243_v62 = vpop.eup %5242 }
 0x726   :  { %v2822_v14 = vpop.xlane.xlu0 %2821  ;;  %v5245_v49 = vpop.eup %5244  ;;  %v2921_v4 = vmul.f32 %v5243_v62, %v6616_v30 }
 0x727   :  { %v5247_v6 = vpop.eup %5246  ;;  %v2918_v45 = vmul.f32 %v5245_v49, %v6602_v63  ;;  %5250 = vrcp.f32 %v2822_v14 }
 0x728   :  { %v2920_v43 = vmul.f32 %v5247_v6, %v6592_v5  ;;  %v6894_v55 = vpop.xlane.xlu1 %2818 }
 0x729   :  { %v5249_v42 = vpop.eup %5248 }
 0x72a   :  { %v6889_v13 = vpop.xlane.xlu0 %2815  ;;  %v2919_v24 = vmul.f32 %v5249_v42, %v6627_v61  ;;  %v2975_v50 = vpack.c.bf16 %v2921_v4, %v2920_v43 }
 0x72c   :  { %v2974_v39 = vpack.c.bf16 %v2919_v24, %v2918_v45  ;;  %v2726_v63 = vpop.xlane.xlu1 %2725 }
 0x72e   :  { %4787 = vmatprep.mubr.msk.bf16.mxu0 %vm2261_vm4, %v2974_v39  ;;  %v2717_v8 = vpop.xlane.xlu0 %2716 }
 0x72f   :  { %4788 = vmatmul.mubr.msk.bf16.vlgmr.msra.gmra.mrb[48].mxu0 %vm2261_vm4, %v2975_v50 }
 0x730   :  { %4798 = vmatpush3.bf16.msra.mxu0 %v7318_v56  ;;  %v2720_v61 = vpop.xlane.xlu1 %2719 }
 0x731   :  { %4809 = vmatprep.subr.bf16.mxu0 %v7311_v22  ;;  %v5251_v37 = vpop.eup %5250 }
 0x732   :  { %v2825_v30 = vpop.xlane.xlu0 %2824  ;;  %v6903_v14 = vmul.f32 %v5251_v37, %v6643_v47 }
 0x733   :  { %5252 = vrcp.f32 %v2825_v30 }
 0x734   :  { %5254 = vrcp.f32 %v2717_v8 }
 0x735   :  { %5256 = vrcp.f32 %v2708_v3 }
 0x736   :  { %5258 = vrcp.f32 %v2714_v2  ;;  %v2711_v5 = vpop.xlane.xlu0 %2710 }
 0x737   :  { %5260 = vrcp.f32 %v2711_v5 }
 0x739   :  { %3982 = vrot.lane.b32.xlu0 %v7312_v26, %s5578_s12 }
 0x73a   :  { %v2738_v49 = vpop.xlane.xlu1 %2737 }
 0x73b   :  { %v2729_v0 = vpop.xlane.xlu0 %2728 }
 0x73c   :  { %5262 = vrcp.f32 %v2729_v0 }
 0x73d   :  { %v5253_v62 = vpop.eup %5252  ;;  %5264 = vrcp.f32 %v2720_v61 }
 0x73e   :  { %v5255_v56 = vpop.eup %5254  ;;  %v6906_v6 = vmul.f32 %v5253_v62, %v6666_v51  ;;  %5266 = vrcp.f32 %v2726_v63  ;;  %v2732_v50 = vpop.xlane.xlu1 %2731 }
 0x73f   :  { %v5257_v2 = vpop.eup %5256  ;;  %v2723_v42 = vpop.xlane.xlu0 %2722  ;;  %v2925_v24 = vmul.f32 %v5255_v56, %v6659_v20 }
 0x740   :  { %v5259_v4 = vpop.eup %5258  ;;  %5268 = vrcp.f32 %v2723_v42  ;;  %v2995_v3 = vpack.c.bf16 %v6906_v6, %v6903_v14  ;;  %v2922_v43 = vmul.f32 %v5257_v2, %v6637_v53 }
 0x741   :  { %v5261_v45 = vpop.eup %5260  ;;  %v2924_v39 = vmul.f32 %v5259_v4, %v6619_v57 }
 0x742   :  { %v2923_v47 = vmul.f32 %v5261_v45, %v6671_v11  ;;  %v7325_v11 = vld [vmem:[#allocation36_spill] sm:$0xff] }
 0x743   :  { %v2741_v51 = vpop.xlane.xlu0 %2740  ;;  %v2977_v30 = vpack.c.bf16 %v2925_v24, %v2924_v39 }
 0x744   :  { %v2976_v8 = vpack.c.bf16 %v2923_v47, %v2922_v43  ;;  %5270 = vrcp.f32 %v2741_v51  ;;  %v7326_v43 = vld [vmem:[#allocation42_spill] sm:$0xff] }
 0x745   :  { %5272 = vrcp.f32 %v2732_v50 }
 0x746   :  { %4793 = vmatprep.mubr.msk.bf16.mxu1 %vm2261_vm4, %v2976_v8  ;;  %v5263_v63 = vpop.eup %5262  ;;  %5274 = vrcp.f32 %v2738_v49 }
 0x747   :  { %v2735_v5 = vpop.xlane.xlu0 %2734  ;;  %4794 = vmatmul.mubr.msk.bf16.vlgmr.msra.gmra.mrb[84].mxu1 %vm2261_vm4, %v2977_v30  ;;  %v5265_v20 = vpop.eup %5264  ;;  %v2929_v61 = vmul.f32 %v5263_v63, %v6686_v15 }
 0x748   :  { %5276 = vrcp.f32 %v2735_v5  ;;  %4804 = vmatpush3.bf16.msra.mxu1 %v7324_v18  ;;  %v5267_v53 = vpop.eup %5266  ;;  %v2926_v0 = vmul.f32 %v5265_v20, %v6664_v35 }
 0x749   :  { %4815 = vmatprep.subr.bf16.mxu1 %v7325_v11  ;;  %v2928_v49 = vmul.f32 %v5267_v53, %v6654_v17 }
 0x74a   :  { %v5269_v57 = vpop.eup %5268 }
 0x74b   :  { %v2750_v37 = vpop.xlane.xlu0 %2749  ;;  %v2927_v62 = vmul.f32 %v5269_v57, %v6699_v19  ;;  %v2979_v42 = vpack.c.bf16 %v2929_v61, %v2928_v49 }
 0x74d   :  { %v2978_v56 = vpack.c.bf16 %v2927_v62, %v2926_v0 }
 0x74e   :  { %v2756_v2 = vpop.xlane.xlu1 %2755  ;;  %v5271_v4 = vpop.eup %5270 }
 0x74f   :  { %4799 = vmatprep.mubr.msk.bf16.mxu0 %vm2261_vm4, %v2978_v56  ;;  %v2744_v18 = vpop.xlane.xlu0 %2743  ;;  %v5273_v45 = vpop.eup %5272  ;;  %v2933_v35 = vmul.f32 %v5271_v4, %v6709_v60 }
 0x750   :  { %4800 = vmatmul.mubr.msk.bf16.vlgmr.msra.gmra.mrb[52].mxu0 %vm2261_vm4, %v2979_v42  ;;  %v5275_v24 = vpop.eup %5274  ;;  %v2930_v47 = vmul.f32 %v5273_v45, %v6701_v28  ;;  %v7328_v45 = vld [vmem:[#allocation44_spill] sm:$0xff] }
 0x751   :  { %4810 = vmatpush3.bf16.msra.mxu0 %v7311_v22  ;;  %v2932_v50 = vmul.f32 %v5275_v24, %v6689_v48  ;;  %v7330_v24 = vld [vmem:[#allocation56_spill] sm:$0xff] }
 0x752   :  { %v5277_v15 = vpop.eup %5276  ;;  %4821 = vmatprep.subr.bf16.mxu0 %v7326_v43  ;;  %v2786_v19 = vpop.xlane.xlu1 %2785 }
 0x753   :  { %v2753_v17 = vpop.xlane.xlu0 %2752  ;;  %v2931_v39 = vmul.f32 %v5277_v15, %v6715_v34  ;;  %v2981_v30 = vpack.c.bf16 %v2933_v35, %v2932_v50  ;;  %v7333_v50 = vld [vmem:[#allocation38_spill] sm:$0xff] }
 0x754   :  { %5278 = vrcp.f32 %v2753_v17  ;;  %v7332_v17 = vld [vmem:[#allocation46_spill] sm:$0xff] }
 0x755   :  { %v2980_v51 = vpack.c.bf16 %v2931_v39, %v2930_v47  ;;  %5280 = vrcp.f32 %v2744_v18 }
 0x756   :  { %v2780_v8 = vpop.xlane.xlu1 %2779  ;;  %5282 = vrcp.f32 %v2750_v37 }
 0x757   :  { %4805 = vmatprep.mubr.msk.bf16.mxu1 %vm2261_vm4, %v2980_v51  ;;  %v2747_v22 = vpop.xlane.xlu0 %2746 }
 0x758   :  { %5284 = vrcp.f32 %v2747_v22  ;;  %4806 = vmatmul.mubr.msk.bf16.vlgmr.msra.gmra.mrb[88].mxu1 %vm2261_vm4, %v2981_v30 }
 0x759   :  { %4816 = vmatpush3.bf16.msra.mxu1 %v7325_v11  ;;  %5286 = vrcp.f32 %v6863_v32 }
 0x75a   :  { %v2789_v60 = vpop.xlane.xlu1 %2788  ;;  %5288 = vrcp.f32 %v6886_v27 }
 0x75b   :  { %v2762_v28 = vpop.xlane.xlu0 %2761  ;;  %5290 = vrcp.f32 %v2756_v2 }
 0x75c   :  { %5292 = vrcp.f32 %v2780_v8 }
 0x75e   :  { %v2783_v48 = vpop.xlane.xlu1 %2782  ;;  %v5279_v34 = vpop.eup %5278 }
 0x75f   :  { %v2765_v63 = vpop.xlane.xlu0 %2764  ;;  %v5281_v5 = vpop.eup %5280  ;;  %v2937_v57 = vmul.f32 %v5279_v34, %v6741_v16 }
 0x760   :  { %v5283_v20 = vpop.eup %5282  ;;  %5294 = vrcp.f32 %v2765_v63  ;;  %v2934_v32 = vmul.f32 %v5281_v5, %v6728_v54  ;;  %v7337_v63 = vld [vmem:[#allocation33_spill] sm:$0xff] }
 0x761   :  { %5296 = vrcp.f32 %v2783_v48  ;;  %v2936_v37 = vmul.f32 %v5283_v20, %v6722_v12  ;;  %v7336_v48 = vld [vmem:[#allocation43_spill] sm:$0xff] }
 0x762   :  { %v5285_v53 = vpop.eup %5284  ;;  %v3753_v61 = vpop.permute.xlu1 %3752  ;;  %5298 = vrcp.f32 %v2762_v28 }
 0x763   :  { %v2759_v11 = vpop.xlane.xlu0 %2758  ;;  %4827 = vmatprep.subr.bf16.mxu1 %v3753_v61  ;;  %v2935_v27 = vmul.f32 %v5285_v53, %v6751_v58  ;;  %v2983_v62 = vpack.c.bf16 %v2937_v57, %v2936_v37  ;;  %v5287_v49 = vpop.eup %5286  ;;  %v7338_v57 = vld [vmem:[#allocation45_spill] sm:$0xff] }
 0x764   :  { %5300 = vrcp.f32 %v2759_v11  ;;  %v5289_v16 = vpop.eup %5288 }
 0x765   :  { %5302 = vrcp.f32 %v6882_v36  ;;  %v2982_v0 = vpack.c.bf16 %v2935_v27, %v2934_v32  ;;  %v5291_v54 = vpop.eup %5290 }
 0x766   :  { %5304 = vrcp.f32 %v6889_v13  ;;  %v5293_v12 = vpop.eup %5292  ;;  %v2938_v52 = vmul.f32 %v5291_v54, %v7328_v45 }
 0x767   :  { %5306 = vrcp.f32 %v6842_v59  ;;  %4811 = vmatprep.mubr.msk.bf16.mxu0 %vm2261_vm4, %v2982_v0  ;;  %v2951_v59 = vmul.f32 %v5289_v16, %v6634_v31  ;;  %v2946_v47 = vmul.f32 %v5293_v12, %v7332_v17  ;;  %v3867_v28 = vpop.permute.xlu0 %3866 }
 0x768   :  { %5308 = vrcp.f32 %v6894_v55  ;;  %4812 = vmatmul.mubr.msk.bf16.vlgmr.msra.gmra.mrb[56].mxu0 %vm2261_vm4, %v2983_v62  ;;  %v7327_v55 = vld [vmem:[#allocation41_spill] sm:$0xff] }
 0x769   :  { %5310 = vrcp.f32 %v2789_v60  ;;  %4822 = vmatpush3.bf16.msra.mxu0 %v7326_v43  ;;  %4823 = vmatprep.mubr.msk.bf16.mxu0 %vm2261_vm4, %v2986_v33  ;;  %v2950_v56 = vmul.f32 %v5287_v49, %v7327_v55  ;;  %v7331_v43 = vld [vmem:[#allocation30_spill] sm:$0xff]  ;;  %v7334_v60 = vld [vmem:[#allocation40_spill] sm:$0xff] }
 0x76a   :  { %4833 = vmatprep.subr.bf16.mxu0 %v7312_v26  ;;  %v5295_v58 = vpop.eup %5294  ;;  %5312 = vrcp.f32 %v2786_v19 }
 0x76b   :  { %v5297_v36 = vpop.eup %5296  ;;  %v2941_v42 = vmul.f32 %v5295_v58, %v6773_v23  ;;  %v2990_v18 = vpack.c.bf16 %v2951_v59, %v2950_v56 }
 0x76c   :  { %v5299_v13 = vpop.eup %5298  ;;  %v2947_v15 = vmul.f32 %v5297_v36, %v7330_v24 }
 0x76d   :  { %v2940_v19 = vmul.f32 %v5299_v13, %v7331_v43 }
 0x76e   :  { %v5301_v2 = vpop.eup %5300  ;;  %v2988_v22 = vpack.c.bf16 %v2947_v15, %v2946_v47 }
 0x76f   :  { %v5303_v4 = vpop.eup %5302  ;;  %v2939_v33 = vmul.f32 %v5301_v2, %v7329_v1  ;;  %v2985_v8 = vpack.c.bf16 %v2941_v42, %v2940_v19 }
 0x770   :  { %v5305_v35 = vpop.eup %5304  ;;  %4824 = vmatmul.mubr.msk.bf16.vlgmr.msra.gmra.mrb[60].mxu0 %vm2261_vm4, %v2987_v10  ;;  %v2953_v51 = vmul.f32 %v5303_v4, %v7333_v50 }
 0x771   :  { %v5307_v31 = vpop.eup %5306  ;;  %4834 = vmatpush3.bf16.msra.mxu0 %v7312_v26  ;;  %4835 = vmatprep.mubr.msk.bf16.mxu0 %vm2261_vm4, %v2990_v18  ;;  %v2984_v23 = vpack.c.bf16 %v2939_v33, %v2938_v52  ;;  %v2958_v7 = vmul.f32 %v5305_v35, %v7334_v60 }
 0x772   :  { %v5309_v39 = vpop.eup %5308  ;;  %v2952_v10 = vmul.f32 %v5307_v31, %v7335_v41 }
 0x773   :  { %v5311_v30 = vpop.eup %5310  ;;  %4817 = vmatprep.mubr.msk.bf16.mxu1 %vm2261_vm4, %v2984_v23  ;;  %v2959_v34 = vmul.f32 %v5309_v39, %v7336_v48  ;;  %v4171_v48 = vld [vmem:[#allocation2 + $0x310] sm:$0xff] }
 0x774   :  { %4818 = vmatmul.mubr.msk.bf16.vlgmr.msra.gmra.mrb[92].mxu1 %vm2261_vm4, %v2985_v8  ;;  %v5313_v26 = vpop.eup %5312  ;;  %v2949_v5 = vmul.f32 %v5311_v30, %v7337_v63  ;;  %v2991_v20 = vpack.c.bf16 %v2953_v51, %v2952_v10  ;;  %v4170_v8 = vld [vmem:[#allocation2 + $0x308] sm:$0xff]  ;;  %v4169_v30 = vld [vmem:[#allocation2 + $0x300] sm:$0xff] }
 0x775   :  { %4828 = vmatpush3.bf16.msra.mxu1 %v3753_v61  ;;  %4829 = vmatprep.mubr.msk.bf16.mxu1 %vm2261_vm4, %v2988_v22  ;;  %v2994_v53 = vpack.c.bf16 %v2959_v34, %v2958_v7  ;;  %v2948_v11 = vmul.f32 %v5313_v26, %v7338_v57  ;;  %v4174_v34 = vld [vmem:[#allocation2 + $0x328] sm:$0xff]  ;;  %v4173_v63 = vld [vmem:[#allocation2 + $0x320] sm:$0xff] }
 0x776   :  { %4839 = vmatprep.subr.bf16.mxu1 %v3867_v28  ;;  %v4177_v57 = vld [vmem:[#allocation2 + $0x340] sm:$0xff] }
 0x777   :  { %v2989_v32 = vpack.c.bf16 %v2949_v5, %v2948_v11  ;;  %v4176_v5 = vld [vmem:[#allocation2 + $0x338] sm:$0xff] }
 0x778   :  { %4836 = vmatmul.mubr.msk.bf16.vlgmr.msra.gmra.mrb[64].mxu0 %vm2261_vm4, %v2991_v20  ;;  %v4175_v20 = vld [vmem:[#allocation2 + $0x330] sm:$0xff]  ;;  %v4180_v11 = vld [vmem:[#allocation2 + $0x358] sm:$0xff] }
 0x779   :  { %4847 = vmatprep.mubr.msk.bf16.mxu0 %vm2261_vm4, %v2994_v53  ;;  %v4178_v53 = vld [vmem:[#allocation2 + $0x348] sm:$0xff] }
 0x77c   :  { %4830 = vmatmul.mubr.msk.bf16.vlgmr.msra.gmra.mrb[96].mxu1 %vm2261_vm4, %v2989_v32  ;;  %v4179_v32 = vld [vmem:[#allocation2 + $0x350] sm:$0xff] }
 0x77d   :  { %4840 = vmatpush3.bf16.msra.mxu1 %v3867_v28  ;;  %v4172_v28 = vld [vmem:[#allocation2 + $0x318] sm:$0xff] }
 0x77e   :  { %v6977_v61 = vpop.f32.mrb[40].mxu0 }
 0x77f   :  { %v6979_v27 = vpop.f32.mrb[41].mxu0 }
 0x780   :  { %v6981_v37 = vpop.f32.mrb[42].mxu0 }
 0x781   :  { %v6983_v0 = vpop.f32.mrb[43].mxu0 }
 0x793   :  { %v2837_v62 = vpop.xlane.xlu1 %2836 }
 0x797   :  { %v3925_v49 = vpop.permute.xlu1 %3924 }
 0x798   :  { %v2810_v16 = vpop.xlane.xlu0 %2809  ;;  %4845 = vmatprep.subr.bf16.mxu0 %v3925_v49 }
 0x799   :  { %4846 = vmatpush3.bf16.msra.mxu0 %v3925_v49 }
 0x79a   :  { %4213 = vmatprep.subr.bf16.mxu0 %v4170_v8 }
 0x79c   :  { %v2804_v54 = vpop.xlane.xlu0 %2803  ;;  %4848 = vmatmul.mubr.msk.bf16.vlgmr.msra.gmra.mrb[68].mxu0 %vm2261_vm4, %v2995_v3 }
 0x79d   :  { %4214 = vmatpush1.bf16.msra.mxu0 %v4169_v30 }
 0x79e   :  { %4215 = vmatprep.subr.bf16.mxu0 %v4172_v28 }
 0x7a0   :  { %v2813_v12 = vpop.xlane.xlu0 %2812 }
 0x7a1   :  { %5314 = vrcp.f32 %v2813_v12  ;;  %4216 = vmatpush1.bf16.msra.mxu0 %v4171_v48  ;;  %v4181_v12 = vld [vmem:[#allocation2 + $0x360] sm:$0xff] }
 0x7a2   :  { %5316 = vrcp.f32 %v2804_v54  ;;  %4217 = vmatprep.subr.bf16.mxu0 %v4174_v34 }
 0x7a3   :  { %5318 = vrcp.f32 %v2810_v16 }
 0x7a4   :  { %v2807_v58 = vpop.xlane.xlu0 %2806 }
 0x7a5   :  { %5320 = vrcp.f32 %v2807_v58  ;;  %4218 = vmatpush1.bf16.msra.mxu0 %v4173_v63 }
 0x7a6   :  { %4219 = vmatprep.subr.bf16.mxu0 %v4176_v5 }
 0x7a8   :  { %v2834_v59 = vpop.xlane.xlu0 %2833 }
 0x7a9   :  { %5322 = vrcp.f32 %v2834_v59  ;;  %4220 = vmatpush1.bf16.msra.mxu0 %v4175_v20  ;;  %v4184_v59 = vld [vmem:[#allocation2 + $0x378] sm:$0xff] }
 0x7aa   :  { %4221 = vmatprep.subr.bf16.mxu0 %v4178_v53 }
 0x7ab   :  { %v5315_v36 = vpop.eup %5314 }
 0x7ac   :  { %v2828_v13 = vpop.xlane.xlu0 %2827  ;;  %v5317_v55 = vpop.eup %5316  ;;  %v2957_v42 = vmul.f32 %v5315_v36, %v6826_v38  ;;  %v4183_v36 = vld [vmem:[#allocation2 + $0x370] sm:$0xff] }
 0x7ad   :  { %v5319_v56 = vpop.eup %5318  ;;  %5324 = vrcp.f32 %v2828_v13  ;;  %v2954_v6 = vmul.f32 %v5317_v55, %v6830_v44  ;;  %4222 = vmatpush1.bf16.msra.mxu0 %v4177_v57  ;;  %v4186_v13 = vld [vmem:[#allocation2 + $0x388] sm:$0xff]  ;;  %v4185_v55 = vld [vmem:[#allocation2 + $0x380] sm:$0xff] }
 0x7ae   :  { %5326 = vrcp.f32 %v2837_v62  ;;  %v2956_v4 = vmul.f32 %v5319_v56, %v6822_v29  ;;  %4223 = vmatprep.subr.bf16.mxu0 %v4180_v11  ;;  %v4182_v62 = vld [vmem:[#allocation2 + $0x368] sm:$0xff]  ;;  %v4188_v56 = vld [vmem:[#allocation2 + $0x398] sm:$0xff] }
 0x7af   :  { %v5321_v2 = vpop.eup %5320 }
 0x7b0   :  { %v2831_v14 = vpop.xlane.xlu0 %2830  ;;  %v2955_v3 = vmul.f32 %v5321_v2, %v6837_v25  ;;  %v2993_v45 = vpack.c.bf16 %v2957_v42, %v2956_v4  ;;  %v4187_v2 = vld [vmem:[#allocation2 + $0x390] sm:$0xff]  ;;  %v4190_v42 = vld [vmem:[#allocation2 + $0x3a8] sm:$0xff] }
 0x7b1   :  { %5328 = vrcp.f32 %v2831_v14  ;;  %4224 = vmatpush1.bf16.msra.mxu0 %v4179_v32  ;;  %v4189_v14 = vld [vmem:[#allocation2 + $0x3a0] sm:$0xff]  ;;  %v4191_v4 = vld [vmem:[#allocation2 + $0x3b0] sm:$0xff] }
 0x7b2   :  { %v2992_v18 = vpack.c.bf16 %v2955_v3, %v2954_v6  ;;  %4225 = vmatprep.subr.bf16.mxu0 %v4182_v62  ;;  %v4192_v6 = vld [vmem:[#allocation2 + $0x3b8] sm:$0xff] }
 0x7b3   :  { %v5323_v38 = vpop.eup %5322 }
 0x7b4   :  { %4841 = vmatprep.mubr.msk.bf16.mxu1 %vm2261_vm4, %v2992_v18  ;;  %v3983_v52 = vpop.permute.xlu0 %3982  ;;  %v2964_v44 = vmul.f32 %v5323_v38, %v6867_v21 }
 0x7b5   :  { %4842 = vmatmul.mubr.msk.bf16.vlgmr.msra.gmra.mrb[100].mxu1 %vm2261_vm4, %v2993_v45  ;;  %4851 = vmatprep.subr.bf16.mxu1 %v3983_v52 }
 0x7b6   :  { %4852 = vmatpush3.bf16.msra.mxu1 %v3983_v52  ;;  %4226 = vmatpush1.bf16.msra.mxu0 %v4181_v12 }
 0x7b7   :  { %v5325_v1 = vpop.eup %5324  ;;  %4227 = vmatprep.subr.bf16.mxu0 %v4184_v59 }
 0x7b8   :  { %v5327_v33 = vpop.eup %5326  ;;  %v2962_v25 = vmul.f32 %v5325_v1, %v6876_v46  ;;  %v4194_v1 = vld [vmem:[#allocation2 + $0x3c8] sm:$0xff] }
 0x7b9   :  { %v2965_v15 = vmul.f32 %v5327_v33, %v6816_v9 }
 0x7ba   :  { %4228 = vmatpush1.bf16.msra.mxu0 %v4183_v36 }
 0x7bb   :  { %v5329_v24 = vpop.eup %5328  ;;  %v2997_v31 = vpack.c.bf16 %v2965_v15, %v2964_v44  ;;  %4229 = vmatprep.subr.bf16.mxu0 %v4186_v13  ;;  %v4196_v44 = vld [vmem:[#allocation2 + $0x3d8] sm:$0xff]  ;;  %v4198_v15 = vld [vmem:[#allocation2 + $0x3e8] sm:$0xff] }
 0x7bc   :  { %v2963_v29 = vmul.f32 %v5329_v24, %v6880_v40  ;;  %v4193_v24 = vld [vmem:[#allocation2 + $0x3c0] sm:$0xff] }
 0x7bd   :  { %v4771_v35 = vpop.f32.mrb[76].mxu1 }
 0x7be   :  { %v2996_v43 = vpack.c.bf16 %v2963_v29, %v2962_v25  ;;  %v3097_v19 = vpop.f32.mrb[77].mxu1  ;;  %4230 = vmatpush1.bf16.msra.mxu0 %v4185_v55  ;;  %v4195_v25 = vld [vmem:[#allocation2 + $0x3d0] sm:$0xff] }
 0x7bf   :  { %v4772_v23 = vpop.f32.mrb[78].mxu1  ;;  %4231 = vmatprep.subr.bf16.mxu0 %v4188_v56 }
 0x7c0   :  { %4853 = vmatprep.mubr.msk.bf16.mxu1 %vm2261_vm4, %v2996_v43  ;;  %v4954_v17 = vpack.i.bf16 %v4772_v23, %v4771_v35  ;;  %v3100_v47 = vpop.f32.mrb[79].mxu1  ;;  %v4197_v23 = vld [vmem:[#allocation2 + $0x3e0] sm:$0xff] }
 0x7c1   :  { %4854 = vmatmul.mubr.msk.bf16.vlgmr.msra.gmra.mrb[104].mxu1 %vm2261_vm4, %v2997_v31  ;;  %v4959_v39 = vpack.i.bf16 %v3100_v47, %v3097_v19  ;;  %v4200_v47 = vld [vmem:[#allocation2 + $0x3f8] sm:$0xff] }
 0x7c2   :  { %4955 = vrot.lane.b32.xlu0 %v4954_v17, %s5578_s12  ;;  %4232 = vmatpush1.bf16.msra.mxu0 %v4187_v2 }
 0x7c3   :  { %4233 = vmatprep.subr.bf16.mxu0 %v4190_v42 }
 0x7c6   :  { %4960 = vrot.lane.b32.xlu0 %v4959_v39, %s5578_s12  ;;  %4234 = vmatpush1.bf16.msra.mxu0 %v4189_v14  ;;  %v4199_v39 = vld [vmem:[#allocation2 + $0x3f0] sm:$0xff] }
 0x7c7   :  { %4235 = vmatprep.subr.bf16.mxu0 %v4192_v6 }
 0x7c9   :  { %v4777_v21 = vpop.f32.mrb[44].mxu0 }
 0x7ca   :  { %v3155_v46 = vpop.f32.mrb[45].mxu0  ;;  %4236 = vmatpush1.bf16.msra.mxu0 %v4191_v4 }
 0x7cb   :  { %v4778_v40 = vpop.f32.mrb[46].mxu0  ;;  %4237 = vmatprep.subr.bf16.mxu0 %v4194_v1 }
 0x7cc   :  { %v4964_v9 = vpack.i.bf16 %v4778_v40, %v4777_v21  ;;  %v3158_v50 = vpop.f32.mrb[47].mxu0 }
 0x7cd   :  { %v4969_v51 = vpack.i.bf16 %v3158_v50, %v3155_v46 }
 0x7ce   :  { %4965 = vrot.lane.b32.xlu0 %v4964_v9, %s7260_s27  ;;  %4238 = vmatpush1.bf16.msra.mxu0 %v4193_v24 }
 0x7cf   :  { %4239 = vmatprep.subr.bf16.mxu0 %v4196_v44 }
 0x7d2   :  { %4970 = vrot.lane.b32.xlu0 %v4969_v51, %s7260_s27  ;;  %4240 = vmatpush1.bf16.msra.mxu0 %v4195_v25 }
 0x7d3   :  { %4241 = vmatprep.subr.bf16.mxu0 %v4198_v15 }
 0x7d6   :  { %4242 = vmatpush1.bf16.msra.mxu0 %v4197_v23 }
 0x7d7   :  { %4243 = vmatprep.subr.bf16.mxu0 %v4200_v47 }
 0x7da   :  { %4244 = vmatpush1.bf16.msra.mxu0 %v4199_v39 }
 0x7e8   :  { %v4783_v22 = vpop.f32.mrb[80].mxu1 }
 0x7e9   :  { %v3213_v60 = vpop.f32.mrb[81].mxu1 }
 0x7ea   :  { %v4784_v7 = vpop.f32.mrb[82].mxu1 }
 0x7eb   :  { %v4974_v41 = vpack.i.bf16 %v4784_v7, %v4783_v22  ;;  %v3216_v10 = vpop.f32.mrb[83].mxu1 }
 0x7ec   :  { %v4979_v26 = vpack.i.bf16 %v3216_v10, %v3213_v60 }
 0x7ed   :  { %4975 = vrot.lane.b32.xlu0 %v4974_v41, %s5577_s11 }
 0x7f1   :  { %4980 = vrot.lane.b32.xlu0 %v4979_v26, %s5577_s11 }
 0x802   :  { %v7007_v49 = vpop.f32.mrb[48].mxu0 }
 0x803   :  { %v7009_v16 = vpop.f32.mrb[49].mxu0 }
 0x804   :  { %v7011_v54 = vpop.f32.mrb[50].mxu0 }
 0x805   :  { %v7013_v58 = vpop.f32.mrb[51].mxu0 }
 0x81a   :  { %v4795_v3 = vpop.f32.mrb[84].mxu1 }
 0x81b   :  { %v3327_v18 = vpop.f32.mrb[85].mxu1 }
 0x81c   :  { %v4796_v45 = vpop.f32.mrb[86].mxu1 }
 0x81d   :  { %v4984_v52 = vpack.i.bf16 %v4796_v45, %v4795_v3  ;;  %v3330_v38 = vpop.f32.mrb[87].mxu1 }
 0x81e   :  { %v4989_v33 = vpack.i.bf16 %v3330_v38, %v3327_v18 }
 0x81f   :  { %4985 = vrot.lane.b32.xlu1 %v4984_v52, %s5578_s12 }
 0x823   :  { %v4801_v29 = vpop.f32.mrb[52].mxu0  ;;  %4990 = vrot.lane.b32.xlu1 %v4989_v33, %s5578_s12 }
 0x824   :  { %v3385_v35 = vpop.f32.mrb[53].mxu0 }
 0x825   :  { %v4802_v43 = vpop.f32.mrb[54].mxu0 }
 0x826   :  { %v4994_v19 = vpack.i.bf16 %v4802_v43, %v4801_v29  ;;  %v3388_v31 = vpop.f32.mrb[55].mxu0 }
 0x827   :  { %v4999_v17 = vpack.i.bf16 %v3388_v31, %v3385_v35 }
 0x828   :  { %4995 = vrot.lane.b32.xlu1 %v4994_v19, %s7260_s27 }
 0x82b   :  { %v4807_v21 = vpop.f32.mrb[88].mxu1 }
 0x82c   :  { %5000 = vrot.lane.b32.xlu1 %v4999_v17, %s7260_s27  ;;  %v3443_v46 = vpop.f32.mrb[89].mxu1 }
 0x82d   :  { %v4808_v40 = vpop.f32.mrb[90].mxu1 }
 0x82e   :  { %v5004_v9 = vpack.i.bf16 %v4808_v40, %v4807_v21  ;;  %v3446_v50 = vpop.f32.mrb[91].mxu1 }
 0x82f   :  { %v5009_v51 = vpack.i.bf16 %v3446_v50, %v3443_v46 }
 0x830   :  { %5005 = vrot.lane.b32.xlu1 %v5004_v9, %s5577_s11 }
 0x834   :  { %5010 = vrot.lane.b32.xlu1 %v5009_v51, %s5577_s11  ;;  %v4956_v57 = vpop.permute.xlu0 %4955 }
 0x835   :  { %v4958_v3 = vunpack.i.h.bf16 %v4956_v57  ;;  %v4957_v4 = vunpack.i.l.bf16 %v4956_v57 }
 0x837   :  { %v3557_v38 = vsel %vm1180_vm2, %v6981_v37, %v4958_v3  ;;  %v3556_v1 = vsel %vm1180_vm2, %v6977_v61, %v4957_v4 }
 0x838   :  { %v4961_v55 = vpop.permute.xlu0 %4960 }
 0x839   :  { %v4963_v24 = vunpack.i.h.bf16 %v4961_v55  ;;  %v4962_v44 = vunpack.i.l.bf16 %v4961_v55 }
 0x83b   :  { %v7021_v8 = vpop.f32.mrb[56].mxu0  ;;  %v3555_v17 = vsel %vm1180_vm2, %v6983_v0, %v4963_v24  ;;  %v3554_v47 = vsel %vm1180_vm2, %v6979_v27, %v4962_v44 }
 0x83c   :  { %v7023_v30 = vpop.f32.mrb[57].mxu0 }
 0x83d   :  { %v7025_v22 = vpop.f32.mrb[58].mxu0 }
 0x83e   :  { %v7027_v60 = vpop.f32.mrb[59].mxu0 }
 0x840   :  { %v4966_v6 = vpop.permute.xlu0 %4965 }
 0x841   :  { %v4968_v45 = vunpack.i.h.bf16 %v4966_v6  ;;  %v4967_v52 = vunpack.i.l.bf16 %v4966_v6 }
 0x843   :  { %v4825_v7 = vpop.f32.mrb[60].mxu0  ;;  %v3561_v15 = vsel %vm3558_vm5, %v3556_v1, %v4967_v52  ;;  %v3562_v35 = vsel %vm3558_vm5, %v3557_v38, %v4968_v45 }
 0x844   :  { %v3737_v41 = vpop.f32.mrb[61].mxu0  ;;  %v4971_v18 = vpop.permute.xlu0 %4970 }
 0x845   :  { %v4826_v10 = vpop.f32.mrb[62].mxu0  ;;  %v4973_v43 = vunpack.i.h.bf16 %v4971_v18  ;;  %v4972_v19 = vunpack.i.l.bf16 %v4971_v18 }
 0x846   :  { %v5059_v26 = vpack.i.bf16 %v4826_v10, %v4825_v7  ;;  %v3740_v28 = vpop.f32.mrb[63].mxu0 }
 0x847   :  { %v5024_v48 = vpack.i.bf16 %v3740_v28, %v3737_v41  ;;  %v4819_v34 = vpop.f32.mrb[92].mxu1  ;;  %v3559_v46 = vsel %vm3558_vm5, %v3554_v47, %v4972_v19  ;;  %v3560_v40 = vsel %vm3558_vm5, %v3555_v17, %v4973_v43 }
 0x848   :  { %v3679_v63 = vpop.f32.mrb[93].mxu1 }
 0x849   :  { %v4820_v5 = vpop.f32.mrb[94].mxu1 }
 0x84a   :  { %v5014_v20 = vpack.i.bf16 %v4820_v5, %v4819_v34  ;;  %v3682_v53 = vpop.f32.mrb[95].mxu1 }
 0x84b   :  { %v5019_v11 = vpack.i.bf16 %v3682_v53, %v3679_v63  ;;  %v7029_v32 = vpop.f32.mrb[64].mxu0 }
 0x84c   :  { %v7031_v62 = vpop.f32.mrb[65].mxu0  ;;  %5015 = vrot.lane.b32.xlu0 %v5014_v20, %s5578_s12 }
 0x84d   :  { %v7034_v12 = vpop.f32.mrb[66].mxu0 }
 0x84e   :  { %v7036_v59 = vpop.f32.mrb[67].mxu0 }
 0x84f   :  { %v4831_v36 = vpop.f32.mrb[96].mxu1 }
 0x850   :  { %5020 = vrot.lane.b32.xlu0 %v5019_v11, %s5578_s12  ;;  %v3795_v13 = vpop.f32.mrb[97].mxu1 }
 0x851   :  { %v4832_v56 = vpop.f32.mrb[98].mxu1 }
 0x852   :  { %v5069_v2 = vpack.i.bf16 %v4832_v56, %v4831_v36  ;;  %v3798_v42 = vpop.f32.mrb[99].mxu1 }
 0x853   :  { %v5029_v14 = vpack.i.bf16 %v3798_v42, %v3795_v13 }
 0x854   :  { %5025 = vrot.lane.b32.xlu0 %v5024_v48, %s7260_s27 }
 0x858   :  { %5030 = vrot.lane.b32.xlu0 %v5029_v14, %s5577_s11 }
 0x85c   :  { %5060 = vrot.lane.b32.xlu0 %v5059_v26, %s7260_s27 }
 0x85f   :  { %v4976_v33 = vpop.permute.xlu0 %4975 }
 0x860   :  { %5070 = vrot.lane.b32.xlu0 %v5069_v2, %s5577_s11  ;;  %v4978_v25 = vunpack.i.h.bf16 %v4976_v33  ;;  %v4977_v29 = vunpack.i.l.bf16 %v4976_v33 }
 0x862   :  { %v7050_v31 = vsel %vm3563_vm6, %v3561_v15, %v4977_v29  ;;  %v7053_v37 = vsel %vm3563_vm6, %v3562_v35, %v4978_v25 }
 0x863   :  { %v4981_v61 = vpop.permute.xlu0 %4980  ;;  %v4162_v23 = vpack.c.bf16 %v7053_v37, %v7050_v31 }
 0x864   :  { %v4983_v39 = vunpack.i.h.bf16 %v4981_v61  ;;  %v4982_v21 = vunpack.i.l.bf16 %v4981_v61 }
 0x866   :  { %v3564_v9 = vsel %vm3563_vm6, %v3559_v46, %v4982_v21  ;;  %v3565_v50 = vsel %vm3563_vm6, %v3560_v40, %v4983_v39 }
 0x867   :  { %v4160_v51 = vpack.c.bf16 %v3565_v50, %v3564_v9 }
 0x86f   :  { %v4849_v7 = vpop.f32.mrb[68].mxu0 }
 0x870   :  { %v3967_v41 = vpop.f32.mrb[69].mxu0 }
 0x871   :  { %v4850_v10 = vpop.f32.mrb[70].mxu0 }
 0x872   :  { %v5054_v26 = vpack.i.bf16 %v4850_v10, %v4849_v7  ;;  %v3970_v28 = vpop.f32.mrb[71].mxu0 }
 0x873   :  { %v5044_v0 = vpack.i.bf16 %v3970_v28, %v3967_v41 }
 0x888   :  { %v4843_v48 = vpop.f32.mrb[100].mxu1 }
 0x889   :  { %v3909_v34 = vpop.f32.mrb[101].mxu1 }
 0x88a   :  { %v4844_v27 = vpop.f32.mrb[102].mxu1 }
 0x88b   :  { %v5034_v63 = vpack.i.bf16 %v4844_v27, %v4843_v48  ;;  %v3912_v5 = vpop.f32.mrb[103].mxu1 }
 0x88c   :  { %v5039_v20 = vpack.i.bf16 %v3912_v5, %v3909_v34 }
 0x88d   :  { %5035 = vrot.lane.b32.xlu1 %v5034_v63, %s5578_s12 }
 0x891   :  { %5040 = vrot.lane.b32.xlu1 %v5039_v20, %s5578_s12  ;;  %v4986_v53 = vpop.permute.xlu1 %4985 }
 0x892   :  { %v4988_v14 = vunpack.i.h.bf16 %v4986_v53  ;;  %v4987_v6 = vunpack.i.l.bf16 %v4986_v53 }
 0x894   :  { %v4855_v57 = vpop.f32.mrb[104].mxu1  ;;  %v3571_v45 = vsel %vm1180_vm2, %v7011_v54, %v4988_v14  ;;  %v3570_v52 = vsel %vm1180_vm2, %v7007_v49, %v4987_v6 }
 0x895   :  { %5045 = vrot.lane.b32.xlu1 %v5044_v0, %s7260_s27  ;;  %v4025_v11 = vpop.f32.mrb[105].mxu1  ;;  %v4991_v36 = vpop.permute.xlu1 %4990 }
 0x896   :  { %v4856_v13 = vpop.f32.mrb[106].mxu1  ;;  %v4993_v1 = vunpack.i.h.bf16 %v4991_v36  ;;  %v4992_v33 = vunpack.i.l.bf16 %v4991_v36 }
 0x897   :  { %v5064_v55 = vpack.i.bf16 %v4856_v13, %v4855_v57  ;;  %v4028_v56 = vpop.f32.mrb[107].mxu1 }
 0x898   :  { %v5049_v2 = vpack.i.bf16 %v4028_v56, %v4025_v11  ;;  %v3569_v49 = vsel %vm1180_vm2, %v7013_v58, %v4993_v1  ;;  %v3568_v17 = vsel %vm1180_vm2, %v7009_v16, %v4992_v33 }
 0x89a   :  { %v4996_v42 = vpop.permute.xlu1 %4995  ;;  %5050 = vrot.lane.b32.xlu1 %v5049_v2, %s5577_s11 }
 0x89b   :  { %v4998_v4 = vunpack.i.h.bf16 %v4996_v42  ;;  %v4997_v18 = vunpack.i.l.bf16 %v4996_v42 }
 0x89d   :  { %v3575_v25 = vsel %vm3558_vm5, %v3571_v45, %v4998_v4  ;;  %v3574_v29 = vsel %vm3558_vm5, %v3570_v52, %v4997_v18 }
 0x89e   :  { %v5001_v3 = vpop.permute.xlu1 %5000  ;;  %5055 = vrot.lane.b32.xlu1 %v5054_v26, %s7260_s27  ;;  %s4336_s27 = sshll.u32 %s5580_s13, 4  ;;  %s4337_s27 = int_to_ptr.vmem [resolvable:$true] %s4336_s27 }
 0x89f   :  { %v5003_v15 = vunpack.i.h.bf16 %v5001_v3  ;;  %v5002_v35 = vunpack.i.l.bf16 %v5001_v3  ;;  %s5478_s17 = scalar_lea.vmem %s4337_s27, 32  ;;  %p5483_p7 = scmp.lt.s32.totalorder %s4337_s27, %s4337_s27 }
 0x8a0   :  { %p5479_p6 = scmp.ne.s32.totalorder %s4337_s27, %s5478_s17  ;;  %p5484_p8 = scmp.lt.s32.totalorder %s5478_s17, %s5478_s17 }
 0x8a1   :  { %v3573_v21 = vsel %vm3558_vm5, %v3569_v49, %v5003_v15  ;;  %v3572_v46 = vsel %vm3558_vm5, %v3568_v17, %v5002_v35 }
 0x8a2   :  { %v5006_v38 = vpop.permute.xlu1 %5005  ;;  %5065 = vrot.lane.b32.xlu1 %v5064_v55, %s5577_s11  ;;  %p5485_p9 = por %p5484_p8, %p5483_p7 }
 0x8a3   :  { %v5008_v24 = vunpack.i.h.bf16 %v5006_v38  ;;  %v5007_v44 = vunpack.i.l.bf16 %v5006_v38 }
 0x8a4   :  { %p5486_p10 = pnand %p5485_p9, %p5479_p6 }
 0x8a5   :  { %v3578_v43 = vsel %vm3563_vm6, %v3574_v29, %v5007_v44  ;;  %v3579_v54 = vsel %vm3563_vm6, %v3575_v25, %v5008_v24 }
 0x8a6   :  { %v5011_v19 = vpop.permute.xlu1 %5010  ;;  %v4163_v61 = vpack.c.bf16 %v3579_v54, %v3578_v43 }
 0x8a7   :  { %v5013_v47 = vunpack.i.h.bf16 %v5011_v19  ;;  %v5012_v39 = vunpack.i.l.bf16 %v5011_v19 }
 0x8a9   :  { %v3576_v40 = vsel %vm3563_vm6, %v3572_v46, %v5012_v39  ;;  %v3577_v9 = vsel %vm3563_vm6, %v3573_v21, %v5013_v47 }
 0x8aa   :  { %v4161_v50 = vpack.c.bf16 %v3577_v9, %v3576_v40 }
 0x8ac   :  { %4245 = vmatprep.mubr.bf16.mxu0 %v4161_v50 }
 0x8ad   :  { %4246 = vmatmul.mubr.bf16.vlgmr.msra.gmra.mrb[72].mxu0 %v4160_v51 }
 0x8ae   :  { %4255 = vmatprep.mubr.bf16.mxu0 %v4163_v61 }
 0x8b5   :  { %4256 = vmatmul.mubr.bf16.gmra.mrb[76].mxu0 %v4162_v23 }
 0x8be   :  { %v5016_v58 = vpop.permute.xlu0 %5015 }
 0x8bf   :  { %v5018_v53 = vunpack.i.h.bf16 %v5016_v58  ;;  %v5017_v57 = vunpack.i.l.bf16 %v5016_v58 }
 0x8c1   :  { %v4138_v13 = vsel %vm1180_vm2, %v7021_v8, %v5017_v57 }
 0x8c2   :  { %v5021_v16 = vpop.permute.xlu0 %5020 }
 0x8c3   :  { %v5023_v41 = vunpack.i.h.bf16 %v5021_v16  ;;  %v5022_v10 = vunpack.i.l.bf16 %v5021_v16 }
 0x8c5   :  { %v4137_v48 = vsel %vm1180_vm2, %v7027_v60, %v5023_v41  ;;  %v4136_v34 = vsel %vm1180_vm2, %v7023_v30, %v5022_v10  ;;  %v4139_v30 = vsel %vm1180_vm2, %v7025_v22, %v5018_v53 }
 0x8c6   :  { %v5026_v7 = vpop.permute.xlu0 %5025 }
 0x8c7   :  { %v5028_v26 = vunpack.i.h.bf16 %v5026_v7  ;;  %v5027_v28 = vunpack.i.l.bf16 %v5026_v7 }
 0x8c9   :  { %v4140_v63 = vsel %vm3558_vm5, %v4136_v34, %v5027_v28  ;;  %v4141_v31 = vsel %vm3558_vm5, %v4137_v48, %v5028_v26 }
 0x8ca   :  { %v5031_v0 = vpop.permute.xlu0 %5030 }
 0x8cb   :  { %v5033_v51 = vunpack.i.h.bf16 %v5031_v0  ;;  %v5032_v27 = vunpack.i.l.bf16 %v5031_v0 }
 0x8cd   :  { %v4144_v37 = vsel %vm3563_vm6, %v4140_v63, %v5032_v27  ;;  %v4145_v23 = vsel %vm3563_vm6, %v4141_v31, %v5033_v51 }
 0x8ce   :  { %v5061_v5 = vpop.permute.xlu0 %5060  ;;  %v4164_v20 = vpack.c.bf16 %v4145_v23, %v4144_v37 }
 0x8cf   :  { %v5063_v11 = vunpack.i.h.bf16 %v5061_v5  ;;  %v5062_v36 = vunpack.i.l.bf16 %v5061_v5 }
 0x8d1   :  { %v4142_v2 = vsel %vm3558_vm5, %v4138_v13, %v5062_v36  ;;  %v4143_v42 = vsel %vm3558_vm5, %v4139_v30, %v5063_v11 }
 0x8d2   :  { %v5071_v60 = vpop.permute.xlu0 %5070 }
 0x8d3   :  { %v5073_v55 = vunpack.i.h.bf16 %v5071_v60  ;;  %v5072_v56 = vunpack.i.l.bf16 %v5071_v60 }
 0x8d5   :  { %v4146_v14 = vsel %vm3563_vm6, %v4142_v2, %v5072_v56  ;;  %v4147_v6 = vsel %vm3563_vm6, %v4143_v42, %v5073_v55 }
 0x8d6   :  { %v4166_v3 = vpack.c.bf16 %v4147_v6, %v4146_v14 }
 0x8ff   :  { %v5036_v4 = vpop.permute.xlu1 %5035 }
 0x900   :  { %v5038_v61 = vunpack.i.h.bf16 %v5036_v4  ;;  %v5037_v49 = vunpack.i.l.bf16 %v5036_v4 }
 0x902   :  { %v4150_v39 = vsel %vm1180_vm2, %v7029_v32, %v5037_v49 }
 0x903   :  { %v5041_v18 = vpop.permute.xlu1 %5040 }
 0x904   :  { %v5043_v52 = vunpack.i.h.bf16 %v5041_v18  ;;  %v5042_v38 = vunpack.i.l.bf16 %v5041_v18 }
 0x906   :  { %v4149_v8 = vsel %vm1180_vm2, %v7036_v59, %v5043_v52  ;;  %v4148_v24 = vsel %vm1180_vm2, %v7031_v62, %v5042_v38  ;;  %v4151_v62 = vsel %vm1180_vm2, %v7034_v12, %v5038_v61 }
 0x907   :  { %v5046_v45 = vpop.permute.xlu1 %5045 }
 0x908   :  { %v5048_v22 = vunpack.i.h.bf16 %v5046_v45  ;;  %v5047_v1 = vunpack.i.l.bf16 %v5046_v45 }
 0x90a   :  { %v4152_v29 = vsel %vm3558_vm5, %v4148_v24, %v5047_v1  ;;  %v4153_v15 = vsel %vm3558_vm5, %v4149_v8, %v5048_v22 }
 0x90c   :  { %v5051_v33 = vpop.permute.xlu1 %5050 }
 0x90d   :  { %v5053_v44 = vunpack.i.h.bf16 %v5051_v33  ;;  %v5052_v25 = vunpack.i.l.bf16 %v5051_v33 }
 0x90f   :  { %v4156_v35 = vsel %vm3563_vm6, %v4152_v29, %v5052_v25  ;;  %v4157_v43 = vsel %vm3563_vm6, %v4153_v15, %v5053_v44 }
 0x910   :  { %v5056_v54 = vpop.permute.xlu1 %5055  ;;  %v4165_v19 = vpack.c.bf16 %v4157_v43, %v4156_v35 }
 0x911   :  { %v5058_v17 = vunpack.i.h.bf16 %v5056_v54  ;;  %v5057_v47 = vunpack.i.l.bf16 %v5056_v54 }
 0x912   :  { %4265 = vmatprep.mubr.bf16.mxu0 %v4165_v19 }
 0x913   :  { %4266 = vmatmul.mubr.bf16.gmra.mrb[80].mxu0 %v4164_v20  ;;  %v4155_v40 = vsel %vm3558_vm5, %v4151_v62, %v5058_v17  ;;  %v4154_v9 = vsel %vm3558_vm5, %v4150_v39, %v5057_v47 }
 0x914   :  { %v5066_v59 = vpop.permute.xlu1 %5065 }
 0x915   :  { %v5068_v21 = vunpack.i.h.bf16 %v5066_v59  ;;  %v5067_v46 = vunpack.i.l.bf16 %v5066_v59 }
 0x917   :  { %v4158_v50 = vsel %vm3563_vm6, %v4154_v9, %v5067_v46  ;;  %v4159_v58 = vsel %vm3563_vm6, %v4155_v40, %v5068_v21 }
 0x918   :  { %v4167_v16 = vpack.c.bf16 %v4159_v58, %v4158_v50 }
 0x91a   :  { %4275 = vmatprep.mubr.bf16.mxu0 %v4167_v16 }
 0x91b   :  { %4276 = vmatmul.mubr.bf16.gmra.mrb[84].mxu0 %v4166_v3 }
 0x91c   :  { %5489 = shalt.err (!%p5486_p10)
}
 0x91d   :  { %s5490_s9 = scalar_lea.hbm %s7202_s16, 32 }
 0x91e   :  { %p5491_p11 = scmp.ne.s32.totalorder %s7202_s16, %s5490_s9  ;;  %p5494_p12 = scmp.lt.u32.totalorder %s5490_s9, %s7202_s16 }
 0x920   :  { %p5496_p13 = pnand %p5494_p12, %p5491_p11 }
 0x922   :  { %5499 = shalt.err (!%p5496_p13)
}
 0x923   :  { %4339 = dma.vmem_to_hbm [thread:$0]  %s4337_s27, 32, %s7202_s16, [#allocation17]   ;;  %v4201_v32 = vld [vmem:[%s7200_s14] sm:$0x3] }
 0x924   :  { %s5581_s22 = smov [#allocation18]  }
 0x925   :  { %s4346_s4 = sshll.u32 %s5581_s22, 4  ;;  %s4347_s4 = int_to_ptr.vmem [resolvable:$true] %s4346_s4 }
 0x926   :  { %s5500_s18 = scalar_lea.vmem %s4347_s4, 32  ;;  %p5505_p1 = scmp.lt.s32.totalorder %s4347_s4, %s4347_s4 }
 0x927   :  { %p5501_p0 = scmp.ne.s32.totalorder %s4347_s4, %s5500_s18  ;;  %p5506_p2 = scmp.lt.s32.totalorder %s5500_s18, %s5500_s18 }
 0x929   :  { %p5507_p3 = por %p5506_p2, %p5505_p1 }
 0x92b   :  { %p5508_p4 = pnand %p5507_p3, %p5501_p0 }
 0x92d   :  { %5511 = shalt.err (!%p5508_p4)
}
 0x92e   :  { %s7339_s8 = sld [smem:[#allocation61_spill]] }
 0x934   :  { %s5512_s7 = scalar_lea.hbm %s7339_s8, 32 }
 0x935   :  { %p5513_p5 = scmp.ne.s32.totalorder %s7339_s8, %s5512_s7  ;;  %p5516_p6 = scmp.lt.u32.totalorder %s5512_s7, %s7339_s8 }
 0x937   :  { %p5518_p7 = pnand %p5516_p6, %p5513_p5 }
 0x939   :  { %5521 = shalt.err (!%p5518_p7)
}
 0x93a   :  { %4349 = dma.vmem_to_hbm [thread:$0]  %s4347_s4, 32, %s7339_s8, [#allocation17]   ;;  %v7340_v12 = vld [vmem:[#allocation28_spill] sm:$0xff]  ;;  %v7341_v41 = vld [vmem:[#allocation29_spill] sm:$0xff]  ;;  %v5333_v57 = vld [vmem:[#allocation4 + $0x18] sm:$0xff] }
 0x93b   :  { %v7150_v7 = vrot.slane %v4201_v32, %v7340_v12  ;;  %v7153_v10 = vrot.slane %v4201_v32, %v7341_v41  ;;  %v5330_v51 = vld [vmem:[#allocation4] sm:$0xff]  ;;  %v5331_v37 = vld [vmem:[#allocation4 + $0x8] sm:$0xff]  ;;  %v5332_v20 = vld [vmem:[#allocation4 + $0x10] sm:$0xff]  ;;  %s5582_s1 = smov [#allocation15]  }
 0x93c   :  { %v5334_v56 = vld [vmem:[#allocation4 + $0x20] sm:$0xff]  ;;  %v5335_v6 = vld [vmem:[#allocation4 + $0x28] sm:$0xff]  ;;  %v5336_v18 = vld [vmem:[#allocation4 + $0x30] sm:$0xff]  ;;  %s4323_s3 = sshll.u32 %s5582_s1, 4  ;;  %s4324_s3 = int_to_ptr.vmem [resolvable:$true] %s4323_s3 }
 0x93d   :  { %v5337_v52 = vld [vmem:[#allocation4 + $0x38] sm:$0xff]  ;;  %v5338_v44 = vld [vmem:[#allocation4 + $0x40] sm:$0xff]  ;;  %v5339_v35 = vld [vmem:[#allocation4 + $0x48] sm:$0xff]  ;;  %s5522_s13 = scalar_lea.vmem %s4324_s3, 2048  ;;  %p5527_p9 = scmp.lt.s32.totalorder %s4324_s3, %s4324_s3 }
 0x93e   :  { %v5340_v19 = vld [vmem:[#allocation4 + $0x50] sm:$0xff]  ;;  %v5341_v49 = vld [vmem:[#allocation4 + $0x58] sm:$0xff]  ;;  %v5342_v46 = vld [vmem:[#allocation4 + $0x60] sm:$0xff]  ;;  %p5523_p8 = scmp.ne.s32.totalorder %s4324_s3, %s5522_s13  ;;  %p5528_p10 = scmp.lt.s32.totalorder %s5522_s13, %s5522_s13 }
 0x93f   :  { %v5343_v58 = vld [vmem:[#allocation4 + $0x68] sm:$0xff]  ;;  %v5344_v12 = vld [vmem:[#allocation4 + $0x70] sm:$0xff] }
 0x940   :  { %p5529_p11 = por %p5528_p10, %p5527_p9 }
 0x942   :  { %p5530_p12 = pnand %p5529_p11, %p5523_p8 }
 0x980   :  { %v4247_v26 = vpop.f32.mrb[72].mxu0 }
 0x981   :  { %v4248_v28 = vadd.f32 %v4247_v26, %v7150_v7  ;;  %v4249_v0 = vpop.f32.mrb[73].mxu0  ;;  %v5345_v26 = vld [vmem:[#allocation4 + $0x78] sm:$0xff] }
 0x982   :  { %v4250_v48 = vadd.f32 %v4249_v0, %v7153_v10  ;;  %v4251_v34 = vpop.f32.mrb[74].mxu0 }
 0x983   :  { %v4286_v27 = vadd.f32 %v5330_v51, %v4248_v28  ;;  %v4252_v63 = vadd.f32 %v4251_v34, %v7150_v7  ;;  %v4253_v31 = vpop.f32.mrb[75].mxu0 }
 0x984   :  { %v4287_v23 = vadd.f32 %v5331_v37, %v4250_v48  ;;  %v4254_v5 = vadd.f32 %v4253_v31, %v7153_v10 }
 0x985   :  { %4302 = vst [vmem:[#allocation15] sm:$0xff] %v4286_v27  ;;  %v4288_v53 = vadd.f32 %v5332_v20, %v4252_v63 }
 0x986   :  { %4303 = vst [vmem:[#allocation15 + $0x8] sm:$0xff] %v4287_v23  ;;  %v4289_v11 = vadd.f32 %v5333_v57, %v4254_v5 }
 0x987   :  { %4304 = vst [vmem:[#allocation15 + $0x10] sm:$0xff] %v4288_v53 }
 0x988   :  { %4305 = vst [vmem:[#allocation15 + $0x18] sm:$0xff] %v4289_v11  ;;  %v4257_v36 = vpop.f32.mrb[76].mxu0 }
 0x989   :  { %v4258_v60 = vadd.f32 %v4257_v36, %v7150_v7  ;;  %v4259_v30 = vpop.f32.mrb[77].mxu0 }
 0x98a   :  { %v4260_v13 = vadd.f32 %v4259_v30, %v7153_v10  ;;  %v4261_v55 = vpop.f32.mrb[78].mxu0 }
 0x98b   :  { %v4290_v2 = vadd.f32 %v5334_v56, %v4258_v60  ;;  %v4262_v42 = vadd.f32 %v4261_v55, %v7150_v7  ;;  %v4263_v14 = vpop.f32.mrb[79].mxu0 }
 0x98c   :  { %v4291_v3 = vadd.f32 %v5335_v6, %v4260_v13  ;;  %v4264_v4 = vadd.f32 %v4263_v14, %v7153_v10 }
 0x98d   :  { %4306 = vst [vmem:[#allocation15 + $0x20] sm:$0xff] %v4290_v2  ;;  %v4292_v45 = vadd.f32 %v5336_v18, %v4262_v42 }
 0x98e   :  { %4307 = vst [vmem:[#allocation15 + $0x28] sm:$0xff] %v4291_v3  ;;  %v4293_v38 = vadd.f32 %v5337_v52, %v4264_v4 }
 0x98f   :  { %4308 = vst [vmem:[#allocation15 + $0x30] sm:$0xff] %v4292_v45 }
 0x990   :  { %4309 = vst [vmem:[#allocation15 + $0x38] sm:$0xff] %v4293_v38 }
 0x9e6   :  { %v4267_v22 = vpop.f32.mrb[80].mxu0 }
 0x9e7   :  { %v4268_v1 = vadd.f32 %v4267_v22, %v7150_v7  ;;  %v4269_v33 = vpop.f32.mrb[81].mxu0 }
 0x9e8   :  { %v4270_v8 = vadd.f32 %v4269_v33, %v7153_v10  ;;  %v4271_v24 = vpop.f32.mrb[82].mxu0 }
 0x9e9   :  { %v4294_v25 = vadd.f32 %v5338_v44, %v4268_v1  ;;  %v4272_v29 = vadd.f32 %v4271_v24, %v7150_v7  ;;  %v4273_v15 = vpop.f32.mrb[83].mxu0 }
 0x9ea   :  { %v4295_v43 = vadd.f32 %v5339_v35, %v4270_v8  ;;  %v4274_v54 = vadd.f32 %v4273_v15, %v7153_v10 }
 0x9eb   :  { %4310 = vst [vmem:[#allocation15 + $0x40] sm:$0xff] %v4294_v25  ;;  %v4296_v61 = vadd.f32 %v5340_v19, %v4272_v29 }
 0x9ec   :  { %4311 = vst [vmem:[#allocation15 + $0x48] sm:$0xff] %v4295_v43  ;;  %v4297_v17 = vadd.f32 %v5341_v49, %v4274_v54 }
 0x9ed   :  { %4312 = vst [vmem:[#allocation15 + $0x50] sm:$0xff] %v4296_v61 }
 0x9ee   :  { %4313 = vst [vmem:[#allocation15 + $0x58] sm:$0xff] %v4297_v17  ;;  %v4277_v47 = vpop.f32.mrb[84].mxu0 }
 0x9ef   :  { %v4278_v59 = vadd.f32 %v4277_v47, %v7150_v7  ;;  %v4279_v62 = vpop.f32.mrb[85].mxu0 }
 0x9f0   :  { %v4280_v39 = vadd.f32 %v4279_v62, %v7153_v10  ;;  %v4281_v21 = vpop.f32.mrb[86].mxu0 }
 0x9f1   :  { %v4298_v40 = vadd.f32 %v5342_v46, %v4278_v59  ;;  %v4282_v9 = vadd.f32 %v4281_v21, %v7150_v7  ;;  %v4283_v50 = vpop.f32.mrb[87].mxu0 }
 0x9f2   :  { %v4299_v16 = vadd.f32 %v5343_v58, %v4280_v39  ;;  %v4284_v32 = vadd.f32 %v4283_v50, %v7153_v10 }
 0x9f3   :  { %4314 = vst [vmem:[#allocation15 + $0x60] sm:$0xff] %v4298_v40  ;;  %v4300_v41 = vadd.f32 %v5344_v12, %v4282_v9 }
 0x9f4   :  { %4315 = vst [vmem:[#allocation15 + $0x68] sm:$0xff] %v4299_v16  ;;  %v4301_v28 = vadd.f32 %v5345_v26, %v4284_v32 }
 0x9f5   :  { %4316 = vst [vmem:[#allocation15 + $0x70] sm:$0xff] %v4300_v41 }
 0x9f6   :  { %4317 = vst [vmem:[#allocation15 + $0x78] sm:$0xff] %v4301_v28 }
 0x9f7   :  { %5533 = shalt.err (!%p5530_p12)
}
 0x9f8   :  { %s7342_s25 = sld [smem:[#allocation60_spill]] }
 0x9fe   :  { %s5534_s23 = scalar_lea.hbm %s7342_s25, 2048 }
 0x9ff   :  { %p5535_p13 = scmp.ne.s32.totalorder %s7342_s25, %s5534_s23  ;;  %p5538_p0 = scmp.lt.u32.totalorder %s5534_s23, %s7342_s25 }
 0xa01   :  { %p5540_p1 = pnand %p5538_p0, %p5535_p13 }
 0xa03   :  { %5543 = shalt.err (!%p5540_p1)
}
 0xa04   :  { %4329 = dma.vmem_to_hbm [thread:$0]  %s4324_s3, 2048, %s7342_s25, [#allocation6], %s5565_s5, %s5565_s5, %s5566_s26  }
 0xa05   :  { %5554 = dma.done.wait [#allocation6], 2048  }
 0xa06   :  { %5555 = vsyncadd [#allocation6], 4294965248 }
 0xa07   :  { %5556 = dma.done.wait [#allocation17], 64  }
 0xa08   :  { %5557 = vsyncadd [#allocation17], 4294967232 }
 0xa09   :  { %4359 = vsyncpa [#allocation5], 1 }
 0xa0a   :  { %4360 = vsyncpa [#allocation8], 1 }
 0xa0b   :  { %4361 = vsyncpa [#allocation11], 1 }
 0xa0c   :  { %4362 = vsyncpa [#allocation14], 1 }
 0xa0d   :  { %4363 = vsyncpa [#allocation6], 1 }
 0xa0e   :  { %4364 = vsyncpa [#allocation17], 1 }
 0xa0f   :  { %4365 = vsyncmov [#allocation3] }
 0xa12   :  { %s4366_s2 = vpop.sfrf %4365 }
 0xa13   :  { %p4488_p2 = scmp.ne.s32.totalorder %s4366_s2, 0 }
 0xa15   :  { %4370 = shalt.err (%p4488_p2)  }

</bundles_post_ra>
